<compile_context>
chip_gen: v7x
topology: tpu7x:2x2x1
jax: 0.10.0
libtpu: 0.0.40
codegen_flags: <defaults>
</compile_context>

<pallas_src>
import functools

import jax
import jax.numpy as jnp
from jax import lax
from jax.experimental import pallas as pl
from jax.experimental.pallas import tpu as pltpu


GN_GROUPS = 16
GN_EPS = 1e-5


def _round_up(x, m):
    return (x + m - 1) // m * m


# ----------------------------------------------------------------------------
# plain-JAX glue: bilinear resize + im2col
# ----------------------------------------------------------------------------
def _bilinear_matrix(in_size, out_size):
    """[out, in] interpolation matrix matching torch bilinear, align_corners=False."""
    scale = in_size / out_size
    dst = jnp.arange(out_size, dtype=jnp.float32)
    src = jnp.maximum((dst + 0.5) * scale - 0.5, 0.0)
    i0 = jnp.minimum(jnp.floor(src).astype(jnp.int32), in_size - 1)
    i1 = jnp.minimum(i0 + 1, in_size - 1)
    w1 = src - i0.astype(jnp.float32)
    w0 = 1.0 - w1
    return (jax.nn.one_hot(i0, in_size, dtype=jnp.float32) * w0[:, None]
            + jax.nn.one_hot(i1, in_size, dtype=jnp.float32) * w1[:, None])


def _bilinear_resize(x_nhwc, ho, wo):
    _, hi, wi, _ = x_nhwc.shape
    mh = _bilinear_matrix(hi, ho)
    mw = _bilinear_matrix(wi, wo)
    x = jnp.einsum("oh,bhwc->bowc", mh, x_nhwc)
    x = jnp.einsum("pw,bhwc->bhpc", mw, x)
    return x


def _im2col_padded(x, kh, kw, pad, kp, hwp):
    """x: [B,H,W,C] bf16, stride-1 'same' conv patches -> [B, hwp, kp] bf16.

    K zero-padding is folded into the single concatenate so the padded patch
    matrix is produced in one materialization (no extra jnp.pad roundtrip).
    """
    B, H, W, C = x.shape
    xp = jnp.pad(x, ((0, 0), (pad, pad), (pad, pad), (0, 0))) if pad else x
    cols = [xp[:, di:di + H, dj:dj + W, :]
            for di in range(kh) for dj in range(kw)]
    k = kh * kw * C
    if kp > k:
        cols.append(jnp.zeros((B, H, W, kp - k), x.dtype))
    patches = jnp.concatenate(cols, axis=-1).reshape(B, H * W, kp)
    if hwp > H * W:
        patches = jnp.pad(patches, ((0, 0), (0, hwp - H * W), (0, 0)))
    return patches


# ----------------------------------------------------------------------------
# fused conv(matmul) + GroupNorm Pallas kernels (one block per batch sample)
# ----------------------------------------------------------------------------
def _gn_stats(y, mask, inv_count, eps):
    """Per-(sample, group) mean / inv_std, spread back onto every channel.

    Reduce over HW first (VPU/XLU), then one tiny [1,CP]x[CP,CP] matmul with
    the block-diagonal group mask (padded rows/channels are zero and counted
    via the true inv_count, so zero padding is exact).
    """
    s = jnp.sum(y, axis=0, keepdims=True)            # [1, CP]
    sq = jnp.sum(y * y, axis=0, keepdims=True)       # [1, CP]
    gsum = jnp.dot(s, mask, preferred_element_type=jnp.float32)
    gsq = jnp.dot(sq, mask, preferred_element_type=jnp.float32)
    mean = gsum * inv_count
    var = jnp.maximum(gsq * inv_count - mean * mean, 0.0)   # clamp cancellation
    inv_std = lax.rsqrt(var + eps)
    return mean, inv_std


def _make_stage1_kernel(eps, inv_count, roll_shift):
    # columns [0,cout): gn2(conv2)   columns [cout,2cout): relu(gn1(conv1))
    def kernel(a_ref, w_ref, m_ref, g_ref, b_ref, rmask_ref, o_ref, t_ref):
        y = jnp.dot(a_ref[0], w_ref[...],
                    preferred_element_type=jnp.float32)          # [HWp, CP]
        mean, inv_std = _gn_stats(y, m_ref[...], inv_count, eps)
        out = (y - mean) * inv_std * g_ref[...] + b_ref[...]
        out = jnp.where(rmask_ref[...] > 0.0, jnp.maximum(out, 0.0), out)
        o_ref[0] = out
        # lane-0-aligned bf16 copy of the relu(gn1(conv1)) branch for stage 2
        # (roll_shift = CP - cout, i.e. a roll by -cout on the lane axis; the
        #  XLU rotate + store-time cast keeps the wrapper handoff lane-dense)
        t_ref[0] = pltpu.roll(out, roll_shift, axis=1).astype(t_ref.dtype)
    return kernel


def _make_stage2_kernel(eps, inv_count):
    def kernel(a_ref, w_ref, m_ref, g_ref, b_ref, res_ref, o_ref):
        y = jnp.dot(a_ref[0], w_ref[...],
                    preferred_element_type=jnp.float32)          # [HWp, CP]
        mean, inv_std = _gn_stats(y, m_ref[...], inv_count, eps)
        out = (y - mean) * inv_std * g_ref[...] + b_ref[...]
        o_ref[0] = jnp.maximum(out + res_ref[0], 0.0)            # residual+ReLU
    return kernel


def _row_spec(cp):
    return pl.BlockSpec((1, cp), lambda b: (0, 0))


def fused_conv_gn_stage1(patches, wcat, mask, gamma, beta, rmask,
                         *, cout, inv_count):
    B, hwp, kp = patches.shape
    cp = wcat.shape[-1]
    return pl.pallas_call(
        _make_stage1_kernel(GN_EPS, inv_count, cp - cout),
        out_shape=(jax.ShapeDtypeStruct((B, hwp, cp), jnp.float32),
                   jax.ShapeDtypeStruct((B, hwp, cp), jnp.bfloat16)),
        grid=(B,),
        in_specs=[pl.BlockSpec((1, hwp, kp), lambda b: (b, 0, 0)),
                  pl.BlockSpec((kp, cp), lambda b: (0, 0)),
                  pl.BlockSpec((cp, cp), lambda b: (0, 0)),
                  _row_spec(cp), _row_spec(cp), _row_spec(cp)],
        out_specs=(pl.BlockSpec((1, hwp, cp), lambda b: (b, 0, 0)),
                   pl.BlockSpec((1, hwp, cp), lambda b: (b, 0, 0))),
        compiler_params=pltpu.CompilerParams(
            dimension_semantics=("parallel",)),
    )(patches, wcat, mask, gamma, beta, rmask)


def fused_conv_gn_stage2(patches, residual, w12, mask, gamma, beta,
                         *, inv_count):
    B, hwp, kp = patches.shape
    cp = w12.shape[-1]
    return pl.pallas_call(
        _make_stage2_kernel(GN_EPS, inv_count),
        out_shape=jax.ShapeDtypeStruct((B, hwp, cp), jnp.float32),
        grid=(B,),
        in_specs=[pl.BlockSpec((1, hwp, kp), lambda b: (b, 0, 0)),
                  pl.BlockSpec((kp, cp), lambda b: (0, 0)),
                  pl.BlockSpec((cp, cp), lambda b: (0, 0)),
                  _row_spec(cp), _row_spec(cp),
                  pl.BlockSpec((1, hwp, cp), lambda b: (b, 0, 0))],
        out_specs=pl.BlockSpec((1, hwp, cp), lambda b: (b, 0, 0)),
        compiler_params=pltpu.CompilerParams(
            dimension_semantics=("parallel",)),
    )(patches, w12, mask, gamma, beta, residual)


# ----------------------------------------------------------------------------
# parameters: raw (for the reference) + prepped-once (for the Pallas path)
# ----------------------------------------------------------------------------
def make_params(key, in_channels, out_channels):
    k1, k2, k3, k4, k5, k6 = jax.random.split(key, 6)

    def conv_w(k, kh, kw, ci, co):
        fan_in = kh * kw * ci
        return (jax.random.normal(k, (kh, kw, ci, co), jnp.float32)
                / jnp.sqrt(fan_in))

    def gn_affine(k, c):
        kg, kb = jax.random.split(k)
        gamma = jax.random.uniform(kg, (c,), jnp.float32, 0.5, 1.5)
        beta = jax.random.normal(kb, (c,), jnp.float32) * 0.1
        return gamma, beta

    return {
        "w1": conv_w(k1, 5, 5, in_channels, out_channels),
        "w2": conv_w(k2, 5, 5, in_channels, out_channels),
        "w1_2": conv_w(k3, 3, 3, out_channels, out_channels),
        "gn1": gn_affine(k4, out_channels),
        "gn1_2": gn_affine(k5, out_channels),
        "gn2": gn_affine(k6, out_channels),
    }


def _group_mask(c_valid, cg, cp):
    idx = jnp.arange(cp)
    gid = idx // cg
    valid = idx < c_valid
    m = (gid[:, None] == gid[None, :]) & valid[:, None] & valid[None, :]
    return m.astype(jnp.float32)


def prep_params(params, out_channels):
    """Reshape / pad / cast everything the Pallas kernels need, once."""
    cout = out_channels
    cg = cout // GN_GROUPS
    cp = _round_up(2 * cout, 128)             # shared lane-dense channel width

    def pad_kn(b2d):
        K, N = b2d.shape
        return jnp.pad(b2d, ((0, _round_up(K, 128) - K),
                             (0, cp - N))).astype(jnp.bfloat16)

    def pad_row(v):
        return jnp.pad(v, (0, cp - v.shape[0])).reshape(1, cp).astype(jnp.float32)

    # stage-1 weights laid out as [conv2 | conv1] so the gn2 branch (the
    # residual) occupies columns [0, cout) — aligned with the final output.
    wcat = jnp.concatenate([params["w2"].reshape(-1, cout),
                            params["w1"].reshape(-1, cout)], axis=-1)
    return {
        "wcat": pad_kn(wcat),
        "w12": pad_kn(params["w1_2"].reshape(-1, cout)),
        "mask1": _group_mask(2 * cout, cg, cp),
        "gamma1": pad_row(jnp.concatenate([params["gn2"][0], params["gn1"][0]])),
        "beta1": pad_row(jnp.concatenate([params["gn2"][1], params["gn1"][1]])),
        "rmask1": pad_row(jnp.concatenate([jnp.zeros((cout,), jnp.float32),
                                           jnp.ones((cout,), jnp.float32)])),
        "mask2": _group_mask(cout, cg, cp),
        "gamma2": pad_row(params["gn1_2"][0]),
        "beta2": pad_row(params["gn1_2"][1]),
    }


# ----------------------------------------------------------------------------
# forward pass (matches upsampling.forward)
# ----------------------------------------------------------------------------
@functools.partial(jax.jit, static_argnums=(2, 3))
def upsampling_forward(prepped, x_nchw, upsample_size, out_channels):
    B = x_nchw.shape[0]
    Ho, Wo = upsample_size
    hw = Ho * Wo
    hwp = _round_up(hw, 8)
    cout = out_channels
    cg = cout // GN_GROUPS
    inv_count = 1.0 / float(hw * cg)

    # bilinear resize (NCHW -> NHWC), single cast to bf16 for the MXU
    x = jnp.transpose(x_nchw, (0, 2, 3, 1)).astype(jnp.float32)
    x = _bilinear_resize(x, Ho, Wo).astype(jnp.bfloat16)

    # stage 1: conv1 & conv2 share im2col patches -> one fused matmul+GN kernel
    k1p = prepped["wcat"].shape[0]
    a1 = _im2col_padded(x, 5, 5, 2, k1p, hwp)            # [B, hwp, k1p] bf16
    g1, t_bf16 = fused_conv_gn_stage1(
        a1, prepped["wcat"], prepped["mask1"], prepped["gamma1"],
        prepped["beta1"], prepped["rmask1"], cout=cout, inv_count=inv_count)
    # g1  (f32):  cols [0,cout) = gn2(conv2)   — residual branch
    # t   (bf16): lanes [0,cout) = relu(gn1(conv1)), lane-0-aligned

    # stage 2: conv1_2 on the relu branch, fused with gn1_2 + residual + ReLU
    t = t_bf16[:, :hw, :cout].reshape(B, Ho, Wo, cout)
    k2p = prepped["w12"].shape[0]
    a2 = _im2col_padded(t, 3, 3, 1, k2p, hwp)            # [B, hwp, k2p] bf16
    out = fused_conv_gn_stage2(
        a2, g1, prepped["w12"], prepped["mask2"], prepped["gamma2"],
        prepped["beta2"], inv_count=inv_count)           # [B, hwp, CP] f32

    merge = out[:, :hw, :cout].reshape(B, Ho, Wo, cout)
    return jnp.transpose(merge, (0, 3, 1, 2))            # back to NCHW


# ----------------------------------------------------------------------------
# pure-JAX f32 reference (same math as the PyTorch module)
# ----------------------------------------------------------------------------
def upsampling_reference(params, x_nchw, upsample_size):
    x = jnp.transpose(x_nchw, (0, 2, 3, 1)).astype(jnp.float32)
    x = _bilinear_resize(x, *upsample_size)

    def conv(v, w, pad):
        return lax.conv_general_dilated(
            v, w, (1, 1), ((pad, pad), (pad, pad)),
            dimension_numbers=("NHWC", "HWIO", "NHWC"))

    def gn(v, gamma, beta):
        B, H, W, C = v.shape
        g = v.reshape(B, H * W, GN_GROUPS, C // GN_GROUPS)
        mean = g.mean(axis=(1, 3), keepdims=True)
        var = g.var(axis=(1, 3), keepdims=True)
        g = (g - mean) / jnp.sqrt(var + GN_EPS)
        return g.reshape(B, H, W, C) * gamma + beta

    _x = conv(x, params["w1"], 2)
    x_branch2 = gn(conv(x, params["w2"], 2), *params["gn2"])
    _x = jnp.maximum(gn(_x, *params["gn1"]), 0.0)
    x_branch1 = gn(conv(_x, params["w1_2"], 1), *params["gn1_2"])
    merge = jnp.maximum(x_branch1 + x_branch2, 0.0)
    return jnp.transpose(merge, (0, 3, 1, 2))


# ----------------------------------------------------------------------------
# main
# ----------------------------------------------------------------------------
if __name__ == "__main__":
    IN_CH, OUT_CH = 32, 32                    # OUT_CH must be divisible by 16
    key = jax.random.PRNGKey(0)
    k_params, k_x = jax.random.split(key)

    params = make_params(k_params, IN_CH, OUT_CH)
    prepped = prep_params(params, OUT_CH)

    x = jax.random.normal(k_x, (2, IN_CH, 8, 8), jnp.float32)   # NCHW
    upsample_size = (16, 16)

    y = upsampling_forward(prepped, x, upsample_size, OUT_CH)
    jax.block_until_ready(y)

    assert y.shape == (2, OUT_CH, 16, 16), y.shape
    assert bool(jnp.isfinite(y).all())

    y_ref = upsampling_reference(params, x, upsample_size)
    max_err = float(jnp.max(jnp.abs(y - y_ref)))
    # bf16 matmul operands vs the f32 reference -> loose tolerance
    assert jnp.allclose(y, y_ref, atol=1e-1, rtol=1e-1), f"max_err={max_err}"

    print("KERNEL_OK")
</pallas_src>

<mosaic_0001>
module attributes {stable_mosaic.version = 11 : i64} {
  func.func @kernel(%arg0: i32, %arg1: memref<1x256x896xbf16, #tpu.memory_space<vmem>>, %arg2: memref<896x128xbf16, #tpu.memory_space<vmem>>, %arg3: memref<128x128xf32, #tpu.memory_space<vmem>>, %arg4: memref<1x128xf32, #tpu.memory_space<vmem>>, %arg5: memref<1x128xf32, #tpu.memory_space<vmem>>, %arg6: memref<1x128xf32, #tpu.memory_space<vmem>>, %arg7: memref<1x256x128xf32, #tpu.memory_space<vmem>>, %arg8: memref<1x256x128xbf16, #tpu.memory_space<vmem>>) attributes {dimension_semantics = [#tpu.dimension_semantics<parallel>], iteration_bounds = array<i64: 2>, scalar_prefetch = 0 : i64, scratch_operands = 0 : i64, tpu.core_type = #tpu.core_type<tc>, window_params = [{transform_indices = @transform_0, window_bounds = array<i64: 1, 256, 896>}, {pipeline_mode = #tpu.pipeline_mode<synchronous>, transform_indices = @transform_1, window_bounds = array<i64: 896, 128>}, {pipeline_mode = #tpu.pipeline_mode<synchronous>, transform_indices = @transform_2, window_bounds = array<i64: 128, 128>}, {pipeline_mode = #tpu.pipeline_mode<synchronous>, transform_indices = @transform_3, window_bounds = array<i64: 1, 128>}, {pipeline_mode = #tpu.pipeline_mode<synchronous>, transform_indices = @transform_4, window_bounds = array<i64: 1, 128>}, {pipeline_mode = #tpu.pipeline_mode<synchronous>, transform_indices = @transform_5, window_bounds = array<i64: 1, 128>}, {transform_indices = @transform_6, window_bounds = array<i64: 1, 256, 128>}, {transform_indices = @transform_7, window_bounds = array<i64: 1, 256, 128>}]} {
    %c0 = arith.constant 0 : index
    %c0_0 = arith.constant 0 : index
    %c0_1 = arith.constant 0 : index
    %0 = vector.load %arg1[%c0, %c0_0, %c0_1] : memref<1x256x896xbf16, #tpu.memory_space<vmem>>, vector<1x256x896xbf16>
    %1 = vector.shape_cast %0 : vector<1x256x896xbf16> to vector<256x896xbf16>
    %c0_2 = arith.constant 0 : index
    %c0_3 = arith.constant 0 : index
    %2 = vector.load %arg2[%c0_2, %c0_3] : memref<896x128xbf16, #tpu.memory_space<vmem>>, vector<896x128xbf16>
    %cst = arith.constant dense<0.000000e+00> : vector<256x128xf32>
    %3 = tpu.matmul %1, %2, %cst {dimension_numbers = #tpu.dot_dimension_numbers<[1], [0], [0], [1], [0, 0, 1, 1], [], []>} : vector<256x896xbf16>, vector<896x128xbf16>, vector<256x128xf32> -> vector<256x128xf32>
    %c0_4 = arith.constant 0 : index
    %c0_5 = arith.constant 0 : index
    %4 = vector.load %arg3[%c0_4, %c0_5] : memref<128x128xf32, #tpu.memory_space<vmem>>, vector<128x128xf32>
    %cst_6 = arith.constant dense<0.000000e+00> : vector<128xf32>
    %5 = vector.multi_reduction <add>, %3, %cst_6 [0] : vector<256x128xf32> to vector<128xf32>
    %6 = vector.shape_cast %5 : vector<128xf32> to vector<1x128xf32>
    %7 = arith.mulf %3, %3 : vector<256x128xf32>
    %cst_7 = arith.constant dense<0.000000e+00> : vector<128xf32>
    %8 = vector.multi_reduction <add>, %7, %cst_7 [0] : vector<256x128xf32> to vector<128xf32>
    %9 = vector.shape_cast %8 : vector<128xf32> to vector<1x128xf32>
    %cst_8 = arith.constant dense<0.000000e+00> : vector<1x128xf32>
    %10 = tpu.matmul %6, %4, %cst_8 {dimension_numbers = #tpu.dot_dimension_numbers<[1], [0], [0], [1], [0, 0, 1, 1], [], []>} : vector<1x128xf32>, vector<128x128xf32>, vector<1x128xf32> -> vector<1x128xf32>
    %cst_9 = arith.constant dense<0.000000e+00> : vector<1x128xf32>
    %11 = tpu.matmul %9, %4, %cst_9 {dimension_numbers = #tpu.dot_dimension_numbers<[1], [0], [0], [1], [0, 0, 1, 1], [], []>} : vector<1x128xf32>, vector<128x128xf32>, vector<1x128xf32> -> vector<1x128xf32>
    %cst_10 = arith.constant 0.001953125 : f32
    %12 = vector.broadcast %cst_10 : f32 to vector<1x128xf32>
    %13 = arith.mulf %10, %12 : vector<1x128xf32>
    %cst_11 = arith.constant 0.001953125 : f32
    %14 = vector.broadcast %cst_11 : f32 to vector<1x128xf32>
    %15 = arith.mulf %11, %14 : vector<1x128xf32>
    %16 = arith.mulf %13, %13 : vector<1x128xf32>
    %17 = arith.subf %15, %16 : vector<1x128xf32>
    %cst_12 = arith.constant 0.000000e+00 : f32
    %18 = vector.broadcast %cst_12 : f32 to vector<1x128xf32>
    %19 = arith.maximumf %17, %18 : vector<1x128xf32>
    %cst_13 = arith.constant 9.99999974E-6 : f32
    %20 = vector.broadcast %cst_13 : f32 to vector<1x128xf32>
    %21 = arith.addf %19, %20 : vector<1x128xf32>
    %22 = math.rsqrt %21 : vector<1x128xf32>
    %23 = vector.broadcast %13 : vector<1x128xf32> to vector<256x128xf32>
    %24 = arith.subf %3, %23 : vector<256x128xf32>
    %25 = vector.broadcast %22 : vector<1x128xf32> to vector<256x128xf32>
    %26 = arith.mulf %24, %25 : vector<256x128xf32>
    %c0_14 = arith.constant 0 : index
    %c0_15 = arith.constant 0 : index
    %27 = vector.load %arg4[%c0_14, %c0_15] : memref<1x128xf32, #tpu.memory_space<vmem>>, vector<1x128xf32>
    %28 = vector.broadcast %27 : vector<1x128xf32> to vector<256x128xf32>
    %29 = arith.mulf %26, %28 : vector<256x128xf32>
    %c0_16 = arith.constant 0 : index
    %c0_17 = arith.constant 0 : index
    %30 = vector.load %arg5[%c0_16, %c0_17] : memref<1x128xf32, #tpu.memory_space<vmem>>, vector<1x128xf32>
    %31 = vector.broadcast %30 : vector<1x128xf32> to vector<256x128xf32>
    %32 = arith.addf %29, %31 : vector<256x128xf32>
    %c0_18 = arith.constant 0 : index
    %c0_19 = arith.constant 0 : index
    %33 = vector.load %arg6[%c0_18, %c0_19] : memref<1x128xf32, #tpu.memory_space<vmem>>, vector<1x128xf32>
    %cst_20 = arith.constant 0.000000e+00 : f32
    %34 = vector.broadcast %cst_20 : f32 to vector<1x128xf32>
    %35 = arith.cmpf ogt, %33, %34 : vector<1x128xf32>
    %cst_21 = arith.constant 0.000000e+00 : f32
    %36 = vector.broadcast %cst_21 : f32 to vector<256x128xf32>
    %37 = arith.maximumf %32, %36 : vector<256x128xf32>
    %38 = vector.shape_cast %35 : vector<1x128xi1> to vector<1x128xi1>
    %39 = vector.broadcast %38 : vector<1x128xi1> to vector<256x128xi1>
    %40 = arith.select %39, %37, %32 : vector<256x128xi1>, vector<256x128xf32>
    %c0_22 = arith.constant 0 : index
    %c0_23 = arith.constant 0 : index
    %c0_24 = arith.constant 0 : index
    %41 = vector.load %arg7[%c0_22, %c0_23, %c0_24] : memref<1x256x128xf32, #tpu.memory_space<vmem>>, vector<1x256x128xf32>
    %42 = vector.shape_cast %41 : vector<1x256x128xf32> to vector<256x128xf32>
    %43 = vector.shape_cast %40 : vector<256x128xf32> to vector<1x256x128xf32>
    tpu.vector_store %arg7[%c0_22, %c0_23, %c0_24], %43 {strides = array<i32>} : memref<1x256x128xf32, #tpu.memory_space<vmem>>, vector<1x256x128xf32>,
    %c96_i32 = arith.constant 96 : i32
    %44 = tpu.dynamic_rotate %40 by %c96_i32 dim 1 : vector<256x128xf32>, i32 -> vector<256x128xf32>
    %45 = arith.truncf %44 : vector<256x128xf32> to vector<256x128xbf16>
    %c0_25 = arith.constant 0 : index
    %c0_26 = arith.constant 0 : index
    %c0_27 = arith.constant 0 : index
    %46 = vector.load %arg8[%c0_25, %c0_26, %c0_27] : memref<1x256x128xbf16, #tpu.memory_space<vmem>>, vector<1x256x128xbf16>
    %47 = vector.shape_cast %46 : vector<1x256x128xbf16> to vector<256x128xbf16>
    %48 = vector.shape_cast %45 : vector<256x128xbf16> to vector<1x256x128xbf16>
    tpu.vector_store %arg8[%c0_25, %c0_26, %c0_27], %48 {strides = array<i32>} : memref<1x256x128xbf16, #tpu.memory_space<vmem>>, vector<1x256x128xbf16>,
    return
  }
  func.func @transform_0(%arg0: i32) -> (i32, i32, i32) {
    %c0_i32 = arith.constant 0 : i32
    %c0_i32_0 = arith.constant 0 : i32
    %c0_i32_1 = arith.constant 0 : i32
    return %arg0, %c0_i32, %c0_i32_0 : i32, i32, i32
  }
  func.func @transform_1(%arg0: i32) -> (i32, i32) {
    %c0_i32 = arith.constant 0 : i32
    %c0_i32_0 = arith.constant 0 : i32
    %c0_i32_1 = arith.constant 0 : i32
    return %c0_i32, %c0_i32_0 : i32, i32
  }
  func.func @transform_2(%arg0: i32) -> (i32, i32) {
    %c0_i32 = arith.constant 0 : i32
    %c0_i32_0 = arith.constant 0 : i32
    %c0_i32_1 = arith.constant 0 : i32
    return %c0_i32, %c0_i32_0 : i32, i32
  }
  func.func @transform_3(%arg0: i32) -> (i32, i32) {
    %c0_i32 = arith.constant 0 : i32
    %c0_i32_0 = arith.constant 0 : i32
    %c0_i32_1 = arith.constant 0 : i32
    return %c0_i32, %c0_i32_0 : i32, i32
  }
  func.func @transform_4(%arg0: i32) -> (i32, i32) {
    %c0_i32 = arith.constant 0 : i32
    %c0_i32_0 = arith.constant 0 : i32
    %c0_i32_1 = arith.constant 0 : i32
    return %c0_i32, %c0_i32_0 : i32, i32
  }
  func.func @transform_5(%arg0: i32) -> (i32, i32) {
    %c0_i32 = arith.constant 0 : i32
    %c0_i32_0 = arith.constant 0 : i32
    %c0_i32_1 = arith.constant 0 : i32
    return %c0_i32, %c0_i32_0 : i32, i32
  }
  func.func @transform_6(%arg0: i32) -> (i32, i32, i32) {
    %c0_i32 = arith.constant 0 : i32
    %c0_i32_0 = arith.constant 0 : i32
    %c0_i32_1 = arith.constant 0 : i32
    return %arg0, %c0_i32, %c0_i32_0 : i32, i32, i32
  }
  func.func @transform_7(%arg0: i32) -> (i32, i32, i32) {
    %c0_i32 = arith.constant 0 : i32
    %c0_i32_0 = arith.constant 0 : i32
    %c0_i32_1 = arith.constant 0 : i32
    return %arg0, %c0_i32, %c0_i32_0 : i32, i32, i32
  }
}

module attributes {stable_mosaic.version = 11 : i64} {
  func.func @kernel(%arg0: i32, %arg1: memref<1x256x384xbf16, #tpu.memory_space<vmem>>, %arg2: memref<384x128xbf16, #tpu.memory_space<vmem>>, %arg3: memref<128x128xf32, #tpu.memory_space<vmem>>, %arg4: memref<1x128xf32, #tpu.memory_space<vmem>>, %arg5: memref<1x128xf32, #tpu.memory_space<vmem>>, %arg6: memref<1x256x128xf32, #tpu.memory_space<vmem>>, %arg7: memref<1x256x128xf32, #tpu.memory_space<vmem>>) attributes {dimension_semantics = [#tpu.dimension_semantics<parallel>], iteration_bounds = array<i64: 2>, scalar_prefetch = 0 : i64, scratch_operands = 0 : i64, tpu.core_type = #tpu.core_type<tc>, window_params = [{transform_indices = @transform_0, window_bounds = array<i64: 1, 256, 384>}, {pipeline_mode = #tpu.pipeline_mode<synchronous>, transform_indices = @transform_1, window_bounds = array<i64: 384, 128>}, {pipeline_mode = #tpu.pipeline_mode<synchronous>, transform_indices = @transform_2, window_bounds = array<i64: 128, 128>}, {pipeline_mode = #tpu.pipeline_mode<synchronous>, transform_indices = @transform_3, window_bounds = array<i64: 1, 128>}, {pipeline_mode = #tpu.pipeline_mode<synchronous>, transform_indices = @transform_4, window_bounds = array<i64: 1, 128>}, {transform_indices = @transform_5, window_bounds = array<i64: 1, 256, 128>}, {transform_indices = @transform_6, window_bounds = array<i64: 1, 256, 128>}]} {
    %c0 = arith.constant 0 : index
    %c0_0 = arith.constant 0 : index
    %c0_1 = arith.constant 0 : index
    %0 = vector.load %arg1[%c0, %c0_0, %c0_1] : memref<1x256x384xbf16, #tpu.memory_space<vmem>>, vector<1x256x384xbf16>
    %1 = vector.shape_cast %0 : vector<1x256x384xbf16> to vector<256x384xbf16>
    %c0_2 = arith.constant 0 : index
    %c0_3 = arith.constant 0 : index
    %2 = vector.load %arg2[%c0_2, %c0_3] : memref<384x128xbf16, #tpu.memory_space<vmem>>, vector<384x128xbf16>
    %cst = arith.constant dense<0.000000e+00> : vector<256x128xf32>
    %3 = tpu.matmul %1, %2, %cst {dimension_numbers = #tpu.dot_dimension_numbers<[1], [0], [0], [1], [0, 0, 1, 1], [], []>} : vector<256x384xbf16>, vector<384x128xbf16>, vector<256x128xf32> -> vector<256x128xf32>
    %c0_4 = arith.constant 0 : index
    %c0_5 = arith.constant 0 : index
    %4 = vector.load %arg3[%c0_4, %c0_5] : memref<128x128xf32, #tpu.memory_space<vmem>>, vector<128x128xf32>
    %cst_6 = arith.constant dense<0.000000e+00> : vector<128xf32>
    %5 = vector.multi_reduction <add>, %3, %cst_6 [0] : vector<256x128xf32> to vector<128xf32>
    %6 = vector.shape_cast %5 : vector<128xf32> to vector<1x128xf32>
    %7 = arith.mulf %3, %3 : vector<256x128xf32>
    %cst_7 = arith.constant dense<0.000000e+00> : vector<128xf32>
    %8 = vector.multi_reduction <add>, %7, %cst_7 [0] : vector<256x128xf32> to vector<128xf32>
    %9 = vector.shape_cast %8 : vector<128xf32> to vector<1x128xf32>
    %cst_8 = arith.constant dense<0.000000e+00> : vector<1x128xf32>
    %10 = tpu.matmul %6, %4, %cst_8 {dimension_numbers = #tpu.dot_dimension_numbers<[1], [0], [0], [1], [0, 0, 1, 1], [], []>} : vector<1x128xf32>, vector<128x128xf32>, vector<1x128xf32> -> vector<1x128xf32>
    %cst_9 = arith.constant dense<0.000000e+00> : vector<1x128xf32>
    %11 = tpu.matmul %9, %4, %cst_9 {dimension_numbers = #tpu.dot_dimension_numbers<[1], [0], [0], [1], [0, 0, 1, 1], [], []>} : vector<1x128xf32>, vector<128x128xf32>, vector<1x128xf32> -> vector<1x128xf32>
    %cst_10 = arith.constant 0.001953125 : f32
    %12 = vector.broadcast %cst_10 : f32 to vector<1x128xf32>
    %13 = arith.mulf %10, %12 : vector<1x128xf32>
    %cst_11 = arith.constant 0.001953125 : f32
    %14 = vector.broadcast %cst_11 : f32 to vector<1x128xf32>
    %15 = arith.mulf %11, %14 : vector<1x128xf32>
    %16 = arith.mulf %13, %13 : vector<1x128xf32>
    %17 = arith.subf %15, %16 : vector<1x128xf32>
    %cst_12 = arith.constant 0.000000e+00 : f32
    %18 = vector.broadcast %cst_12 : f32 to vector<1x128xf32>
    %19 = arith.maximumf %17, %18 : vector<1x128xf32>
    %cst_13 = arith.constant 9.99999974E-6 : f32
    %20 = vector.broadcast %cst_13 : f32 to vector<1x128xf32>
    %21 = arith.addf %19, %20 : vector<1x128xf32>
    %22 = math.rsqrt %21 : vector<1x128xf32>
    %23 = vector.broadcast %13 : vector<1x128xf32> to vector<256x128xf32>
    %24 = arith.subf %3, %23 : vector<256x128xf32>
    %25 = vector.broadcast %22 : vector<1x128xf32> to vector<256x128xf32>
    %26 = arith.mulf %24, %25 : vector<256x128xf32>
    %c0_14 = arith.constant 0 : index
    %c0_15 = arith.constant 0 : index
    %27 = vector.load %arg4[%c0_14, %c0_15] : memref<1x128xf32, #tpu.memory_space<vmem>>, vector<1x128xf32>
    %28 = vector.broadcast %27 : vector<1x128xf32> to vector<256x128xf32>
    %29 = arith.mulf %26, %28 : vector<256x128xf32>
    %c0_16 = arith.constant 0 : index
    %c0_17 = arith.constant 0 : index
    %30 = vector.load %arg5[%c0_16, %c0_17] : memref<1x128xf32, #tpu.memory_space<vmem>>, vector<1x128xf32>
    %31 = vector.broadcast %30 : vector<1x128xf32> to vector<256x128xf32>
    %32 = arith.addf %29, %31 : vector<256x128xf32>
    %c0_18 = arith.constant 0 : index
    %c0_19 = arith.constant 0 : index
    %c0_20 = arith.constant 0 : index
    %33 = vector.load %arg6[%c0_18, %c0_19, %c0_20] : memref<1x256x128xf32, #tpu.memory_space<vmem>>, vector<1x256x128xf32>
    %34 = vector.shape_cast %33 : vector<1x256x128xf32> to vector<256x128xf32>
    %35 = arith.addf %32, %34 : vector<256x128xf32>
    %cst_21 = arith.constant 0.000000e+00 : f32
    %36 = vector.broadcast %cst_21 : f32 to vector<256x128xf32>
    %37 = arith.maximumf %35, %36 : vector<256x128xf32>
    %c0_22 = arith.constant 0 : index
    %c0_23 = arith.constant 0 : index
    %c0_24 = arith.constant 0 : index
    %38 = vector.load %arg7[%c0_22, %c0_23, %c0_24] : memref<1x256x128xf32, #tpu.memory_space<vmem>>, vector<1x256x128xf32>
    %39 = vector.shape_cast %38 : vector<1x256x128xf32> to vector<256x128xf32>
    %40 = vector.shape_cast %37 : vector<256x128xf32> to vector<1x256x128xf32>
    tpu.vector_store %arg7[%c0_22, %c0_23, %c0_24], %40 {strides = array<i32>} : memref<1x256x128xf32, #tpu.memory_space<vmem>>, vector<1x256x128xf32>,
    return
  }
  func.func @transform_0(%arg0: i32) -> (i32, i32, i32) {
    %c0_i32 = arith.constant 0 : i32
    %c0_i32_0 = arith.constant 0 : i32
    %c0_i32_1 = arith.constant 0 : i32
    return %arg0, %c0_i32, %c0_i32_0 : i32, i32, i32
  }
  func.func @transform_1(%arg0: i32) -> (i32, i32) {
    %c0_i32 = arith.constant 0 : i32
    %c0_i32_0 = arith.constant 0 : i32
    %c0_i32_1 = arith.constant 0 : i32
    return %c0_i32, %c0_i32_0 : i32, i32
  }
  func.func @transform_2(%arg0: i32) -> (i32, i32) {
    %c0_i32 = arith.constant 0 : i32
    %c0_i32_0 = arith.constant 0 : i32
    %c0_i32_1 = arith.constant 0 : i32
    return %c0_i32, %c0_i32_0 : i32, i32
  }
  func.func @transform_3(%arg0: i32) -> (i32, i32) {
    %c0_i32 = arith.constant 0 : i32
    %c0_i32_0 = arith.constant 0 : i32
    %c0_i32_1 = arith.constant 0 : i32
    return %c0_i32, %c0_i32_0 : i32, i32
  }
  func.func @transform_4(%arg0: i32) -> (i32, i32) {
    %c0_i32 = arith.constant 0 : i32
    %c0_i32_0 = arith.constant 0 : i32
    %c0_i32_1 = arith.constant 0 : i32
    return %c0_i32, %c0_i32_0 : i32, i32
  }
  func.func @transform_5(%arg0: i32) -> (i32, i32, i32) {
    %c0_i32 = arith.constant 0 : i32
    %c0_i32_0 = arith.constant 0 : i32
    %c0_i32_1 = arith.constant 0 : i32
    return %arg0, %c0_i32, %c0_i32_0 : i32, i32, i32
  }
  func.func @transform_6(%arg0: i32) -> (i32, i32, i32) {
    %c0_i32 = arith.constant 0 : i32
    %c0_i32_0 = arith.constant 0 : i32
    %c0_i32_1 = arith.constant 0 : i32
    return %arg0, %c0_i32, %c0_i32_0 : i32, i32, i32
  }
}

</mosaic_0001>

<bundles_post_ra>
// kernel: upsampling_forward.2
= control target key start
LH: loop header
LB: loop body
LE: loop exit
PB: predicated region body
PF: predicated region fallthrough
CT: control target
= control target key end

     0   :  { %s4192_s24 = smov 0   ;;  %s5275_s0 = inlined_call_operand.vmem [shape: bf16[2,256,896], index: 0, kind: input, shape index: {}]   ;;  %s5276_s1 = inlined_call_operand.vmem [shape: bf16[896,128], index: 1, kind: input, shape index: {}]   ;;  %s5277_s2 = inlined_call_operand.vmem [shape: f32[128,128], index: 2, kind: input, shape index: {}]   ;;  %s5278_s3 = inlined_call_operand.vmem [shape: f32[1,128], index: 3, kind: input, shape index: {}]   ;;  %s5279_s4 = inlined_call_operand.vmem [shape: f32[1,128], index: 4, kind: input, shape index: {}]   ;;  %s5280_s5 = inlined_call_operand.vmem [shape: f32[1,128], index: 5, kind: input, shape index: {}]   ;;  %s5281_s6 = inlined_call_operand.vmem [shape: f32[2,256,128], index: 6, kind: output, shape index: {0}]   ;;  %s5282_s7 = inlined_call_operand.vmem [shape: bf16[2,256,128], index: 7, kind: output, shape index: {1}]  }
   0x1 LB: > { %s2924_s25 = sadd.s32 4294967295, %s4145_s24   ;;  %p2928_p0 = scmp.ge.s32.totalorder %s4145_s24, 1  ;;  %s4145_s24 = sphi %s4192_s24, %s18_s24  }
   0x2   : > { %p240_p1 = scmp.lt.s32.totalorder %s4145_s24, 3 }
   0x4   : > { %p241_p2 = pnand %p2928_p0, %p240_p1 }
   0x6   : > { %244 = sbr.rel (%p241_p2) target bundleno = 967 (0x3c7), region = 44 }
   0xd   : > { %v3921_v0 = vld [vmem:[%s5276_s1 + $0x40] sm:$0xff]   ;;  %v3925_v4 = vld [vmem:[%s5276_s1 + $0x48] sm:$0xff]   ;;  %v3929_v8 = vld [vmem:[%s5276_s1 + $0x50] sm:$0xff]   ;;  %p277_p3 = scmp.lt.s32.totalorder %s2924_s25, 1  ;;  %vm4148_vm0 = vmmov 0  }
   0xe   : > { %v3922_v1 = vld [vmem:[%s5276_s1 + $0xc0] sm:$0xff]   ;;  %3267 = vmatprep.subr.bf16.mxu0 %v3921_v0  ;;  %v3926_v5 = vld [vmem:[%s5276_s1 + $0xc8] sm:$0xff]   ;;  %v3930_v9 = vld [vmem:[%s5276_s1 + $0xd0] sm:$0xff]  }
   0xf   : > { %v3923_v2 = vld [vmem:[%s5276_s1] sm:$0xff]   ;;  %3379 = vmatprep.subr.bf16.mxu1 %v3922_v1  ;;  %v3927_v6 = vld [vmem:[%s5276_s1 + $0x8] sm:$0xff]   ;;  %v3931_v10 = vld [vmem:[%s5276_s1 + $0x10] sm:$0xff]   ;;  %s5321_s25 = smov (!%p277_p3, %s2924_s25), 1 }
  0x10   : > { %v3924_v3 = vld [vmem:[%s5276_s1 + $0x80] sm:$0xff]   ;;  %3268 = vmatpush3.bf16.msra.mxu0 %v3923_v2  ;;  %v3928_v7 = vld [vmem:[%s5276_s1 + $0x88] sm:$0xff]   ;;  %v3932_v11 = vld [vmem:[%s5276_s1 + $0x90] sm:$0xff]   ;;  %s3827_s13 = smul.u32 896, %s5321_s25  ;;  %s3138_s12 = sshll.u32 %s5321_s25, 8 }
  0x11   : > { %3380 = vmatpush3.bf16.msra.mxu1 %v3924_v3  ;;  %3269 = vmatprep.subr.bf16.mxu0 %v3925_v4  ;;  %v3933_v12 = vld [vmem:[%s5276_s1 + $0x58] sm:$0xff]   ;;  %v3937_v16 = vld [vmem:[%s5276_s1 + $0x60] sm:$0xff]   ;;  %v3941_v20 = vld [vmem:[%s5276_s1 + $0x68] sm:$0xff]   ;;  %s5076_s15 = scalar_lea.vmem %s5281_s6, %s3138_s12  ;;  %s3139_s16 = sshll.u32 %s5321_s25, 7 }
  0x12   : > { %3381 = vmatprep.subr.bf16.mxu1 %v3926_v5  ;;  %v3934_v13 = vld [vmem:[%s5276_s1 + $0xd8] sm:$0xff]   ;;  %v3938_v17 = vld [vmem:[%s5276_s1 + $0xe0] sm:$0xff]   ;;  %v3942_v21 = vld [vmem:[%s5276_s1 + $0xe8] sm:$0xff]   ;;  %s4300_s26 = scalar_lea.vmem %s5275_s0, %s3827_s13  ;;  %s5254_s19 = scalar_lea.vmem %s5282_s7, %s3139_s16 }
  0x13   : > { %v3935_v14 = vld [vmem:[%s5276_s1 + $0x18] sm:$0xff]   ;;  %v3939_v18 = vld [vmem:[%s5276_s1 + $0x20] sm:$0xff]   ;;  %v3943_v22 = vld [vmem:[%s5276_s1 + $0x28] sm:$0xff]  }
  0x14   : > { %3270 = vmatpush3.bf16.msra.mxu0 %v3927_v6  ;;  %v3936_v15 = vld [vmem:[%s5276_s1 + $0x98] sm:$0xff]   ;;  %v3940_v19 = vld [vmem:[%s5276_s1 + $0xa0] sm:$0xff]   ;;  %v3944_v23 = vld [vmem:[%s5276_s1 + $0xa8] sm:$0xff]  }
  0x15   : > { %3382 = vmatpush3.bf16.msra.mxu1 %v3928_v7  ;;  %3271 = vmatprep.subr.bf16.mxu0 %v3929_v8  ;;  %v3945_v24 = vld [vmem:[%s5276_s1 + $0x70] sm:$0xff]   ;;  %v3949_v28 = vld [vmem:[%s5276_s1 + $0x78] sm:$0xff]   ;;  %v3955_v33 = vld [vmem:[%s4300_s26 + $0x4] ss:$28 sps:$4 sm:$0xff]  }
  0x16   : > { %3383 = vmatprep.subr.bf16.mxu1 %v3930_v9  ;;  %v3946_v25 = vld [vmem:[%s5276_s1 + $0xf0] sm:$0xff]   ;;  %v3950_v29 = vld [vmem:[%s5276_s1 + $0xf8] sm:$0xff]   ;;  %v3956_v34 = vld [vmem:[%s4300_s26 + $0x8] ss:$28 sps:$4 sm:$0xff]   ;;  %1477 = vmatprep.mubr.bf16.mxu0 %v3955_v33 }
  0x17   : > { %v3947_v26 = vld [vmem:[%s5276_s1 + $0x30] sm:$0xff]   ;;  %v3951_v30 = vld [vmem:[%s5276_s1 + $0x38] sm:$0xff]   ;;  %v3958_v35 = vld [vmem:[%s4300_s26 + $0xc] ss:$28 sps:$4 sm:$0xff]  }
  0x18   : > { %3272 = vmatpush3.bf16.msra.mxu0 %v3931_v10  ;;  %v3948_v27 = vld [vmem:[%s5276_s1 + $0xb0] sm:$0xff]   ;;  %v3952_v31 = vld [vmem:[%s5276_s1 + $0xb8] sm:$0xff]   ;;  %v3959_v36 = vld [vmem:[%s5276_s1 + $0x140] sm:$0xff]   ;;  %1638 = vmatprep.mubr.bf16.mxu1 %v3958_v35 }
  0x19   : > { %3384 = vmatpush3.bf16.msra.mxu1 %v3932_v11  ;;  %3273 = vmatprep.subr.bf16.mxu0 %v3933_v12  ;;  %v3953_v32 = vld [vmem:[%s4300_s26] ss:$28 sps:$4 sm:$0xff]   ;;  %v3965_v40 = vld [vmem:[%s4300_s26 + $0x38] ss:$28 sps:$4 sm:$0xff]   ;;  %v3973_v44 = vld [vmem:[%s5276_s1 + $0x148] sm:$0xff]  }
  0x1a   : > { %3385 = vmatprep.subr.bf16.mxu1 %v3934_v13  ;;  %v3960_v37 = vld [vmem:[%s5276_s1 + $0x100] sm:$0xff]   ;;  %v3961_v38 = vld [vmem:[%s4300_s26 + $0x3c] ss:$28 sps:$4 sm:$0xff]   ;;  %v3967_v42 = vld [vmem:[%s4300_s26 + $0x74] ss:$28 sps:$4 sm:$0xff]  }
  0x1b   : > { %v3963_v39 = vld [vmem:[%s4300_s26 + $0x44] ss:$28 sps:$4 sm:$0xff]   ;;  %v3969_v43 = vld [vmem:[%s4300_s26 + $0x7c] ss:$28 sps:$4 sm:$0xff]   ;;  %v3974_v45 = vld [vmem:[%s5276_s1 + $0x108] sm:$0xff]  }
  0x1c   : > { %3274 = vmatpush3.bf16.msra.mxu0 %v3935_v14  ;;  %v3966_v41 = vld [vmem:[%s4300_s26 + $0x40] ss:$28 sps:$4 sm:$0xff]   ;;  %v3971_v46 = vld [vmem:[%s4300_s26 + $0x70] ss:$28 sps:$4 sm:$0xff]   ;;  %v3972_v47 = vld [vmem:[%s4300_s26 + $0x78] ss:$28 sps:$4 sm:$0xff]  }
  0x1d   : > { %3386 = vmatpush3.bf16.msra.mxu1 %v3936_v15  ;;  %3275 = vmatprep.subr.bf16.mxu0 %v3937_v16  ;;  %v3975_v48 = vld [vmem:[%s4300_s26 + $0xac] ss:$28 sps:$4 sm:$0xff]   ;;  %v3977_v49 = vld [vmem:[%s4300_s26 + $0xb4] ss:$28 sps:$4 sm:$0xff]   ;;  %v3981_v54 = vld [vmem:[%s4300_s26 + $0xe4] ss:$28 sps:$4 sm:$0xff]  }
  0x1e   : > { %3387 = vmatprep.subr.bf16.mxu1 %v3938_v17  ;;  %v3987_v50 = vld [vmem:[%s5276_s1 + $0x150] sm:$0xff]   ;;  %v3979_v52 = vld [vmem:[%s4300_s26 + $0xa8] ss:$28 sps:$4 sm:$0xff]   ;;  %v4001_v56 = vld [vmem:[%s5276_s1 + $0x158] sm:$0xff]  }
  0x1f   : > { %v3988_v51 = vld [vmem:[%s5276_s1 + $0x110] sm:$0xff]   ;;  %v3983_v55 = vld [vmem:[%s4300_s26 + $0xec] ss:$28 sps:$4 sm:$0xff]   ;;  %v4002_v57 = vld [vmem:[%s5276_s1 + $0x118] sm:$0xff]  }
  0x20   : > { %3276 = vmatpush3.bf16.msra.mxu0 %v3939_v18  ;;  %v3980_v53 = vld [vmem:[%s4300_s26 + $0xb0] ss:$28 sps:$4 sm:$0xff]   ;;  %v3985_v58 = vld [vmem:[%s4300_s26 + $0xe0] ss:$28 sps:$4 sm:$0xff]   ;;  %v3986_v59 = vld [vmem:[%s4300_s26 + $0xe8] ss:$28 sps:$4 sm:$0xff]  }
  0x21   : > { %3388 = vmatpush3.bf16.msra.mxu1 %v3940_v19  ;;  %3277 = vmatprep.subr.bf16.mxu0 %v3941_v20  ;;  %v3989_v60 = vld [vmem:[%s4300_s26 + $0x11c] ss:$28 sps:$4 sm:$0xff]   ;;  %v3991_v61 = vld [vmem:[%s4300_s26 + $0x124] ss:$28 sps:$4 sm:$0xff]   ;;  %v3995_v3 = vld [vmem:[%s4300_s26 + $0x154] ss:$28 sps:$4 sm:$0xff]  }
  0x22   : > { %3389 = vmatprep.subr.bf16.mxu1 %v3942_v21  ;;  %v4015_v62 = vld [vmem:[%s5276_s1 + $0x160] sm:$0xff]   ;;  %v3993_v1 = vld [vmem:[%s4300_s26 + $0x118] ss:$28 sps:$4 sm:$0xff]   ;;  %v4030_v5 = vld [vmem:[%s5276_s1 + $0x168] sm:$0xff]  }
  0x23   : > { %v4016_v63 = vld [vmem:[%s5276_s1 + $0x180] sm:$0xff]   ;;  %v3997_v4 = vld [vmem:[%s4300_s26 + $0x15c] ss:$28 sps:$4 sm:$0xff]   ;;  %v4031_v6 = vld [vmem:[%s5276_s1 + $0x188] sm:$0xff]  }
  0x24   : > { %3278 = vmatpush3.bf16.msra.mxu0 %v3943_v22  ;;  %v4017_v0 = vld [vmem:[%s5276_s1 + $0x120] sm:$0xff]   ;;  %v4032_v7 = vld [vmem:[%s5276_s1 + $0x128] sm:$0xff]   ;;  %v4000_v9 = vld [vmem:[%s4300_s26 + $0x158] ss:$28 sps:$4 sm:$0xff]  }
  0x25   : > { %3390 = vmatpush3.bf16.msra.mxu1 %v3944_v23  ;;  %3279 = vmatprep.subr.bf16.mxu0 %v3945_v24  ;;  %v3994_v2 = vld [vmem:[%s4300_s26 + $0x120] ss:$28 sps:$4 sm:$0xff]   ;;  %v3999_v8 = vld [vmem:[%s4300_s26 + $0x150] ss:$28 sps:$4 sm:$0xff]   ;;  %v4007_v15 = vld [vmem:[%s4300_s26 + $0x188] ss:$28 sps:$4 sm:$0xff]  }
  0x26   : > { %3391 = vmatprep.subr.bf16.mxu1 %v3946_v25  ;;  %v4003_v10 = vld [vmem:[%s4300_s26 + $0x18c] ss:$28 sps:$4 sm:$0xff]   ;;  %v4005_v11 = vld [vmem:[%s4300_s26 + $0x194] ss:$28 sps:$4 sm:$0xff]   ;;  %v4009_v17 = vld [vmem:[%s4300_s26 + $0x1c4] ss:$28 sps:$4 sm:$0xff]  }
  0x27   : > { %v4045_v12 = vld [vmem:[%s5276_s1 + $0x170] sm:$0xff]   ;;  %v4011_v18 = vld [vmem:[%s4300_s26 + $0x1cc] ss:$28 sps:$4 sm:$0xff]   ;;  %v4060_v19 = vld [vmem:[%s5276_s1 + $0x178] sm:$0xff]  }
  0x28   : > { %3280 = vmatpush3.bf16.msra.mxu0 %v3947_v26  ;;  %v4046_v13 = vld [vmem:[%s5276_s1 + $0x190] sm:$0xff]   ;;  %v4061_v20 = vld [vmem:[%s5276_s1 + $0x198] sm:$0xff]   ;;  %v4063_v22 = vld [vmem:[%s5276_s1 + $0x1a0] sm:$0xff]  }
  0x29   : > { %3392 = vmatpush3.bf16.msra.mxu1 %v3948_v27  ;;  %3281 = vmatprep.subr.bf16.mxu0 %v3949_v28  ;;  %v4047_v14 = vld [vmem:[%s5276_s1 + $0x130] sm:$0xff]   ;;  %v4062_v21 = vld [vmem:[%s5276_s1 + $0x138] sm:$0xff]   ;;  %v4014_v24 = vld [vmem:[%s4300_s26 + $0x1c8] ss:$28 sps:$4 sm:$0xff]  }
  0x2a   : > { %3393 = vmatprep.subr.bf16.mxu1 %v3950_v29  ;;  %v4008_v16 = vld [vmem:[%s4300_s26 + $0x190] ss:$28 sps:$4 sm:$0xff]   ;;  %v4013_v23 = vld [vmem:[%s4300_s26 + $0x1c0] ss:$28 sps:$4 sm:$0xff]   ;;  %v4022_v29 = vld [vmem:[%s4300_s26 + $0x1f8] ss:$28 sps:$4 sm:$0xff]  }
  0x2b   : > { %v4070_v25 = vld [vmem:[%s5276_s1 + $0x1a8] sm:$0xff]   ;;  %v4018_v26 = vld [vmem:[%s4300_s26 + $0x1fc] ss:$28 sps:$4 sm:$0xff]   ;;  %v4020_v27 = vld [vmem:[%s4300_s26 + $0x204] ss:$28 sps:$4 sm:$0xff]  }
  0x2c   : > { %3282 = vmatpush3.bf16.msra.mxu0 %v3951_v30  ;;  %v4071_v28 = vld [vmem:[%s5276_s1 + $0x1b0] sm:$0xff]   ;;  %v4023_v30 = vld [vmem:[%s4300_s26 + $0x200] ss:$28 sps:$4 sm:$0xff]  }
  0x2d   : > { %3394 = vmatpush3.bf16.msra.mxu1 %v3952_v31  ;;  %3491 = vmatprep.subr.bf16.mxu0 %v3959_v36  ;;  %v4075_v31 = vld [vmem:[%s5276_s1 + $0x1b8] sm:$0xff]   ;;  %v4033_v36 = vld [vmem:[%s4300_s26 + $0x26c] ss:$28 sps:$4 sm:$0xff]  }
  0x2e   : > { %3661 = vmatprep.subr.bf16.mxu1 %v4016_v63  ;;  %v4026_v33 = vld [vmem:[%s4300_s26 + $0x23c] ss:$28 sps:$4 sm:$0xff]  }
  0x2f   : > { %1478 = vmatmul.mubr.bf16.vlgmr.msra.gmra.mrb[0].mxu0 %v3953_v32  ;;  %v4024_v32 = vld [vmem:[%s4300_s26 + $0x234] ss:$28 sps:$4 sm:$0xff]  }
  0x30   : > { %1639 = vmatmul.mubr.bf16.vlgmr.msra.gmra.mrb[0].mxu1 %v3956_v34  ;;  %3492 = vmatpush3.bf16.msra.mxu0 %v3960_v37  ;;  %v4028_v34 = vld [vmem:[%s4300_s26 + $0x230] ss:$28 sps:$4 sm:$0xff]   ;;  %v4029_v35 = vld [vmem:[%s4300_s26 + $0x238] ss:$28 sps:$4 sm:$0xff]  }
  0x31   : > { %1485 = vmatprep.mubr.bf16.mxu0 %v3961_v38  ;;  %1646 = vmatprep.mubr.bf16.mxu1 %v3963_v39  ;;  %v4035_v37 = vld [vmem:[%s4300_s26 + $0x274] ss:$28 sps:$4 sm:$0xff]   ;;  %v4037_v38 = vld [vmem:[%s4300_s26 + $0x268] ss:$28 sps:$4 sm:$0xff]  }
  0x32   : > { %3493 = vmatprep.subr.bf16.mxu0 %v3973_v44  ;;  %3662 = vmatpush3.bf16.msra.mxu1 %v4016_v63  ;;  %v4038_v39 = vld [vmem:[%s4300_s26 + $0x270] ss:$28 sps:$4 sm:$0xff]   ;;  %v4048_v44 = vld [vmem:[%s4300_s26 + $0x2dc] ss:$28 sps:$4 sm:$0xff]   ;;  %v4081_v63 = vld [vmem:[%s4300_s26 + $0x84] ss:$28 sps:$4 sm:$0xff]  }
  0x33   : > { %3663 = vmatprep.subr.bf16.mxu1 %v4031_v6 }
  0x34   : > { %3494 = vmatpush3.bf16.msra.mxu0 %v3974_v45  ;;  %v4050_v45 = vld [vmem:[%s4300_s26 + $0x2e4] ss:$28 sps:$4 sm:$0xff]  }
  0x35   : > { %3495 = vmatprep.subr.bf16.mxu0 %v3987_v50  ;;  %v4058_v50 = vld [vmem:[%s4300_s26 + $0x310] ss:$28 sps:$4 sm:$0xff]  }
  0x36   : > { %3664 = vmatpush3.bf16.msra.mxu1 %v4031_v6  ;;  %v4088_v6 = vld [vmem:[%s4300_s26 + $0xb8] ss:$28 sps:$4 sm:$0xff]  }
  0x37   : > { %1486 = vmatmul.mubr.bf16.gmra.mrb[4].mxu0 %v3965_v40  ;;  %3665 = vmatprep.subr.bf16.mxu1 %v4046_v13  ;;  %v4039_v40 = vld [vmem:[%s4300_s26 + $0x2a4] ss:$28 sps:$4 sm:$0xff]  }
  0x38   : > { %1647 = vmatmul.mubr.bf16.gmra.mrb[4].mxu1 %v3966_v41  ;;  %1493 = vmatprep.mubr.bf16.mxu0 %v3967_v42  ;;  %v4041_v41 = vld [vmem:[%s4300_s26 + $0x2ac] ss:$28 sps:$4 sm:$0xff]   ;;  %v4043_v42 = vld [vmem:[%s4300_s26 + $0x2a0] ss:$28 sps:$4 sm:$0xff]  }
  0x39   : > { %1654 = vmatprep.mubr.bf16.mxu1 %v3969_v43  ;;  %3496 = vmatpush3.bf16.msra.mxu0 %v3988_v51  ;;  %v4044_v43 = vld [vmem:[%s4300_s26 + $0x2a8] ss:$28 sps:$4 sm:$0xff]   ;;  %v4059_v51 = vld [vmem:[%s4300_s26 + $0x318] ss:$28 sps:$4 sm:$0xff]  }
  0x3a   : > { %3497 = vmatprep.subr.bf16.mxu0 %v4001_v56  ;;  %3666 = vmatpush3.bf16.msra.mxu1 %v4046_v13  ;;  %v4074_v56 = vld [vmem:[%s4300_s26 + $0x14] ss:$28 sps:$4 sm:$0xff]   ;;  %v4116_v13 = vld [vmem:[%s4300_s26 + $0x248] ss:$28 sps:$4 sm:$0xff]  }
  0x3b   : > { %3667 = vmatprep.subr.bf16.mxu1 %v4061_v20 }
  0x3d   : > { %3498 = vmatpush3.bf16.msra.mxu0 %v4002_v57  ;;  %v4076_v57 = vld [vmem:[%s4300_s26 + $0x18] ss:$28 sps:$4 sm:$0xff]  }
  0x3e   : > { %3499 = vmatprep.subr.bf16.mxu0 %v4015_v62  ;;  %3668 = vmatpush3.bf16.msra.mxu1 %v4061_v20  ;;  %v4080_v62 = vld [vmem:[%s4300_s26 + $0x48] ss:$28 sps:$4 sm:$0xff]   ;;  %v4125_v20 = vld [vmem:[%s4300_s26 + $0x2f0] ss:$28 sps:$4 sm:$0xff]  }
  0x3f   : > { %1494 = vmatmul.mubr.bf16.gmra.mrb[8].mxu0 %v3971_v46  ;;  %3669 = vmatprep.subr.bf16.mxu1 %v4063_v22  ;;  %v4052_v46 = vld [vmem:[%s4300_s26 + $0x2d8] ss:$28 sps:$4 sm:$0xff]  }
  0x40   : > { %1655 = vmatmul.mubr.bf16.gmra.mrb[8].mxu1 %v3972_v47  ;;  %1501 = vmatprep.mubr.bf16.mxu0 %v3975_v48  ;;  %v4053_v47 = vld [vmem:[%s4300_s26 + $0x2e0] ss:$28 sps:$4 sm:$0xff]   ;;  %v4054_v48 = vld [vmem:[%s4300_s26 + $0x314] ss:$28 sps:$4 sm:$0xff]  }
  0x41   : > { %1662 = vmatprep.mubr.bf16.mxu1 %v3977_v49  ;;  %3500 = vmatpush3.bf16.msra.mxu0 %v4017_v0  ;;  %v4056_v49 = vld [vmem:[%s4300_s26 + $0x31c] ss:$28 sps:$4 sm:$0xff]  }
  0x42   : > { %3501 = vmatprep.subr.bf16.mxu0 %v4030_v5  ;;  %3670 = vmatpush3.bf16.msra.mxu1 %v4063_v22  ;;  %v4085_v0 = vld [vmem:[%s4300_s26 + $0xc0] ss:$28 sps:$4 sm:$0xff]   ;;  %v4100_v5 = vld [vmem:[%s4300_s26 + $0x168] ss:$28 sps:$4 sm:$0xff]   ;;  %v4104_v22 = vld [vmem:[%s4300_s26 + $0x198] ss:$28 sps:$4 sm:$0xff]  }
  0x43   : > { %3671 = vmatprep.subr.bf16.mxu1 %v4070_v25 }
  0x45   : > { %3502 = vmatpush3.bf16.msra.mxu0 %v4032_v7  ;;  %v4089_v7 = vld [vmem:[%s4300_s26 + $0xf4] ss:$28 sps:$4 sm:$0xff]  }
  0x46   : > { %3503 = vmatprep.subr.bf16.mxu0 %v4045_v12  ;;  %3672 = vmatpush3.bf16.msra.mxu1 %v4070_v25  ;;  %v4109_v12 = vld [vmem:[%s4300_s26 + $0x210] ss:$28 sps:$4 sm:$0xff]  }
  0x47   : > { %1502 = vmatmul.mubr.bf16.gmra.mrb[12].mxu0 %v3979_v52  ;;  %3673 = vmatprep.subr.bf16.mxu1 %v4071_v28  ;;  %v4064_v52 = vld [vmem:[%s4300_s26 + $0x34c] ss:$28 sps:$4 sm:$0xff]  }
  0x48   : > { %1663 = vmatmul.mubr.bf16.gmra.mrb[12].mxu1 %v3980_v53  ;;  %1509 = vmatprep.mubr.bf16.mxu0 %v3981_v54  ;;  %v4066_v53 = vld [vmem:[%s4300_s26 + $0x354] ss:$28 sps:$4 sm:$0xff]   ;;  %v4068_v54 = vld [vmem:[%s4300_s26 + $0x348] ss:$28 sps:$4 sm:$0xff]  }
  0x49   : > { %1670 = vmatprep.mubr.bf16.mxu1 %v3983_v55  ;;  %3504 = vmatpush3.bf16.msra.mxu0 %v4047_v14  ;;  %v4069_v55 = vld [vmem:[%s4300_s26 + $0x350] ss:$28 sps:$4 sm:$0xff]   ;;  %v4096_v14 = vld [vmem:[%s4300_s26 + $0x128] ss:$28 sps:$4 sm:$0xff]  }
  0x4a   : > { %3505 = vmatprep.subr.bf16.mxu0 %v4060_v19  ;;  %3674 = vmatpush3.bf16.msra.mxu1 %v4071_v28  ;;  %v4102_v19 = vld [vmem:[%s4300_s26 + $0x19c] ss:$28 sps:$4 sm:$0xff]   ;;  %v4107_v25 = vld [vmem:[%s4300_s26 + $0x1d0] ss:$28 sps:$4 sm:$0xff]   ;;  %v4113_v28 = vld [vmem:[%s4300_s26 + $0x244] ss:$28 sps:$4 sm:$0xff]  }
  0x4b   : > { %3675 = vmatprep.subr.bf16.mxu1 %v4075_v31 }
  0x4d   : > { %3506 = vmatpush3.bf16.msra.mxu0 %v4062_v21  ;;  %v4132_v21 = vld [vmem:[%s4300_s26 + $0x328] ss:$28 sps:$4 sm:$0xff]  }
  0x4e   : > { %3676 = vmatpush3.bf16.msra.mxu1 %v4075_v31 }
  0x4f   : > { %1510 = vmatmul.mubr.bf16.gmra.mrb[16].mxu0 %v3985_v58  ;;  %v4072_v58 = vld [vmem:[%s4300_s26 + $0x10] ss:$28 sps:$4 sm:$0xff]  }
  0x50   : > { %1671 = vmatmul.mubr.bf16.gmra.mrb[16].mxu1 %v3986_v59  ;;  %1517 = vmatprep.mubr.bf16.mxu0 %v3989_v60  ;;  %v4077_v59 = vld [vmem:[%s4300_s26 + $0x50] ss:$28 sps:$4 sm:$0xff]  }
  0x51   : > { %1678 = vmatprep.mubr.bf16.mxu1 %v3991_v61  ;;  %v4078_v60 = vld [vmem:[%s4300_s26 + $0x4c] ss:$28 sps:$4 sm:$0xff]  }
  0x52   : > { %v4084_v61 = vld [vmem:[%s4300_s26 + $0x88] ss:$28 sps:$4 sm:$0xff]  }
  0x57   : > { %1518 = vmatmul.mubr.bf16.gmra.mrb[20].mxu0 %v3993_v1  ;;  %v4092_v1 = vld [vmem:[%s4300_s26 + $0xf8] ss:$28 sps:$4 sm:$0xff]  }
  0x58   : > { %1679 = vmatmul.mubr.bf16.gmra.mrb[20].mxu1 %v3994_v2  ;;  %1525 = vmatprep.mubr.bf16.mxu0 %v3995_v3  ;;  %v4083_v2 = vld [vmem:[%s4300_s26 + $0x80] ss:$28 sps:$4 sm:$0xff]  }
  0x59   : > { %1686 = vmatprep.mubr.bf16.mxu1 %v3997_v4  ;;  %v4086_v3 = vld [vmem:[%s4300_s26 + $0xbc] ss:$28 sps:$4 sm:$0xff]   ;;  %v4093_v4 = vld [vmem:[%s4300_s26 + $0x130] ss:$28 sps:$4 sm:$0xff]  }
  0x5f   : > { %1526 = vmatmul.mubr.bf16.gmra.mrb[24].mxu0 %v3999_v8  ;;  %v4101_v8 = vld [vmem:[%s4300_s26 + $0x1a0] ss:$28 sps:$4 sm:$0xff]  }
  0x60   : > { %1687 = vmatmul.mubr.bf16.gmra.mrb[24].mxu1 %v4000_v9  ;;  %1533 = vmatprep.mubr.bf16.mxu0 %v4003_v10  ;;  %v4108_v9 = vld [vmem:[%s4300_s26 + $0x1d8] ss:$28 sps:$4 sm:$0xff]   ;;  %v4091_v10 = vld [vmem:[%s4300_s26 + $0xf0] ss:$28 sps:$4 sm:$0xff]  }
  0x61   : > { %1694 = vmatprep.mubr.bf16.mxu1 %v4005_v11  ;;  %v4094_v11 = vld [vmem:[%s4300_s26 + $0x12c] ss:$28 sps:$4 sm:$0xff]  }
  0x67   : > { %1534 = vmatmul.mubr.bf16.gmra.mrb[28].mxu0 %v4007_v15  ;;  %v4097_v15 = vld [vmem:[%s4300_s26 + $0x164] ss:$28 sps:$4 sm:$0xff]  }
  0x68   : > { %1695 = vmatmul.mubr.bf16.gmra.mrb[28].mxu1 %v4008_v16  ;;  %1541 = vmatprep.mubr.bf16.mxu0 %v4009_v17  ;;  %v4117_v16 = vld [vmem:[%s4300_s26 + $0x280] ss:$28 sps:$4 sm:$0xff]   ;;  %v4124_v17 = vld [vmem:[%s4300_s26 + $0x2b8] ss:$28 sps:$4 sm:$0xff]  }
  0x69   : > { %1702 = vmatprep.mubr.bf16.mxu1 %v4011_v18  ;;  %v4099_v18 = vld [vmem:[%s4300_s26 + $0x160] ss:$28 sps:$4 sm:$0xff]  }
  0x6f   : > { %1542 = vmatmul.mubr.bf16.gmra.mrb[32].mxu0 %v4013_v23  ;;  %v4105_v23 = vld [vmem:[%s4300_s26 + $0x1d4] ss:$28 sps:$4 sm:$0xff]  }
  0x70   : > { %1703 = vmatmul.mubr.bf16.gmra.mrb[32].mxu1 %v4014_v24  ;;  %1549 = vmatprep.mubr.bf16.mxu0 %v4018_v26  ;;  %v4133_v24 = vld [vmem:[%s4300_s26 + $0x360] ss:$28 sps:$4 sm:$0xff]   ;;  %v4110_v26 = vld [vmem:[%s4300_s26 + $0x20c] ss:$28 sps:$4 sm:$0xff]  }
  0x71   : > { %1710 = vmatprep.mubr.bf16.mxu1 %v4020_v27  ;;  %v4112_v27 = vld [vmem:[%s4300_s26 + $0x208] ss:$28 sps:$4 sm:$0xff]  }
  0x77   : > { %1550 = vmatmul.mubr.bf16.gmra.mrb[36].mxu0 %v4022_v29  ;;  %v4115_v29 = vld [vmem:[%s4300_s26 + $0x240] ss:$28 sps:$4 sm:$0xff]  }
  0x78   : > { %1711 = vmatmul.mubr.bf16.gmra.mrb[36].mxu1 %v4023_v30  ;;  %1557 = vmatprep.mubr.bf16.mxu0 %v4024_v32  ;;  %v4118_v30 = vld [vmem:[%s4300_s26 + $0x27c] ss:$28 sps:$4 sm:$0xff]  }
  0x79   : > { %1718 = vmatprep.mubr.bf16.mxu1 %v4026_v33 }
  0x7f   : > { %1558 = vmatmul.mubr.bf16.gmra.mrb[40].mxu0 %v4028_v34  ;;  %v4120_v34 = vld [vmem:[%s4300_s26 + $0x278] ss:$28 sps:$4 sm:$0xff]  }
  0x80   : > { %1719 = vmatmul.mubr.bf16.gmra.mrb[40].mxu1 %v4029_v35  ;;  %1565 = vmatprep.mubr.bf16.mxu0 %v4033_v36 }
  0x81   : > { %1726 = vmatprep.mubr.bf16.mxu1 %v4035_v37 }
  0x87   : > { %1566 = vmatmul.mubr.bf16.gmra.mrb[44].mxu0 %v4037_v38  ;;  %v4121_v38 = vld [vmem:[%s4300_s26 + $0x2b4] ss:$28 sps:$4 sm:$0xff]  }
  0x88   : > { %1727 = vmatmul.mubr.bf16.gmra.mrb[44].mxu1 %v4038_v39  ;;  %1573 = vmatprep.mubr.bf16.mxu0 %v4039_v40 }
  0x89   : > { %1734 = vmatprep.mubr.bf16.mxu1 %v4041_v41 }
  0x8f   : > { %1574 = vmatmul.mubr.bf16.gmra.mrb[48].mxu0 %v4043_v42 }
  0x90   : > { %1735 = vmatmul.mubr.bf16.gmra.mrb[48].mxu1 %v4044_v43  ;;  %1581 = vmatprep.mubr.bf16.mxu0 %v4048_v44 }
  0x91   : > { %1742 = vmatprep.mubr.bf16.mxu1 %v4050_v45 }
  0x97   : > { %1582 = vmatmul.mubr.bf16.gmra.mrb[52].mxu0 %v4052_v46 }
  0x98   : > { %1743 = vmatmul.mubr.bf16.gmra.mrb[52].mxu1 %v4053_v47  ;;  %1589 = vmatprep.mubr.bf16.mxu0 %v4054_v48 }
  0x99   : > { %1750 = vmatprep.mubr.bf16.mxu1 %v4056_v49 }
  0x9f   : > { %1590 = vmatmul.mubr.bf16.gmra.mrb[56].mxu0 %v4058_v50  ;;  %v4123_v50 = vld [vmem:[%s4300_s26 + $0x2b0] ss:$28 sps:$4 sm:$0xff]  }
  0xa0   : > { %1751 = vmatmul.mubr.bf16.gmra.mrb[56].mxu1 %v4059_v51  ;;  %1597 = vmatprep.mubr.bf16.mxu0 %v4064_v52 }
  0xa1   : > { %1758 = vmatprep.mubr.bf16.mxu1 %v4066_v53 }
  0xa7   : > { %1598 = vmatmul.mubr.bf16.gmra.mrb[60].mxu0 %v4068_v54  ;;  %v4126_v54 = vld [vmem:[%s4300_s26 + $0x2ec] ss:$28 sps:$4 sm:$0xff]  }
  0xa8   : > { %1759 = vmatmul.mubr.bf16.gmra.mrb[60].mxu1 %v4069_v55  ;;  %1799 = vmatprep.mubr.bf16.mxu0 %v4074_v56 }
  0xa9   : > { %3677 = vmatprep.mubr.bf16.mxu1 %v4076_v57 }
  0xaf   : > { %1800 = vmatmul.mubr.bf16.vlgmr.msra.gmra.mrb[64].mxu0 %v4072_v58 }
  0xb0   : > { %3678 = vmatmul.mubr.bf16.vlgmr.msra.gmra.mrb[64].mxu1 %v4077_v59  ;;  %1807 = vmatprep.mubr.bf16.mxu0 %v4078_v60 }
  0xb1   : > { %3681 = vmatprep.mubr.bf16.mxu1 %v4084_v61 }
  0xb7   : > { %1808 = vmatmul.mubr.bf16.gmra.mrb[68].mxu0 %v4080_v62 }
  0xb8   : > { %1815 = vmatprep.mubr.bf16.mxu0 %v4081_v63  ;;  %3682 = vmatmul.mubr.bf16.gmra.mrb[68].mxu1 %v4085_v0 }
  0xb9   : > { %3685 = vmatprep.mubr.bf16.mxu1 %v4092_v1 }
  0xbf   : > { %1816 = vmatmul.mubr.bf16.gmra.mrb[72].mxu0 %v4083_v2  ;;  %v4128_v2 = vld [vmem:[%s4300_s26 + $0x2e8] ss:$28 sps:$4 sm:$0xff]  }
  0xc0   : > { %1823 = vmatprep.mubr.bf16.mxu0 %v4086_v3  ;;  %3686 = vmatmul.mubr.bf16.gmra.mrb[72].mxu1 %v4093_v4 }
  0xc1   : > { %3689 = vmatprep.mubr.bf16.mxu1 %v4100_v5 }
  0xc7   : > { %1824 = vmatmul.mubr.bf16.gmra.mrb[76].mxu0 %v4088_v6  ;;  %v4129_v6 = vld [vmem:[%s4300_s26 + $0x324] ss:$28 sps:$4 sm:$0xff]  }
  0xc8   : > { %1831 = vmatprep.mubr.bf16.mxu0 %v4089_v7  ;;  %3690 = vmatmul.mubr.bf16.gmra.mrb[76].mxu1 %v4101_v8 }
  0xc9   : > { %3693 = vmatprep.mubr.bf16.mxu1 %v4108_v9 }
  0xcf   : > { %1832 = vmatmul.mubr.bf16.gmra.mrb[80].mxu0 %v4091_v10 }
  0xd0   : > { %1839 = vmatprep.mubr.bf16.mxu0 %v4094_v11  ;;  %3694 = vmatmul.mubr.bf16.gmra.mrb[80].mxu1 %v4109_v12 }
  0xd1   : > { %3697 = vmatprep.mubr.bf16.mxu1 %v4116_v13 }
  0xd7   : > { %1840 = vmatmul.mubr.bf16.gmra.mrb[84].mxu0 %v4096_v14 }
  0xd8   : > { %1847 = vmatprep.mubr.bf16.mxu0 %v4097_v15  ;;  %3698 = vmatmul.mubr.bf16.gmra.mrb[84].mxu1 %v4117_v16 }
  0xd9   : > { %3701 = vmatprep.mubr.bf16.mxu1 %v4124_v17 }
  0xdf   : > { %1848 = vmatmul.mubr.bf16.gmra.mrb[88].mxu0 %v4099_v18  ;;  %v4131_v18 = vld [vmem:[%s4300_s26 + $0x320] ss:$28 sps:$4 sm:$0xff]  }
  0xe0   : > { %1855 = vmatprep.mubr.bf16.mxu0 %v4102_v19  ;;  %3702 = vmatmul.mubr.bf16.gmra.mrb[88].mxu1 %v4125_v20 }
  0xe1   : > { %3705 = vmatprep.mubr.bf16.mxu1 %v4132_v21 }
  0xe7   : > { %1856 = vmatmul.mubr.bf16.gmra.mrb[92].mxu0 %v4104_v22  ;;  %v4134_v22 = vld [vmem:[%s4300_s26 + $0x35c] ss:$28 sps:$4 sm:$0xff]  }
  0xe8   : > { %1863 = vmatprep.mubr.bf16.mxu0 %v4105_v23  ;;  %3706 = vmatmul.mubr.bf16.gmra.mrb[92].mxu1 %v4133_v24 }
  0xef   : > { %1864 = vmatmul.mubr.bf16.gmra.mrb[96].mxu0 %v4107_v25 }
  0xf0   : > { %1871 = vmatprep.mubr.bf16.mxu0 %v4110_v26 }
  0xf7   : > { %1872 = vmatmul.mubr.bf16.gmra.mrb[100].mxu0 %v4112_v27 }
  0xf8   : > { %1879 = vmatprep.mubr.bf16.mxu0 %v4113_v28 }
  0xff   : > { %1880 = vmatmul.mubr.bf16.gmra.mrb[104].mxu0 %v4115_v29 }
 0x100   : > { %1887 = vmatprep.mubr.bf16.mxu0 %v4118_v30 }
 0x102   : > { %v3283_v31 = vpop.f32.mrb[0].mxu0 }
 0x103   : > { %v3395_v32 = vpop.f32.mrb[0].mxu1  ;;  %v3284_v33 = vpop.f32.mrb[1].mxu0 }
 0x104   : > { %v3285_v35 = vadd.f32 %v3284_v33, %v3283_v31  ;;  %v3396_v36 = vpop.f32.mrb[1].mxu1  ;;  %v3286_v37 = vpop.f32.mrb[2].mxu0 }
 0x105   : > { %v3397_v39 = vadd.f32 %v3396_v36, %v3395_v32  ;;  %v3398_v40 = vpop.f32.mrb[2].mxu1  ;;  %v3287_v41 = vpop.f32.mrb[3].mxu0 }
 0x106   : > { %v3288_v42 = vadd.f32 %v3287_v41, %v3286_v37  ;;  %v3399_v43 = vpop.f32.mrb[3].mxu1 }
 0x107   : > { %v4485_v44 = vadd.f32 %v3397_v39, %v3285_v35  ;;  %v3400_v45 = vadd.f32 %v3399_v43, %v3398_v40  ;;  %1888 = vmatmul.mubr.bf16.gmra.mrb[108].mxu0 %v4120_v34  ;;  %v4136_v34 = vld [vmem:[%s4300_s26 + $0x358] ss:$28 sps:$4 sm:$0xff]   ;;  %s4151_s26 = smov 96  }
 0x108   : > { %1895 = vmatprep.mubr.bf16.mxu0 %v4121_v38 }
 0x109   : > { %v4487_v46 = vadd.f32 %v3400_v45, %v3288_v42 }
 0x10a   : > { %v3289_v47 = vpop.f32.mrb[4].mxu0 }
 0x10b   : > { %v3401_v48 = vpop.f32.mrb[4].mxu1  ;;  %v3290_v49 = vpop.f32.mrb[5].mxu0 }
 0x10c   : > { %v3291_v51 = vadd.f32 %v3290_v49, %v3289_v47  ;;  %v3402_v52 = vpop.f32.mrb[5].mxu1  ;;  %v3292_v53 = vpop.f32.mrb[6].mxu0 }
 0x10d   : > { %v3403_v55 = vadd.f32 %v3402_v52, %v3401_v48  ;;  %v3404_v56 = vpop.f32.mrb[6].mxu1  ;;  %v3293_v57 = vpop.f32.mrb[7].mxu0 }
 0x10e   : > { %v3294_v58 = vadd.f32 %v3293_v57, %v3292_v53  ;;  %v3405_v59 = vpop.f32.mrb[7].mxu1 }
 0x10f   : > { %v4491_v60 = vadd.f32 %v3403_v55, %v3291_v51  ;;  %v3406_v61 = vadd.f32 %v3405_v59, %v3404_v56  ;;  %1896 = vmatmul.mubr.bf16.gmra.mrb[112].mxu0 %v4123_v50 }
 0x110   : > { %1903 = vmatprep.mubr.bf16.mxu0 %v4126_v54 }
 0x111   : > { %v4493_v62 = vadd.f32 %v3406_v61, %v3294_v58 }
 0x112   : > { %v3295_v63 = vpop.f32.mrb[8].mxu0 }
 0x113   : > { %v3407_v0 = vpop.f32.mrb[8].mxu1  ;;  %v3296_v1 = vpop.f32.mrb[9].mxu0 }
 0x114   : > { %v3297_v3 = vadd.f32 %v3296_v1, %v3295_v63  ;;  %v3408_v4 = vpop.f32.mrb[9].mxu1  ;;  %v3298_v5 = vpop.f32.mrb[10].mxu0 }
 0x115   : > { %v3409_v7 = vadd.f32 %v3408_v4, %v3407_v0  ;;  %v3410_v8 = vpop.f32.mrb[10].mxu1  ;;  %v3299_v9 = vpop.f32.mrb[11].mxu0 }
 0x116   : > { %v3300_v10 = vadd.f32 %v3299_v9, %v3298_v5  ;;  %v3411_v11 = vpop.f32.mrb[11].mxu1 }
 0x117   : > { %v4497_v12 = vadd.f32 %v3409_v7, %v3297_v3  ;;  %v3412_v13 = vadd.f32 %v3411_v11, %v3410_v8  ;;  %1904 = vmatmul.mubr.bf16.gmra.mrb[116].mxu0 %v4128_v2 }
 0x118   : > { %1911 = vmatprep.mubr.bf16.mxu0 %v4129_v6 }
 0x119   : > { %v4499_v14 = vadd.f32 %v3412_v13, %v3300_v10 }
 0x11a   : > { %v3301_v15 = vpop.f32.mrb[12].mxu0 }
 0x11b   : > { %v3413_v16 = vpop.f32.mrb[12].mxu1  ;;  %v3302_v17 = vpop.f32.mrb[13].mxu0 }
 0x11c   : > { %v3303_v19 = vadd.f32 %v3302_v17, %v3301_v15  ;;  %v3414_v20 = vpop.f32.mrb[13].mxu1  ;;  %v3304_v21 = vpop.f32.mrb[14].mxu0 }
 0x11d   : > { %v3415_v23 = vadd.f32 %v3414_v20, %v3413_v16  ;;  %v3416_v24 = vpop.f32.mrb[14].mxu1  ;;  %v3305_v25 = vpop.f32.mrb[15].mxu0 }
 0x11e   : > { %v3306_v26 = vadd.f32 %v3305_v25, %v3304_v21  ;;  %v3417_v27 = vpop.f32.mrb[15].mxu1 }
 0x11f   : > { %v4503_v28 = vadd.f32 %v3415_v23, %v3303_v19  ;;  %v3418_v29 = vadd.f32 %v3417_v27, %v3416_v24  ;;  %1912 = vmatmul.mubr.bf16.gmra.mrb[120].mxu0 %v4131_v18 }
 0x120   : > { %1919 = vmatprep.mubr.bf16.mxu0 %v4134_v22 }
 0x121   : > { %v4505_v30 = vadd.f32 %v3418_v29, %v3306_v26 }
 0x122   : > { %v3307_v31 = vpop.f32.mrb[16].mxu0 }
 0x123   : > { %v3419_v32 = vpop.f32.mrb[16].mxu1  ;;  %v3308_v33 = vpop.f32.mrb[17].mxu0 }
 0x124   : > { %v3309_v35 = vadd.f32 %v3308_v33, %v3307_v31  ;;  %v3420_v36 = vpop.f32.mrb[17].mxu1  ;;  %v3310_v37 = vpop.f32.mrb[18].mxu0 }
 0x125   : > { %v3421_v38 = vadd.f32 %v3420_v36, %v3419_v32  ;;  %v3422_v39 = vpop.f32.mrb[18].mxu1  ;;  %v3311_v40 = vpop.f32.mrb[19].mxu0 }
 0x126   : > { %v3312_v41 = vadd.f32 %v3311_v40, %v3310_v37  ;;  %v3423_v42 = vpop.f32.mrb[19].mxu1 }
 0x127   : > { %v4508_v43 = vadd.f32 %v3421_v38, %v3309_v35  ;;  %v3424_v45 = vadd.f32 %v3423_v42, %v3422_v39  ;;  %1920 = vmatmul.mubr.bf16.gmra.mrb[124].mxu0 %v4136_v34 }
 0x129   : > { %v4510_v47 = vadd.f32 %v3424_v45, %v3312_v41 }
 0x12a   : > { %v3313_v48 = vpop.f32.mrb[20].mxu0 }
 0x12b   : > { %v3425_v49 = vpop.f32.mrb[20].mxu1  ;;  %v3314_v50 = vpop.f32.mrb[21].mxu0 }
 0x12c   : > { %v3315_v51 = vadd.f32 %v3314_v50, %v3313_v48  ;;  %v3426_v52 = vpop.f32.mrb[21].mxu1  ;;  %v3316_v53 = vpop.f32.mrb[22].mxu0 }
 0x12d   : > { %v3427_v54 = vadd.f32 %v3426_v52, %v3425_v49  ;;  %v3428_v55 = vpop.f32.mrb[22].mxu1  ;;  %v3317_v56 = vpop.f32.mrb[23].mxu0 }
 0x12e   : > { %v3318_v57 = vadd.f32 %v3317_v56, %v3316_v53  ;;  %v3429_v58 = vpop.f32.mrb[23].mxu1 }
 0x12f   : > { %v4512_v59 = vadd.f32 %v3427_v54, %v3315_v51  ;;  %v3430_v61 = vadd.f32 %v3429_v58, %v3428_v55 }
 0x131   : > { %v4514_v63 = vadd.f32 %v3430_v61, %v3318_v57 }
 0x132   : > { %v3319_v0 = vpop.f32.mrb[24].mxu0 }
 0x133   : > { %v3431_v1 = vpop.f32.mrb[24].mxu1  ;;  %v3320_v2 = vpop.f32.mrb[25].mxu0 }
 0x134   : > { %v3321_v3 = vadd.f32 %v3320_v2, %v3319_v0  ;;  %v3432_v4 = vpop.f32.mrb[25].mxu1  ;;  %v3322_v5 = vpop.f32.mrb[26].mxu0 }
 0x135   : > { %v3433_v6 = vadd.f32 %v3432_v4, %v3431_v1  ;;  %v3434_v7 = vpop.f32.mrb[26].mxu1  ;;  %v3323_v8 = vpop.f32.mrb[27].mxu0 }
 0x136   : > { %v3324_v9 = vadd.f32 %v3323_v8, %v3322_v5  ;;  %v3435_v10 = vpop.f32.mrb[27].mxu1 }
 0x137   : > { %v4516_v11 = vadd.f32 %v3433_v6, %v3321_v3  ;;  %v3436_v13 = vadd.f32 %v3435_v10, %v3434_v7  ;;  %v2089_v10 = vld [vmem:[%s5277_s2] sm:$0xff] }
 0x139   : > { %v4518_v15 = vadd.f32 %v3436_v13, %v3324_v9  ;;  %v2090_v13 = vld [vmem:[%s5277_s2 + $0x8] sm:$0xff] }
 0x13a   : > { %v3325_v16 = vpop.f32.mrb[28].mxu0 }
 0x13b   : > { %v3437_v17 = vpop.f32.mrb[28].mxu1  ;;  %v3326_v18 = vpop.f32.mrb[29].mxu0 }
 0x13c   : > { %v3327_v19 = vadd.f32 %v3326_v18, %v3325_v16  ;;  %v3438_v20 = vpop.f32.mrb[29].mxu1  ;;  %v3328_v21 = vpop.f32.mrb[30].mxu0 }
 0x13d   : > { %v3439_v22 = vadd.f32 %v3438_v20, %v3437_v17  ;;  %v3440_v23 = vpop.f32.mrb[30].mxu1  ;;  %v3329_v24 = vpop.f32.mrb[31].mxu0  ;;  %v4539_v20 = vpack.c.bf16 %v2090_v13, %v2089_v10 }
 0x13e   : > { %v3330_v25 = vadd.f32 %v3329_v24, %v3328_v21  ;;  %v3441_v26 = vpop.f32.mrb[31].mxu1 }
 0x13f   : > { %v4520_v27 = vadd.f32 %v3439_v22, %v3327_v19  ;;  %v3442_v29 = vadd.f32 %v3441_v26, %v3440_v23  ;;  %v5283_v19 = vmov 0.0|0.0  }
 0x140   : > { %3779 = vmatprep.subr.bf16.mxu1 %v5283_v19 }
 0x141   : > { %v4522_v31 = vadd.f32 %v3442_v29, %v3330_v25  ;;  %3781 = vmatpush3.bf16.msra.mxu1 %v4539_v20 }
 0x142   : > { %v3331_v32 = vpop.f32.mrb[32].mxu0  ;;  %3782 = vmatprep.subr.bf16.mxu1 %v5283_v19 }
 0x143   : > { %v3443_v33 = vpop.f32.mrb[32].mxu1  ;;  %v3332_v34 = vpop.f32.mrb[33].mxu0 }
 0x144   : > { %v3333_v35 = vadd.f32 %v3332_v34, %v3331_v32  ;;  %v3444_v36 = vpop.f32.mrb[33].mxu1  ;;  %v3334_v37 = vpop.f32.mrb[34].mxu0 }
 0x145   : > { %v3445_v38 = vadd.f32 %v3444_v36, %v3443_v33  ;;  %v3446_v39 = vpop.f32.mrb[34].mxu1  ;;  %v3335_v40 = vpop.f32.mrb[35].mxu0 }
 0x146   : > { %v3336_v41 = vadd.f32 %v3335_v40, %v3334_v37  ;;  %v3447_v42 = vpop.f32.mrb[35].mxu1 }
 0x147   : > { %v4524_v45 = vadd.f32 %v3445_v38, %v3333_v35  ;;  %v3448_v48 = vadd.f32 %v3447_v42, %v3446_v39 }
 0x149   : > { %v4526_v49 = vadd.f32 %v3448_v48, %v3336_v41 }
 0x14a   : > { %v3337_v50 = vpop.f32.mrb[36].mxu0 }
 0x14b   : > { %v3449_v51 = vpop.f32.mrb[36].mxu1  ;;  %v3338_v52 = vpop.f32.mrb[37].mxu0 }
 0x14c   : > { %v3339_v53 = vadd.f32 %v3338_v52, %v3337_v50  ;;  %v3450_v54 = vpop.f32.mrb[37].mxu1  ;;  %v3340_v55 = vpop.f32.mrb[38].mxu0  ;;  %v2092_v52 = vld [vmem:[%s5277_s2 + $0x18] sm:$0xff] }
 0x14d   : > { %v3451_v56 = vadd.f32 %v3450_v54, %v3449_v51  ;;  %v3452_v57 = vpop.f32.mrb[38].mxu1  ;;  %v3341_v58 = vpop.f32.mrb[39].mxu0  ;;  %v2091_v51 = vld [vmem:[%s5277_s2 + $0x10] sm:$0xff] }
 0x14e   : > { %v3342_v61 = vadd.f32 %v3341_v58, %v3340_v55  ;;  %v3453_v0 = vpop.f32.mrb[39].mxu1  ;;  %v4557_v55 = vpack.c.bf16 %v2092_v52, %v2091_v51 }
 0x14f   : > { %v4528_v1 = vadd.f32 %v3451_v56, %v3339_v53  ;;  %v3454_v2 = vadd.f32 %v3453_v0, %v3452_v57  ;;  %v2094_v0 = vld [vmem:[%s5277_s2 + $0x28] sm:$0xff] }
 0x150   : > { %3784 = vmatpush3.bf16.msra.mxu1 %v4557_v55 }
 0x151   : > { %v4530_v3 = vadd.f32 %v3454_v2, %v3342_v61  ;;  %v2093_v61 = vld [vmem:[%s5277_s2 + $0x20] sm:$0xff]  ;;  %3785 = vmatprep.subr.bf16.mxu1 %v5283_v19 }
 0x152   : > { %v3343_v4 = vpop.f32.mrb[40].mxu0 }
 0x153   : > { %v3455_v5 = vpop.f32.mrb[40].mxu1  ;;  %v3344_v6 = vpop.f32.mrb[41].mxu0 }
 0x154   : > { %v3345_v7 = vadd.f32 %v3344_v6, %v3343_v4  ;;  %v3456_v8 = vpop.f32.mrb[41].mxu1  ;;  %v3346_v9 = vpop.f32.mrb[42].mxu0  ;;  %v4566_v6 = vpack.c.bf16 %v2094_v0, %v2093_v61 }
 0x155   : > { %v3457_v16 = vadd.f32 %v3456_v8, %v3455_v5  ;;  %v3458_v17 = vpop.f32.mrb[42].mxu1  ;;  %v3347_v18 = vpop.f32.mrb[43].mxu0 }
 0x156   : > { %v3348_v21 = vadd.f32 %v3347_v18, %v3346_v9  ;;  %v3459_v22 = vpop.f32.mrb[43].mxu1  ;;  %5296 = vst [vmem:[#allocation2_spill] sm:$0xff] %v4566_v6  ;;  %3787 = vmatpush3.bf16.msra.mxu1 %v4566_v6 }
 0x157   : > { %v4541_v23 = vadd.f32 %v3457_v16, %v3345_v7  ;;  %v3460_v24 = vadd.f32 %v3459_v22, %v3458_v17  ;;  %3788 = vmatprep.subr.bf16.mxu1 %v5283_v19 }
 0x159   : > { %v4545_v25 = vadd.f32 %v3460_v24, %v3348_v21 }
 0x15a   : > { %v3349_v26 = vpop.f32.mrb[44].mxu0 }
 0x15b   : > { %v3461_v29 = vpop.f32.mrb[44].mxu1  ;;  %v3350_v32 = vpop.f32.mrb[45].mxu0 }
 0x15c   : > { %v3351_v33 = vadd.f32 %v3350_v32, %v3349_v26  ;;  %v3462_v34 = vpop.f32.mrb[45].mxu1  ;;  %v3352_v35 = vpop.f32.mrb[46].mxu0 }
 0x15d   : > { %v3463_v36 = vadd.f32 %v3462_v34, %v3461_v29  ;;  %v3464_v37 = vpop.f32.mrb[46].mxu1  ;;  %v3353_v38 = vpop.f32.mrb[47].mxu0 }
 0x15e   : > { %v3354_v39 = vadd.f32 %v3353_v38, %v3352_v35  ;;  %v3465_v40 = vpop.f32.mrb[47].mxu1 }
 0x15f   : > { %v4547_v41 = vadd.f32 %v3463_v36, %v3351_v33  ;;  %v3466_v42 = vadd.f32 %v3465_v40, %v3464_v37  ;;  %v2096_v40 = vld [vmem:[%s5277_s2 + $0x38] sm:$0xff] }
 0x161   : > { %v4549_v48 = vadd.f32 %v3466_v42, %v3354_v39  ;;  %v2095_v39 = vld [vmem:[%s5277_s2 + $0x30] sm:$0xff] }
 0x162   : > { %v3355_v50 = vpop.f32.mrb[48].mxu0  ;;  %v4585_v51 = vpack.c.bf16 %v2096_v40, %v2095_v39 }
 0x163   : > { %v3467_v53 = vpop.f32.mrb[48].mxu1  ;;  %v3356_v54 = vpop.f32.mrb[49].mxu0 }
 0x164   : > { %v3357_v56 = vadd.f32 %v3356_v54, %v3355_v50  ;;  %v3468_v57 = vpop.f32.mrb[49].mxu1  ;;  %v3358_v58 = vpop.f32.mrb[50].mxu0  ;;  %5297 = vst [vmem:[#allocation3_spill] sm:$0xff] %v4585_v51  ;;  %3790 = vmatpush3.bf16.msra.mxu1 %v4585_v51 }
 0x165   : > { %v3469_v2 = vadd.f32 %v3468_v57, %v3467_v53  ;;  %v3470_v4 = vpop.f32.mrb[50].mxu1  ;;  %v3359_v5 = vpop.f32.mrb[51].mxu0  ;;  %v2098_v57 = vld [vmem:[%s5277_s2 + $0x48] sm:$0xff]  ;;  %3791 = vmatprep.subr.bf16.mxu1 %v5283_v19 }
 0x166   : > { %v3360_v7 = vadd.f32 %v3359_v5, %v3358_v58  ;;  %v3471_v8 = vpop.f32.mrb[51].mxu1 }
 0x167   : > { %v4569_v9 = vadd.f32 %v3469_v2, %v3357_v56  ;;  %v3472_v10 = vadd.f32 %v3471_v8, %v3470_v4  ;;  %v2097_v56 = vld [vmem:[%s5277_s2 + $0x40] sm:$0xff] }
 0x168   : > { %v4594_v2 = vpack.c.bf16 %v2098_v57, %v2097_v56  ;;  %v2099_v56 = vld [vmem:[%s5277_s2 + $0x50] sm:$0xff]  ;;  %v2100_v57 = vld [vmem:[%s5277_s2 + $0x58] sm:$0xff] }
 0x169   : > { %v4571_v13 = vadd.f32 %v3472_v10, %v3360_v7 }
 0x16a   : > { %v3361_v16 = vpop.f32.mrb[52].mxu0  ;;  %5298 = vst [vmem:[#allocation4_spill] sm:$0xff] %v4594_v2  ;;  %3793 = vmatpush3.bf16.msra.mxu1 %v4594_v2 }
 0x16b   : > { %v3473_v17 = vpop.f32.mrb[52].mxu1  ;;  %v3362_v18 = vpop.f32.mrb[53].mxu0  ;;  %3794 = vmatprep.subr.bf16.mxu1 %v5283_v19 }
 0x16c   : > { %v3363_v21 = vadd.f32 %v3362_v18, %v3361_v16  ;;  %v3474_v22 = vpop.f32.mrb[53].mxu1  ;;  %v3364_v24 = vpop.f32.mrb[54].mxu0 }
 0x16d   : > { %v3475_v26 = vadd.f32 %v3474_v22, %v3473_v17  ;;  %v3476_v29 = vpop.f32.mrb[54].mxu1  ;;  %v3365_v32 = vpop.f32.mrb[55].mxu0 }
 0x16e   : > { %v3366_v33 = vadd.f32 %v3365_v32, %v3364_v24  ;;  %v3477_v34 = vpop.f32.mrb[55].mxu1 }
 0x16f   : > { %v4575_v35 = vadd.f32 %v3475_v26, %v3363_v21  ;;  %v3478_v36 = vadd.f32 %v3477_v34, %v3476_v29 }
 0x171   : > { %v4577_v37 = vadd.f32 %v3478_v36, %v3366_v33 }
 0x172   : > { %v3367_v38 = vpop.f32.mrb[56].mxu0 }
 0x173   : > { %v3479_v42 = vpop.f32.mrb[56].mxu1  ;;  %v3368_v50 = vpop.f32.mrb[57].mxu0 }
 0x174   : > { %v3369_v52 = vadd.f32 %v3368_v50, %v3367_v38  ;;  %v3480_v53 = vpop.f32.mrb[57].mxu1  ;;  %v3370_v54 = vpop.f32.mrb[58].mxu0 }
 0x175   : > { %v3481_v58 = vadd.f32 %v3480_v53, %v3479_v42  ;;  %v3482_v61 = vpop.f32.mrb[58].mxu1  ;;  %v3371_v0 = vpop.f32.mrb[59].mxu0 }
 0x176   : > { %v3372_v4 = vadd.f32 %v3371_v0, %v3370_v54  ;;  %v3483_v5 = vpop.f32.mrb[59].mxu1  ;;  %v4613_v0 = vpack.c.bf16 %v2100_v57, %v2099_v56  ;;  %v5285_v57 = vmov 0.0  }
 0x177   : > { %v4597_v7 = vadd.f32 %v3481_v58, %v3369_v52  ;;  %v3484_v8 = vadd.f32 %v3483_v5, %v3482_v61  ;;  %3741 = vmatprep.mubr.msk.f32.mxu1 %vm4148_vm0, %v5285_v57 }
 0x178   : > { %5299 = vst [vmem:[#allocation5_spill] sm:$0xff] %v4613_v0  ;;  %3796 = vmatpush3.bf16.msra.mxu1 %v4613_v0 }
 0x179   : > { %v4599_v10 = vadd.f32 %v3484_v8, %v3372_v4  ;;  %3797 = vmatprep.subr.bf16.mxu1 %v5283_v19 }
 0x17a   : > { %v3373_v16 = vpop.f32.mrb[60].mxu0 }
 0x17b   : > { %v3485_v17 = vpop.f32.mrb[60].mxu1  ;;  %v3374_v18 = vpop.f32.mrb[61].mxu0 }
 0x17c   : > { %v3375_v21 = vadd.f32 %v3374_v18, %v3373_v16  ;;  %v3486_v22 = vpop.f32.mrb[61].mxu1  ;;  %v3376_v24 = vpop.f32.mrb[62].mxu0  ;;  %v2101_v18 = vld [vmem:[%s5277_s2 + $0x60] sm:$0xff] }
 0x17d   : > { %v3487_v26 = vadd.f32 %v3486_v22, %v3485_v17  ;;  %v3488_v29 = vpop.f32.mrb[62].mxu1  ;;  %v3377_v32 = vpop.f32.mrb[63].mxu0 }
 0x17e   : > { %v3378_v33 = vadd.f32 %v3377_v32, %v3376_v24  ;;  %v3489_v34 = vpop.f32.mrb[63].mxu1 }
 0x17f   : > { %v4603_v36 = vadd.f32 %v3487_v26, %v3375_v21  ;;  %v3490_v38 = vadd.f32 %v3489_v34, %v3488_v29  ;;  %v2102_v21 = vld [vmem:[%s5277_s2 + $0x68] sm:$0xff]  ;;  %v2103_v34 = vld [vmem:[%s5277_s2 + $0x70] sm:$0xff] }
 0x180   : > { %v4627_v22 = vpack.c.bf16 %v2102_v21, %v2101_v18 }
 0x181   : > { %v4605_v39 = vadd.f32 %v3490_v38, %v3378_v33  ;;  %v2104_v38 = vld [vmem:[%s5277_s2 + $0x78] sm:$0xff] }
 0x182   : > { %v3507_v40 = vpop.f32.mrb[64].mxu0  ;;  %5301 = vst [vmem:[#allocation7_spill] sm:$0xff] %v4627_v22  ;;  %3799 = vmatpush3.bf16.msra.mxu1 %v4627_v22 }
 0x183   : > { %v3508_v42 = vpop.f32.mrb[65].mxu0  ;;  %v3679_v50 = vpop.f32.mrb[64].mxu1  ;;  %3800 = vmatprep.subr.bf16.mxu1 %v5283_v19 }
 0x184   : > { %v3509_v52 = vadd.f32 %v3508_v42, %v3507_v40  ;;  %v3510_v53 = vpop.f32.mrb[66].mxu0  ;;  %v1962_v54 = vpop.f32.mrb[65].mxu1 }
 0x185   : > { %v3511_v58 = vpop.f32.mrb[67].mxu0  ;;  %v3680_v61 = vpop.f32.mrb[66].mxu1 }
 0x186   : > { %v3512_v4 = vadd.f32 %v3511_v58, %v3510_v53  ;;  %v1802_v5 = vadd.f32 %v3509_v52, %v4485_v44  ;;  %v1965_v8 = vpop.f32.mrb[67].mxu1  ;;  %v4639_v52 = vpack.c.bf16 %v2104_v38, %v2103_v34 }
 0x188   : > { %v4617_v16 = vadd.f32 %v1962_v54, %v1802_v5  ;;  %v1805_v17 = vadd.f32 %v3512_v4, %v4487_v46  ;;  %5303 = vst [vmem:[#allocation9_spill] sm:$0xff] %v4639_v52  ;;  %3802 = vmatpush3.bf16.msra.mxu1 %v4639_v52 }
 0x189   : > { %3803 = vmatprep.subr.bf16.mxu1 %v5283_v19 }
 0x18a   : > { %5300 = vst [vmem:[#allocation6_spill] sm:$0xff] %v4617_v16  ;;  %v4629_v44 = vadd.f32 %v1965_v8, %v1805_v17  ;;  %v3513_v24 = vpop.f32.mrb[68].mxu0 }
 0x18b   : > { %v3514_v26 = vpop.f32.mrb[69].mxu0  ;;  %v3683_v29 = vpop.f32.mrb[68].mxu1 }
 0x18c   : > { %5302 = vst [vmem:[#allocation8_spill] sm:$0xff] %v4629_v44  ;;  %v3515_v46 = vadd.f32 %v3514_v26, %v3513_v24  ;;  %v3516_v32 = vpop.f32.mrb[70].mxu0  ;;  %v1978_v33 = vpop.f32.mrb[69].mxu1 }
 0x18d   : > { %v3517_v40 = vpop.f32.mrb[71].mxu0  ;;  %v3684_v42 = vpop.f32.mrb[70].mxu1 }
 0x18e   : > { %v1810_v53 = vadd.f32 %v3515_v46, %v4491_v60  ;;  %v3518_v54 = vadd.f32 %v3517_v40, %v3516_v32  ;;  %v1981_v56 = vpop.f32.mrb[71].mxu1 }
 0x190   : > { %v4645_v58 = vadd.f32 %v3679_v50, %v1810_v53  ;;  %v1813_v4 = vadd.f32 %v3518_v54, %v4493_v62 }
 0x192   : > { %5304 = vst [vmem:[#allocation10_spill] sm:$0xff] %v4645_v58  ;;  %v4649_v5 = vadd.f32 %v3680_v61, %v1813_v4  ;;  %v3519_v8 = vpop.f32.mrb[72].mxu0 }
 0x193   : > { %v3520_v17 = vpop.f32.mrb[73].mxu0  ;;  %v3687_v60 = vpop.f32.mrb[72].mxu1 }
 0x194   : > { %5305 = vst [vmem:[#allocation11_spill] sm:$0xff] %v4649_v5  ;;  %v3521_v18 = vadd.f32 %v3520_v17, %v3519_v8  ;;  %v3522_v21 = vpop.f32.mrb[74].mxu0  ;;  %v1994_v24 = vpop.f32.mrb[73].mxu1 }
 0x195   : > { %v3523_v26 = vpop.f32.mrb[75].mxu0  ;;  %v3688_v46 = vpop.f32.mrb[74].mxu1 }
 0x196   : > { %v3524_v32 = vadd.f32 %v3523_v26, %v3522_v21  ;;  %v1818_v34 = vadd.f32 %v3521_v18, %v4497_v12  ;;  %v1997_v38 = vpop.f32.mrb[75].mxu1 }
 0x198   : > { %v4652_v50 = vadd.f32 %v1978_v33, %v1818_v34  ;;  %v1821_v62 = vadd.f32 %v3524_v32, %v4499_v14 }
 0x19a   : > { %v4655_v40 = vadd.f32 %v1981_v56, %v1821_v62  ;;  %v3525_v61 = vpop.f32.mrb[76].mxu0 }
 0x19b   : > { %v3526_v53 = vpop.f32.mrb[77].mxu0  ;;  %v4657_v54 = vpop.f32.mrb[76].mxu1 }
 0x19c   : > { %v3527_v4 = vadd.f32 %v3526_v53, %v3525_v61  ;;  %v3528_v8 = vpop.f32.mrb[78].mxu0  ;;  %v2010_v17 = vpop.f32.mrb[77].mxu1 }
 0x19d   : > { %v3529_v19 = vpop.f32.mrb[79].mxu0  ;;  %v4659_v57 = vpop.f32.mrb[78].mxu1 }
 0x19e   : > { %v1826_v21 = vadd.f32 %v3527_v4, %v4503_v28  ;;  %v3530_v12 = vadd.f32 %v3529_v19, %v3528_v8  ;;  %v2013_v18 = vpop.f32.mrb[79].mxu1 }
 0x1a0   : > { %v4662_v33 = vadd.f32 %v3683_v29, %v1826_v21  ;;  %v1829_v14 = vadd.f32 %v3530_v12, %v4505_v30 }
 0x1a2   : > { %v4665_v56 = vadd.f32 %v3684_v42, %v1829_v14  ;;  %v3531_v26 = vpop.f32.mrb[80].mxu0  ;;  %v2105_v14 = vadd.f32 %v4629_v44, %v4617_v16 }
 0x1a3   : > { %v3532_v32 = vpop.f32.mrb[81].mxu0  ;;  %v4667_v34 = vpop.f32.mrb[80].mxu1 }
 0x1a4   : > { %v3533_v62 = vadd.f32 %v3532_v32, %v3531_v26  ;;  %v3534_v61 = vpop.f32.mrb[82].mxu0  ;;  %v4669_v53 = vpop.f32.mrb[81].mxu1 }
 0x1a5   : > { %v3535_v52 = vpop.f32.mrb[83].mxu0  ;;  %v4671_v22 = vpop.f32.mrb[82].mxu1 }
 0x1a6   : > { %v3536_v28 = vadd.f32 %v3535_v52, %v3534_v61  ;;  %v1834_v19 = vadd.f32 %v3533_v62, %v4508_v43  ;;  %v4674_v29 = vpop.f32.mrb[83].mxu1 }
 0x1a8   : > { %v4676_v4 = vadd.f32 %v1994_v24, %v1834_v19  ;;  %v1837_v30 = vadd.f32 %v3536_v28, %v4510_v47  ;;  %v2106_v24 = vadd.f32 %v2105_v14, %v4645_v58 }
 0x1aa   : > { %v4679_v42 = vadd.f32 %v1997_v38, %v1837_v30  ;;  %v3537_v8 = vpop.f32.mrb[84].mxu0  ;;  %v2107_v30 = vadd.f32 %v2106_v24, %v4649_v5 }
 0x1ab   : > { %v3538_v21 = vpop.f32.mrb[85].mxu0  ;;  %v4681_v12 = vpop.f32.mrb[84].mxu1 }
 0x1ac   : > { %v3539_v26 = vadd.f32 %v3538_v21, %v3537_v8  ;;  %v3540_v32 = vpop.f32.mrb[86].mxu0  ;;  %v4685_v52 = vpop.f32.mrb[85].mxu1  ;;  %v2108_v51 = vadd.f32 %v2107_v30, %v4652_v50 }
 0x1ad   : > { %v3541_v43 = vpop.f32.mrb[87].mxu0  ;;  %v4687_v62 = vpop.f32.mrb[86].mxu1 }
 0x1ae   : > { %v1842_v47 = vadd.f32 %v3539_v26, %v4512_v59  ;;  %v3542_v38 = vadd.f32 %v3541_v43, %v3540_v32  ;;  %v4691_v61 = vpop.f32.mrb[87].mxu1 }
 0x1b0   : > { %v4693_v28 = vadd.f32 %v3687_v60, %v1842_v47  ;;  %v1845_v19 = vadd.f32 %v3542_v38, %v4514_v63 }
 0x1b2   : > { %v4697_v8 = vadd.f32 %v3688_v46, %v1845_v19  ;;  %v3543_v21 = vpop.f32.mrb[88].mxu0  ;;  %v2109_v46 = vadd.f32 %v2108_v51, %v4655_v40 }
 0x1b3   : > { %v3544_v0 = vpop.f32.mrb[89].mxu0  ;;  %v4699_v2 = vpop.f32.mrb[88].mxu1 }
 0x1b4   : > { %v3545_v14 = vadd.f32 %v3544_v0, %v3543_v21  ;;  %v3546_v6 = vpop.f32.mrb[90].mxu0  ;;  %v4702_v59 = vpop.f32.mrb[89].mxu1  ;;  %v2143_v0 = vmul.f32 %v4629_v44, %v4629_v44  ;;  %v2110_v38 = vadd.f32 %v2109_v46, %v4662_v33 }
 0x1b5   : > { %v3547_v26 = vpop.f32.mrb[91].mxu0  ;;  %v4704_v32 = vpop.f32.mrb[90].mxu1 }
 0x1b6   : > { %v3548_v60 = vadd.f32 %v3547_v26, %v3546_v6  ;;  %v1850_v63 = vadd.f32 %v3545_v14, %v4516_v11  ;;  %v4707_v43 = vpop.f32.mrb[91].mxu1  ;;  %v2142_v6 = vmul.f32 %v4617_v16, %v4617_v16  ;;  %v2144_v11 = vmul.f32 %v4645_v58, %v4645_v58 }
 0x1b7   : > { %v2145_v58 = vmul.f32 %v4649_v5, %v4649_v5 }
 0x1b8   : > { %v4710_v24 = vadd.f32 %v2010_v17, %v1850_v63  ;;  %v1853_v47 = vadd.f32 %v3548_v60, %v4518_v15  ;;  %v2174_v26 = vadd.f32 %v2143_v0, %v2142_v6  ;;  %v2146_v6 = vmul.f32 %v4652_v50, %v4652_v50 }
 0x1ba   : > { %v4716_v19 = vadd.f32 %v2013_v18, %v1853_v47  ;;  %v3549_v30 = vpop.f32.mrb[92].mxu0  ;;  %v2111_v18 = vadd.f32 %v2110_v38, %v4665_v56  ;;  %v2175_v16 = vadd.f32 %v2174_v26, %v2144_v11 }
 0x1bb   : > { %v3550_v21 = vpop.f32.mrb[93].mxu0  ;;  %v4722_v51 = vpop.f32.mrb[92].mxu1 }
 0x1bc   : > { %v3551_v17 = vadd.f32 %v3550_v21, %v3549_v30  ;;  %v3552_v14 = vpop.f32.mrb[94].mxu0  ;;  %v4724_v15 = vpop.f32.mrb[93].mxu1  ;;  %v2112_v30 = vadd.f32 %v2111_v18, %v4676_v4 }
 0x1bd   : > { %v3553_v60 = vpop.f32.mrb[95].mxu0  ;;  %v4726_v63 = vpop.f32.mrb[94].mxu1 }
 0x1be   : > { %v1858_v46 = vadd.f32 %v3551_v17, %v4520_v27  ;;  %v3554_v47 = vadd.f32 %v3553_v60, %v3552_v14  ;;  %v4730_v44 = vpop.f32.mrb[95].mxu1  ;;  %v2176_v17 = vadd.f32 %v2175_v16, %v2145_v58  ;;  %v2113_v60 = vadd.f32 %v2112_v30, %v4679_v42 }
 0x1c0   : > { %v4736_v21 = vadd.f32 %v4657_v54, %v1858_v46  ;;  %v1861_v0 = vadd.f32 %v3554_v47, %v4522_v31  ;;  %v2177_v26 = vadd.f32 %v2176_v17, %v2146_v6  ;;  %v2147_v54 = vmul.f32 %v4655_v40, %v4655_v40 }
 0x1c1   : > { %v2114_v31 = vadd.f32 %v2113_v60, %v4693_v28  ;;  %v2149_v17 = vmul.f32 %v4665_v56, %v4665_v56 }
 0x1c2   : > { %v4742_v38 = vadd.f32 %v4659_v57, %v1861_v0  ;;  %v3555_v27 = vpop.f32.mrb[96].mxu0  ;;  %v2148_v57 = vmul.f32 %v4662_v33, %v4662_v33  ;;  %v2178_v30 = vadd.f32 %v2177_v26, %v2147_v54 }
 0x1c3   : > { %v3556_v14 = vpop.f32.mrb[97].mxu0  ;;  %v2115_v0 = vadd.f32 %v2114_v31, %v4697_v8 }
 0x1c4   : > { %v3557_v5 = vadd.f32 %v3556_v14, %v3555_v27  ;;  %v3558_v11 = vpop.f32.mrb[98].mxu0  ;;  %v2179_v14 = vadd.f32 %v2178_v30, %v2148_v57  ;;  %v2151_v57 = vmul.f32 %v4679_v42, %v4679_v42 }
 0x1c5   : > { %v3559_v18 = vpop.f32.mrb[99].mxu0 }
 0x1c6   : > { %v3560_v46 = vadd.f32 %v3559_v18, %v3558_v11  ;;  %v1866_v47 = vadd.f32 %v3557_v5, %v4524_v45  ;;  %v2116_v5 = vadd.f32 %v2115_v0, %v4710_v24  ;;  %v2180_v18 = vadd.f32 %v2179_v14, %v2149_v17 }
 0x1c8   : > { %v4752_v16 = vadd.f32 %v4669_v53, %v1866_v47  ;;  %v1869_v58 = vadd.f32 %v3560_v46, %v4526_v49  ;;  %v2150_v53 = vmul.f32 %v4676_v4, %v4676_v4 }
 0x1ca   : > { %v4757_v6 = vadd.f32 %v4674_v29, %v1869_v58  ;;  %v3561_v27 = vpop.f32.mrb[100].mxu0  ;;  %v2117_v29 = vadd.f32 %v2116_v5, %v4716_v19  ;;  %v2181_v47 = vadd.f32 %v2180_v18, %v2150_v53 }
 0x1cb   : > { %v3562_v45 = vpop.f32.mrb[101].mxu0 }
 0x1cc   : > { %v3563_v60 = vadd.f32 %v3562_v45, %v3561_v27  ;;  %v3564_v11 = vpop.f32.mrb[102].mxu0  ;;  %v2118_v58 = vadd.f32 %v2117_v29, %v4736_v21 }
 0x1cd   : > { %v3565_v49 = vpop.f32.mrb[103].mxu0 }
 0x1ce   : > { %v1874_v26 = vadd.f32 %v3563_v60, %v4528_v1  ;;  %v3566_v54 = vadd.f32 %v3565_v49, %v3564_v11  ;;  %v2152_v1 = vmul.f32 %v4693_v28, %v4693_v28  ;;  %v2153_v11 = vmul.f32 %v4697_v8, %v4697_v8 }
 0x1d0   : > { %v4767_v31 = vadd.f32 %v4667_v34, %v1874_v26  ;;  %v1877_v46 = vadd.f32 %v3566_v54, %v4530_v3  ;;  %v2182_v34 = vadd.f32 %v2181_v47, %v2151_v57  ;;  %v2119_v3 = vadd.f32 %v2118_v58, %v4742_v38 }
 0x1d1   : > { %v2154_v54 = vmul.f32 %v4710_v24, %v4710_v24 }
 0x1d2   : > { %v4774_v30 = vadd.f32 %v4671_v22, %v1877_v46  ;;  %v3567_v0 = vpop.f32.mrb[104].mxu0  ;;  %v2183_v53 = vadd.f32 %v2182_v34, %v2152_v1  ;;  %v2120_v22 = vadd.f32 %v2119_v3, %v4752_v16 }
 0x1d3   : > { %v3568_v27 = vpop.f32.mrb[105].mxu0 }
 0x1d4   : > { %v3569_v17 = vadd.f32 %v3568_v27, %v3567_v0  ;;  %v3570_v14 = vpop.f32.mrb[106].mxu0  ;;  %v2184_v46 = vadd.f32 %v2183_v53, %v2153_v11  ;;  %v2121_v47 = vadd.f32 %v2120_v22, %v4757_v6  ;;  %v2157_v11 = vmul.f32 %v4742_v38, %v4742_v38 }
 0x1d5   : > { %v3571_v45 = vpop.f32.mrb[107].mxu0 }
 0x1d6   : > { %v3572_v5 = vadd.f32 %v3571_v45, %v3570_v14  ;;  %v1882_v60 = vadd.f32 %v3569_v17, %v4541_v23  ;;  %v2185_v0 = vadd.f32 %v2184_v46, %v2154_v54 }
 0x1d8   : > { %v4784_v49 = vadd.f32 %v4685_v52, %v1882_v60  ;;  %v1885_v26 = vadd.f32 %v3572_v5, %v4545_v25  ;;  %v2155_v52 = vmul.f32 %v4716_v19, %v4716_v19  ;;  %v2122_v25 = vadd.f32 %v2121_v47, %v4767_v31 }
 0x1da   : > { %v4790_v18 = vadd.f32 %v4691_v61, %v1885_v26  ;;  %v3573_v29 = vpop.f32.mrb[108].mxu0  ;;  %v2156_v61 = vmul.f32 %v4736_v21, %v4736_v21  ;;  %v2186_v45 = vadd.f32 %v2185_v0, %v2155_v52  ;;  %v2123_v3 = vadd.f32 %v2122_v25, %v4774_v30 }
 0x1db   : > { %v3574_v23 = vpop.f32.mrb[109].mxu0  ;;  %v2159_v0 = vmul.f32 %v4757_v6, %v4757_v6 }
 0x1dc   : > { %v3575_v57 = vadd.f32 %v3574_v23, %v3573_v29  ;;  %v3576_v58 = vpop.f32.mrb[110].mxu0  ;;  %v2124_v22 = vadd.f32 %v2123_v3, %v4784_v49 }
 0x1dd   : > { %v3577_v1 = vpop.f32.mrb[111].mxu0 }
 0x1de   : > { %v1890_v27 = vadd.f32 %v3575_v57, %v4547_v41  ;;  %v3578_v17 = vadd.f32 %v3577_v1, %v3576_v58  ;;  %v2187_v41 = vadd.f32 %v2186_v45, %v2156_v61 }
 0x1e0   : > { %v4800_v14 = vadd.f32 %v4681_v12, %v1890_v27  ;;  %v1893_v34 = vadd.f32 %v3578_v17, %v4549_v48  ;;  %v2158_v12 = vmul.f32 %v4752_v16, %v4752_v16  ;;  %v2188_v23 = vadd.f32 %v2187_v41, %v2157_v11 }
 0x1e2   : > { %v4805_v5 = vadd.f32 %v4687_v62, %v1893_v34  ;;  %v3579_v60 = vpop.f32.mrb[112].mxu0  ;;  %v2125_v62 = vadd.f32 %v2124_v22, %v4790_v18  ;;  %v2189_v58 = vadd.f32 %v2188_v23, %v2158_v12  ;;  %v2162_v22 = vmul.f32 %v4784_v49, %v4784_v49 }
 0x1e3   : > { %v3580_v53 = vpop.f32.mrb[113].mxu0 }
 0x1e4   : > { %v3581_v26 = vadd.f32 %v3580_v53, %v3579_v60  ;;  %v3582_v54 = vpop.f32.mrb[114].mxu0  ;;  %v2126_v52 = vadd.f32 %v2125_v62, %v4800_v14  ;;  %v2161_v60 = vmul.f32 %v4774_v30, %v4774_v30 }
 0x1e5   : > { %v3583_v48 = vpop.f32.mrb[115].mxu0 }
 0x1e6   : > { %v3584_v29 = vadd.f32 %v3583_v48, %v3582_v54  ;;  %v1898_v46 = vadd.f32 %v3581_v26, %v4569_v9  ;;  %v2160_v9 = vmul.f32 %v4767_v31, %v4767_v31 }
 0x1e8   : > { %v4815_v47 = vadd.f32 %v4702_v59, %v1898_v46  ;;  %v1901_v57 = vadd.f32 %v3584_v29, %v4571_v13  ;;  %v2190_v59 = vadd.f32 %v2189_v58, %v2159_v0  ;;  %v2127_v13 = vadd.f32 %v2126_v52, %v4805_v5 }
 0x1ea   : > { %v4822_v1 = vadd.f32 %v4707_v43, %v1901_v57  ;;  %v3585_v25 = vpop.f32.mrb[116].mxu0  ;;  %v2191_v11 = vadd.f32 %v2190_v59, %v2160_v9  ;;  %v2128_v43 = vadd.f32 %v2127_v13, %v4815_v47 }
 0x1eb   : > { %v3586_v27 = vpop.f32.mrb[117].mxu0 }
 0x1ec   : > { %v3587_v17 = vadd.f32 %v3586_v27, %v3585_v25  ;;  %v3588_v61 = vpop.f32.mrb[118].mxu0  ;;  %v2129_v48 = vadd.f32 %v2128_v43, %v4822_v1 }
 0x1ed   : > { %v3589_v34 = vpop.f32.mrb[119].mxu0 }
 0x1ee   : > { %v1906_v45 = vadd.f32 %v3587_v17, %v4575_v35  ;;  %v3590_v3 = vadd.f32 %v3589_v34, %v3588_v61  ;;  %v2192_v35 = vadd.f32 %v2191_v11, %v2161_v60 }
 0x1f0   : > { %v4832_v41 = vadd.f32 %v4699_v2, %v1906_v45  ;;  %v1909_v53 = vadd.f32 %v3590_v3, %v4577_v37  ;;  %v2193_v23 = vadd.f32 %v2192_v35, %v2162_v22  ;;  %v2163_v2 = vmul.f32 %v4790_v18, %v4790_v18 }
 0x1f2   : > { %v4838_v26 = vadd.f32 %v4704_v32, %v1909_v53  ;;  %v3591_v54 = vpop.f32.mrb[120].mxu0  ;;  %v2130_v58 = vadd.f32 %v2129_v48, %v4832_v41  ;;  %v2164_v32 = vmul.f32 %v4800_v14, %v4800_v14  ;;  %v2194_v25 = vadd.f32 %v2193_v23, %v2163_v2 }
 0x1f3   : > { %v3592_v12 = vpop.f32.mrb[121].mxu0 }
 0x1f4   : > { %v3593_v29 = vadd.f32 %v3592_v12, %v3591_v54  ;;  %v3594_v46 = vpop.f32.mrb[122].mxu0  ;;  %v2131_v9 = vadd.f32 %v2130_v58, %v4838_v26  ;;  %v2195_v59 = vadd.f32 %v2194_v25, %v2164_v32  ;;  %v2167_v54 = vmul.f32 %v4822_v1, %v4822_v1 }
 0x1f5   : > { %v3595_v62 = vpop.f32.mrb[123].mxu0 }
 0x1f6   : > { %v3596_v57 = vadd.f32 %v3595_v62, %v3594_v46  ;;  %v1914_v37 = vadd.f32 %v3593_v29, %v4597_v7  ;;  %v2165_v7 = vmul.f32 %v4805_v5, %v4805_v5 }
 0x1f8   : > { %v4848_v0 = vadd.f32 %v4724_v15, %v1914_v37  ;;  %v1917_v52 = vadd.f32 %v3596_v57, %v4599_v10  ;;  %v2166_v10 = vmul.f32 %v4815_v47, %v4815_v47  ;;  %v2196_v11 = vadd.f32 %v2195_v59, %v2165_v7 }
 0x1f9   : > { %v5307_v59 = vmov 0.0|0.0  }
 0x1fa   : > { %v4853_v27 = vadd.f32 %v4730_v44, %v1917_v52  ;;  %v3597_v17 = vpop.f32.mrb[124].mxu0  ;;  %v2132_v34 = vadd.f32 %v2131_v9, %v4848_v0  ;;  %v2197_v22 = vadd.f32 %v2196_v11, %v2166_v10  ;;  %v2170_v62 = vmul.f32 %v4848_v0, %v4848_v0  ;;  %v5310_v10 = vld [vmem:[#allocation4_spill] sm:$0xff]  ;;  %v5312_v11 = vld [vmem:[#allocation7_spill] sm:$0xff] }
 0x1fb   : > { %v3598_v61 = vpop.f32.mrb[125].mxu0 }
 0x1fc   : > { %v3599_v13 = vadd.f32 %v3598_v61, %v3597_v17  ;;  %v3600_v45 = vpop.f32.mrb[126].mxu0  ;;  %v2133_v44 = vadd.f32 %v2132_v34, %v4853_v27  ;;  %v2198_v29 = vadd.f32 %v2197_v22, %v2167_v54  ;;  %v2171_v58 = vmul.f32 %v4853_v27, %v4853_v27 }
 0x1fd   : > { %v3601_v15 = vpop.f32.mrb[127].mxu0  ;;  %v5306_v17 = vmov 0.0  }
 0x1fe   : > { %v1922_v3 = vadd.f32 %v3599_v13, %v4603_v36  ;;  %v3602_v60 = vadd.f32 %v3601_v15, %v3600_v45  ;;  %v2168_v36 = vmul.f32 %v4832_v41, %v4832_v41  ;;  %v5308_v13 = vld [vmem:[#allocation2_spill] sm:$0xff] }
 0x200   : > { %v4863_v43 = vadd.f32 %v4722_v51, %v1922_v3  ;;  %v1925_v53 = vadd.f32 %v3602_v60, %v4605_v39  ;;  %v2169_v51 = vmul.f32 %v4838_v26, %v4838_v26  ;;  %v2199_v39 = vadd.f32 %v2198_v29, %v2168_v36  ;;  %v5311_v60 = vld [vmem:[#allocation5_spill] sm:$0xff] }
 0x202   : > { %v2134_v35 = vadd.f32 %v2133_v44, %v4863_v43  ;;  %v4870_v12 = vadd.f32 %v4726_v63, %v1925_v53  ;;  %v2200_v57 = vadd.f32 %v2199_v39, %v2169_v51  ;;  %v2172_v52 = vmul.f32 %v4863_v43, %v4863_v43  ;;  %v5313_v53 = vld [vmem:[#allocation9_spill] sm:$0xff] }
 0x204   : > { %v2135_v48 = vadd.f32 %v2134_v35, %v4870_v12  ;;  %v2201_v63 = vadd.f32 %v2200_v57, %v2170_v62  ;;  %v2173_v7 = vmul.f32 %v4870_v12, %v4870_v12 }
 0x206   : > { %v2136_v46 = vrot.slane %v2135_v48, 4  ;;  %v2202_v9 = vadd.f32 %v2201_v63, %v2171_v58 }
 0x208   : > { %v2137_v23 = vadd.f32 %v2136_v46, %v2135_v48  ;;  %v2203_v61 = vadd.f32 %v2202_v9, %v2172_v52  ;;  %v2358_v48 = vlaneseq }
 0x20a   : > { %v2138_v2 = vrot.slane %v2137_v23, 2  ;;  %v2204_v34 = vadd.f32 %v2203_v61, %v2173_v7  ;;  %v2359_v51 = vshrl.u32 %v2358_v48, 7  ;;  %v5315_v61 = vld [vmem:[#allocation8_spill] sm:$0xff] }
 0x20c   : > { %v2139_v37 = vadd.f32 %v2138_v2, %v2137_v23  ;;  %v2205_v45 = vrot.slane %v2204_v34, 4  ;;  %v2508_v2 = vld [vmem:[%s5280_s5] sm:$0x1]  ;;  %v4905_v57 = vsub.s32 0, %v2359_v51 }
 0x20d   : > { %vm2509_vm1 = vcmp.gt.f32.partialorder %v2508_v2, 0.0 }
 0x20e   : > { %v2140_v32 = vrot.slane %v2139_v37, 1  ;;  %v2206_v15 = vadd.f32 %v2205_v45, %v2204_v34 }
 0x210   : > { %v2141_v25 = vadd.f32 %v2140_v32, %v2139_v37  ;;  %v2207_v3 = vrot.slane %v2206_v15, 2  ;;  %v4150_v32 = vmov 0  }
 0x211   : > { %v4910_v52 = vsel %vm2509_vm1, 1, %v4150_v32 }
 0x212   : > { %3742 = vmatmul.mubr.f32.vlgmr.msra.gmra.mrb[96].mxu1 %v2141_v25  ;;  %v5314_v25 = vld [vmem:[#allocation6_spill] sm:$0xff] }
 0x213   : > { %3805 = vmatpush3.bf16.msra.mxu1 %v4539_v20  ;;  %3776 = vmatprep.mubr.msk.f32.mxu1 %vm4148_vm0, %v5306_v17  ;;  %v5309_v20 = vld [vmem:[#allocation3_spill] sm:$0xff]  ;;  %v2546_v17 = vrot.slane %v4910_v52, %v4905_v57 }
 0x214   : > { %3806 = vmatprep.subr.bf16.mxu1 %v5307_v59 }
 0x215   : > { %vm5007_vm2 = vcmp.eq.s32.totalorder %v2546_v17, 1 }
 0x217   : > { %3808 = vmatpush3.bf16.msra.mxu1 %v4557_v55  ;;  %v2208_v55 = vadd.f32 %v2207_v3, %v2206_v15 }
 0x218   : > { %3809 = vmatprep.subr.bf16.mxu1 %v5307_v59 }
 0x219   : > { %v2209_v44 = vrot.slane %v2208_v55, 1 }
 0x21b   : > { %3811 = vmatpush3.bf16.msra.mxu1 %v5308_v13  ;;  %v2210_v22 = vadd.f32 %v2209_v44, %v2208_v55  ;;  %v5317_v13 = vld [vmem:[#allocation11_spill] sm:$0xff] }
 0x21c   : > { %3812 = vmatprep.subr.bf16.mxu1 %v5307_v59 }
 0x21f   : > { %3814 = vmatpush3.bf16.msra.mxu1 %v5309_v20 }
 0x220   : > { %3815 = vmatprep.subr.bf16.mxu1 %v5307_v59 }
 0x223   : > { %3817 = vmatpush3.bf16.msra.mxu1 %v5310_v10 }
 0x224   : > { %3818 = vmatprep.subr.bf16.mxu1 %v5307_v59 }
 0x227   : > { %3820 = vmatpush3.bf16.msra.mxu1 %v5311_v60 }
 0x228   : > { %3821 = vmatprep.subr.bf16.mxu1 %v5307_v59 }
 0x22b   : > { %3823 = vmatpush3.bf16.msra.mxu1 %v5312_v11 }
 0x22c   : > { %3824 = vmatprep.subr.bf16.mxu1 %v5307_v59  ;;  %v5316_v59 = vld [vmem:[#allocation10_spill] sm:$0xff] }
 0x22f   : > { %3826 = vmatpush3.bf16.msra.mxu1 %v5313_v53 }
 0x232   : > { %3777 = vmatmul.mubr.f32.vlgmr.msra.gmra.mrb[98].mxu1 %v2210_v22 }
 0x2e5   : > { %v2277_v54 = vpop.f32.mrb[96].mxu1 }
 0x2e6   : > { %v3743_v35 = vpop.f32.mrb[97].mxu1  ;;  %v2351_v36 = vmul.f32 0.001953125, %v2277_v54 }
 0x2e8   : > { %v2353_v46 = vmul.f32 %v2351_v36, %v2351_v36  ;;  %v4908_v58 = vrot.slane %v2351_v36, %v4905_v57 }
 0x2ea   : > { %v2362_v9 = vsub.f32 %v5314_v25, %v4908_v58  ;;  %v2363_v7 = vsub.f32 %v5315_v61, %v4908_v58  ;;  %v2364_v34 = vsub.f32 %v5316_v59, %v4908_v58  ;;  %v2365_v45 = vsub.f32 %v5317_v13, %v4908_v58 }
 0x2eb   : > { %v2366_v20 = vsub.f32 %v4652_v50, %v4908_v58  ;;  %v2367_v15 = vsub.f32 %v4655_v40, %v4908_v58  ;;  %v2368_v10 = vsub.f32 %v4662_v33, %v4908_v58  ;;  %v2369_v3 = vsub.f32 %v4665_v56, %v4908_v58 }
 0x2ec   : > { %v2370_v60 = vsub.f32 %v4676_v4, %v4908_v58  ;;  %v2371_v55 = vsub.f32 %v4679_v42, %v4908_v58  ;;  %v2372_v11 = vsub.f32 %v4693_v28, %v4908_v58  ;;  %v2373_v50 = vsub.f32 %v4697_v8, %v4908_v58 }
 0x2ed   : > { %v2374_v40 = vsub.f32 %v4710_v24, %v4908_v58  ;;  %v2375_v33 = vsub.f32 %v4716_v19, %v4908_v58  ;;  %v2376_v56 = vsub.f32 %v4736_v21, %v4908_v58  ;;  %v2377_v4 = vsub.f32 %v4742_v38, %v4908_v58 }
 0x2ee   : > { %v2378_v42 = vsub.f32 %v4752_v16, %v4908_v58  ;;  %v2379_v28 = vsub.f32 %v4757_v6, %v4908_v58  ;;  %v2380_v8 = vsub.f32 %v4767_v31, %v4908_v58  ;;  %v2381_v24 = vsub.f32 %v4774_v30, %v4908_v58 }
 0x2ef   : > { %v2382_v19 = vsub.f32 %v4784_v49, %v4908_v58  ;;  %v2383_v21 = vsub.f32 %v4790_v18, %v4908_v58  ;;  %v2384_v38 = vsub.f32 %v4800_v14, %v4908_v58  ;;  %v2385_v16 = vsub.f32 %v4805_v5, %v4908_v58 }
 0x2f0   : > { %v2386_v6 = vsub.f32 %v4815_v47, %v4908_v58  ;;  %v2387_v31 = vsub.f32 %v4822_v1, %v4908_v58  ;;  %v2388_v30 = vsub.f32 %v4832_v41, %v4908_v58  ;;  %v2389_v49 = vsub.f32 %v4838_v26, %v4908_v58 }
 0x2f1   : > { %v2390_v14 = vsub.f32 %v4848_v0, %v4908_v58  ;;  %v2391_v5 = vsub.f32 %v4853_v27, %v4908_v58  ;;  %v2392_v47 = vsub.f32 %v4863_v43, %v4908_v58  ;;  %v2393_v1 = vsub.f32 %v4870_v12, %v4908_v58 }
 0x305   : > { %v2347_v29 = vpop.f32.mrb[98].mxu1 }
 0x306   : > { %v2352_v39 = vmul.f32 0.001953125, %v2347_v29  ;;  %v3778_v23 = vpop.f32.mrb[99].mxu1 }
 0x308   : > { %v2354_v62 = vsub.f32 %v2352_v39, %v2353_v46 }
 0x30a   : > { %v2355_v37 = vmax.f32 %v2354_v62, 0.0 }
 0x30c   : > { %v2356_v63 = vadd.f32 1e-05, %v2355_v37 }
 0x30e   : > { %4137 = vrsqrt.f32 %v2356_v63  ;;  %v4994_v63 = vld [vmem:[%s5278_s3] ss:$0 sm:$0xff] }
 0x318   : > { %v4138_v44 = vpop.eup %4137 }
 0x319   : > { %v2397_v18 = vrot.slane %v4138_v44, %v4905_v57 }
 0x31b   : > { %v2398_v53 = vmul.f32 %v2397_v18, %v2362_v9  ;;  %v2399_v22 = vmul.f32 %v2397_v18, %v2363_v7  ;;  %v2400_v41 = vmul.f32 %v2397_v18, %v2364_v34  ;;  %v2401_v54 = vmul.f32 %v2397_v18, %v2365_v45 }
 0x31c   : > { %v2402_v35 = vmul.f32 %v2397_v18, %v2366_v20  ;;  %v2403_v26 = vmul.f32 %v2397_v18, %v2367_v15  ;;  %v2404_v36 = vmul.f32 %v2397_v18, %v2368_v10  ;;  %v2405_v48 = vmul.f32 %v2397_v18, %v2369_v3 }
 0x31d   : > { %v2406_v29 = vmul.f32 %v2397_v18, %v2370_v60  ;;  %v2407_v46 = vmul.f32 %v2397_v18, %v2371_v55  ;;  %v4979_v0 = vmul.f32 %v2397_v18, %v2372_v11  ;;  %v4981_v51 = vmul.f32 %v2397_v18, %v2373_v50 }
 0x31e   : > { %v2410_v27 = vmul.f32 %v2397_v18, %v2374_v40  ;;  %v2411_v39 = vmul.f32 %v2397_v18, %v2375_v33  ;;  %v4983_v43 = vmul.f32 %v2397_v18, %v2376_v56  ;;  %v4985_v23 = vmul.f32 %v2397_v18, %v2377_v4 }
 0x31f   : > { %v2414_v12 = vmul.f32 %v2397_v18, %v2378_v42  ;;  %v2415_v62 = vmul.f32 %v2397_v18, %v2379_v28  ;;  %v4987_v2 = vmul.f32 %v2397_v18, %v2380_v8  ;;  %v4989_v37 = vmul.f32 %v2397_v18, %v2381_v24  ;;  %v5054_v42 = vld [vmem:[%s5279_s4] ss:$0 sm:$0xff] }
 0x320   : > { %v2418_v58 = vmul.f32 %v2397_v18, %v2382_v19  ;;  %v2419_v32 = vmul.f32 %v2397_v18, %v2383_v21  ;;  %v4996_v25 = vmul.f32 %v2397_v18, %v2384_v38  ;;  %v4998_v9 = vmul.f32 %v2397_v18, %v2385_v16 }
 0x321   : > { %v2422_v61 = vmul.f32 %v2397_v18, %v2386_v6  ;;  %v2423_v7 = vmul.f32 %v2397_v18, %v2387_v31  ;;  %v5000_v59 = vmul.f32 %v2397_v18, %v2388_v30  ;;  %v5002_v34 = vmul.f32 %v2397_v18, %v2389_v49 }
 0x322   : > { %v2426_v45 = vmul.f32 %v2397_v18, %v2390_v14  ;;  %v2427_v20 = vmul.f32 %v2397_v18, %v2391_v5  ;;  %v5011_v15 = vmul.f32 %v2397_v18, %v2392_v47  ;;  %v5013_v10 = vmul.f32 %v2397_v18, %v2393_v1 }
 0x323   : > { %v5016_v3 = vmul.f32 %v4994_v63, %v2406_v29  ;;  %v5019_v60 = vmul.f32 %v4994_v63, %v2407_v46  ;;  %v5022_v55 = vmul.f32 %v4994_v63, %v2410_v27  ;;  %v5025_v57 = vmul.f32 %v4994_v63, %v2411_v39 }
 0x324   : > { %v5028_v52 = vmul.f32 %v4994_v63, %v2414_v12  ;;  %v5031_v17 = vmul.f32 %v4994_v63, %v2415_v62  ;;  %v5034_v11 = vmul.f32 %v4994_v63, %v2418_v58  ;;  %v5037_v50 = vmul.f32 %v4994_v63, %v2419_v32 }
 0x325   : > { %v5040_v40 = vmul.f32 %v4994_v63, %v2422_v61  ;;  %v5043_v33 = vmul.f32 %v4994_v63, %v2423_v7  ;;  %v5046_v56 = vmul.f32 %v4994_v63, %v2426_v45  ;;  %v5049_v4 = vmul.f32 %v4994_v63, %v2427_v20 }
 0x326   : > { %v2441_v28 = vmul.f32 %v4994_v63, %v2402_v35  ;;  %v2442_v8 = vmul.f32 %v4994_v63, %v2403_v26  ;;  %v2437_v24 = vmul.f32 %v4994_v63, %v2398_v53  ;;  %v2438_v19 = vmul.f32 %v4994_v63, %v2399_v22 }
 0x327   : > { %v2443_v44 = vmul.f32 %v4994_v63, %v2404_v36  ;;  %v2444_v21 = vmul.f32 %v4994_v63, %v2405_v48  ;;  %v2439_v38 = vmul.f32 %v4994_v63, %v2400_v41  ;;  %v2440_v16 = vmul.f32 %v4994_v63, %v2401_v54 }
 0x328   : > { %v2480_v6 = vadd.f32 %v5054_v42, %v2441_v28  ;;  %v2481_v31 = vadd.f32 %v5054_v42, %v2442_v8  ;;  %v2476_v30 = vadd.f32 %v5054_v42, %v2437_v24  ;;  %v2477_v49 = vadd.f32 %v5054_v42, %v2438_v19 }
 0x329   : > { %v2482_v18 = vadd.f32 %v5054_v42, %v2443_v44  ;;  %v2483_v14 = vadd.f32 %v5054_v42, %v2444_v21  ;;  %v2478_v5 = vadd.f32 %v5054_v42, %v2439_v38  ;;  %v2479_v47 = vadd.f32 %v5054_v42, %v2440_v16 }
 0x32a   : > { %v2514_v1 = vmax.f32 %v2480_v6, 0.0  ;;  %v2515_v53 = vmax.f32 %v2481_v31, 0.0  ;;  %v2510_v22 = vmax.f32 %v2476_v30, 0.0  ;;  %v2511_v41 = vmax.f32 %v2477_v49, 0.0 }
 0x32b   : > { %v2516_v54 = vmax.f32 %v2482_v18, 0.0  ;;  %v2517_v35 = vmax.f32 %v2483_v14, 0.0  ;;  %v2512_v26 = vmax.f32 %v2478_v5, 0.0  ;;  %v2513_v36 = vmax.f32 %v2479_v47, 0.0 }
 0x32c   : > { %v2552_v48 = vsel %vm5007_vm2, %v2514_v1, %v2480_v6  ;;  %v2553_v29 = vsel %vm5007_vm2, %v2515_v53, %v2481_v31  ;;  %v2548_v46 = vsel %vm5007_vm2, %v2510_v22, %v2476_v30  ;;  %v2549_v27 = vsel %vm5007_vm2, %v2511_v41, %v2477_v49 }
 0x32d   : > { %2585 = vst [vmem:[%s5076_s15 + $0x28] sm:$0xff] %v2553_v29  ;;  %v3851_v39 = vpack.i.bf16 %v2553_v29, %v2552_v48  ;;  %2584 = vst [vmem:[%s5076_s15 + $0x20] sm:$0xff] %v2552_v48  ;;  %v3841_v12 = vpack.i.bf16 %v2549_v27, %v2548_v46  ;;  %v2554_v62 = vsel %vm5007_vm2, %v2516_v54, %v2482_v18 }
 0x32e   : > { %2581 = vst [vmem:[%s5076_s15 + $0x8] sm:$0xff] %v2549_v27  ;;  %2580 = vst [vmem:[%s5076_s15] sm:$0xff] %v2548_v46  ;;  %v2555_v58 = vsel %vm5007_vm2, %v2517_v35, %v2483_v14  ;;  %v2550_v61 = vsel %vm5007_vm2, %v2512_v26, %v2478_v5  ;;  %v2551_v7 = vsel %vm5007_vm2, %v2513_v36, %v2479_v47 }
 0x32f   : > { %2587 = vst [vmem:[%s5076_s15 + $0x38] sm:$0xff] %v2555_v58  ;;  %v3856_v32 = vpack.i.bf16 %v2555_v58, %v2554_v62  ;;  %2586 = vst [vmem:[%s5076_s15 + $0x30] sm:$0xff] %v2554_v62  ;;  %v2447_v45 = vmul.f32 %v4994_v63, %v4979_v0  ;;  %3852 = vrot.lane.b32.xlu1 %v3851_v39, %s4151_s26  ;;  %3842 = vrot.lane.b32.xlu0 %v3841_v12, %s4151_s26 }
 0x330   : > { %2583 = vst [vmem:[%s5076_s15 + $0x18] sm:$0xff] %v2551_v7  ;;  %v3846_v20 = vpack.i.bf16 %v2551_v7, %v2550_v61  ;;  %2582 = vst [vmem:[%s5076_s15 + $0x10] sm:$0xff] %v2550_v61  ;;  %v2448_v28 = vmul.f32 %v4994_v63, %v4981_v51  ;;  %v2484_v8 = vadd.f32 %v5054_v42, %v5016_v3 }
 0x331   : > { %v2486_v24 = vadd.f32 %v5054_v42, %v2447_v45  ;;  %v2485_v19 = vadd.f32 %v5054_v42, %v5019_v60  ;;  %v2451_v0 = vmul.f32 %v4994_v63, %v4983_v43  ;;  %v2452_v44 = vmul.f32 %v4994_v63, %v4985_v23 }
 0x332   : > { %v2487_v21 = vadd.f32 %v5054_v42, %v2448_v28  ;;  %v2518_v38 = vmax.f32 %v2484_v8, 0.0  ;;  %v2488_v51 = vadd.f32 %v5054_v42, %v5022_v55  ;;  %v2489_v3 = vadd.f32 %v5054_v42, %v5025_v57 }
 0x333   : > { %v2520_v16 = vmax.f32 %v2486_v24, 0.0  ;;  %v2519_v6 = vmax.f32 %v2485_v19, 0.0  ;;  %v2490_v60 = vadd.f32 %v5054_v42, %v2451_v0  ;;  %v2491_v43 = vadd.f32 %v5054_v42, %v2452_v44  ;;  %3857 = vrot.lane.b32.xlu1 %v3856_v32, %s4151_s26  ;;  %3847 = vrot.lane.b32.xlu0 %v3846_v20, %s4151_s26 }
 0x334   : > { %v2521_v23 = vmax.f32 %v2487_v21, 0.0  ;;  %v2556_v55 = vsel %vm5007_vm2, %v2518_v38, %v2484_v8  ;;  %v2522_v31 = vmax.f32 %v2488_v51, 0.0  ;;  %v2523_v30 = vmax.f32 %v2489_v3, 0.0 }
 0x335   : > { %v2558_v57 = vsel %vm5007_vm2, %v2520_v16, %v2486_v24  ;;  %v2557_v49 = vsel %vm5007_vm2, %v2519_v6, %v2485_v19  ;;  %2588 = vst [vmem:[%s5076_s15 + $0x40] sm:$0xff] %v2556_v55  ;;  %v2524_v18 = vmax.f32 %v2490_v60, 0.0  ;;  %v2525_v14 = vmax.f32 %v2491_v43, 0.0 }
 0x336   : > { %v2559_v5 = vsel %vm5007_vm2, %v2521_v23, %v2487_v21  ;;  %2590 = vst [vmem:[%s5076_s15 + $0x50] sm:$0xff] %v2558_v57  ;;  %2589 = vst [vmem:[%s5076_s15 + $0x48] sm:$0xff] %v2557_v49  ;;  %v3861_v47 = vpack.i.bf16 %v2557_v49, %v2556_v55  ;;  %v2560_v1 = vsel %vm5007_vm2, %v2522_v31, %v2488_v51 }
 0x337   : > { %v2561_v53 = vsel %vm5007_vm2, %v2523_v30, %v2489_v3  ;;  %2591 = vst [vmem:[%s5076_s15 + $0x58] sm:$0xff] %v2559_v5  ;;  %v3866_v22 = vpack.i.bf16 %v2559_v5, %v2558_v57  ;;  %v2562_v41 = vsel %vm5007_vm2, %v2524_v18, %v2490_v60  ;;  %v2563_v54 = vsel %vm5007_vm2, %v2525_v14, %v2491_v43 }
 0x338   : > { %2593 = vst [vmem:[%s5076_s15 + $0x68] sm:$0xff] %v2561_v53  ;;  %v3871_v35 = vpack.i.bf16 %v2561_v53, %v2560_v1  ;;  %2592 = vst [vmem:[%s5076_s15 + $0x60] sm:$0xff] %v2560_v1  ;;  %3862 = vrot.lane.b32.xlu0 %v3861_v47, %s4151_s26  ;;  %v3876_v26 = vpack.i.bf16 %v2563_v54, %v2562_v41  ;;  %v2455_v36 = vmul.f32 %v4994_v63, %v4987_v2 }
 0x339   : > { %2595 = vst [vmem:[%s5076_s15 + $0x78] sm:$0xff] %v2563_v54  ;;  %2594 = vst [vmem:[%s5076_s15 + $0x70] sm:$0xff] %v2562_v41  ;;  %v2456_v48 = vmul.f32 %v4994_v63, %v4989_v37  ;;  %v2492_v29 = vadd.f32 %v5054_v42, %v5028_v52  ;;  %3867 = vrot.lane.b32.xlu1 %v3866_v22, %s4151_s26  ;;  %v2493_v46 = vadd.f32 %v5054_v42, %v5031_v17 }
 0x33a   : > { %v2459_v27 = vmul.f32 %v4994_v63, %v4996_v25  ;;  %v2460_v39 = vmul.f32 %v4994_v63, %v4998_v9  ;;  %v2496_v2 = vadd.f32 %v5054_v42, %v5034_v11  ;;  %v2494_v37 = vadd.f32 %v5054_v42, %v2455_v36 }
 0x33b   : > { %v2495_v12 = vadd.f32 %v5054_v42, %v2456_v48  ;;  %v2526_v52 = vmax.f32 %v2492_v29, 0.0  ;;  %v2497_v62 = vadd.f32 %v5054_v42, %v5037_v50  ;;  %v2527_v58 = vmax.f32 %v2493_v46, 0.0 }
 0x33c   : > { %v2498_v17 = vadd.f32 %v5054_v42, %v2459_v27  ;;  %v2499_v25 = vadd.f32 %v5054_v42, %v2460_v39  ;;  %v2530_v32 = vmax.f32 %v2496_v2, 0.0  ;;  %3872 = vrot.lane.b32.xlu0 %v3871_v35, %s4151_s26  ;;  %v2528_v9 = vmax.f32 %v2494_v37, 0.0 }
 0x33d   : > { %v2529_v11 = vmax.f32 %v2495_v12, 0.0  ;;  %v2564_v61 = vsel %vm5007_vm2, %v2526_v52, %v2492_v29  ;;  %v2531_v7 = vmax.f32 %v2497_v62, 0.0  ;;  %3877 = vrot.lane.b32.xlu1 %v3876_v26, %s4151_s26  ;;  %v2565_v50 = vsel %vm5007_vm2, %v2527_v58, %v2493_v46 }
 0x33e   : > { %2596 = vst [vmem:[%s5076_s15 + $0x80] sm:$0xff] %v2564_v61  ;;  %v2532_v45 = vmax.f32 %v2498_v17, 0.0  ;;  %v2533_v20 = vmax.f32 %v2499_v25, 0.0  ;;  %v2568_v28 = vsel %vm5007_vm2, %v2530_v32, %v2496_v2  ;;  %v2566_v8 = vsel %vm5007_vm2, %v2528_v9, %v2494_v37  ;;  %2597 = vst [vmem:[%s5076_s15 + $0x88] sm:$0xff] %v2565_v50 }
 0x33f   : > { %v2567_v24 = vsel %vm5007_vm2, %v2529_v11, %v2495_v12  ;;  %v3881_v19 = vpack.i.bf16 %v2565_v50, %v2564_v61  ;;  %v2569_v0 = vsel %vm5007_vm2, %v2531_v7, %v2497_v62  ;;  %2600 = vst [vmem:[%s5076_s15 + $0xa0] sm:$0xff] %v2568_v28  ;;  %2598 = vst [vmem:[%s5076_s15 + $0x90] sm:$0xff] %v2566_v8 }
 0x340   : > { %2599 = vst [vmem:[%s5076_s15 + $0x98] sm:$0xff] %v2567_v24  ;;  %v3886_v44 = vpack.i.bf16 %v2567_v24, %v2566_v8  ;;  %v2570_v21 = vsel %vm5007_vm2, %v2532_v45, %v2498_v17  ;;  %v2571_v38 = vsel %vm5007_vm2, %v2533_v20, %v2499_v25  ;;  %2601 = vst [vmem:[%s5076_s15 + $0xa8] sm:$0xff] %v2569_v0 }
 0x341   : > { %v3891_v51 = vpack.i.bf16 %v2569_v0, %v2568_v28  ;;  %3882 = vrot.lane.b32.xlu0 %v3881_v19, %s4151_s26  ;;  %2603 = vst [vmem:[%s5076_s15 + $0xb8] sm:$0xff] %v2571_v38  ;;  %v3896_v3 = vpack.i.bf16 %v2571_v38, %v2570_v21  ;;  %2602 = vst [vmem:[%s5076_s15 + $0xb0] sm:$0xff] %v2570_v21  ;;  %v2463_v16 = vmul.f32 %v4994_v63, %v5000_v59 }
 0x342   : > { %v2464_v6 = vmul.f32 %v4994_v63, %v5002_v34  ;;  %v2500_v60 = vadd.f32 %v5054_v42, %v5040_v40  ;;  %3887 = vrot.lane.b32.xlu1 %v3886_v44, %s4151_s26  ;;  %v2501_v43 = vadd.f32 %v5054_v42, %v5043_v33  ;;  %v2467_v23 = vmul.f32 %v4994_v63, %v5011_v15 }
 0x343   : > { %v2468_v55 = vmul.f32 %v4994_v63, %v5013_v10  ;;  %v2504_v59 = vadd.f32 %v5054_v42, %v5046_v56  ;;  %v2502_v34 = vadd.f32 %v5054_v42, %v2463_v16  ;;  %v2505_v30 = vadd.f32 %v5054_v42, %v5049_v4 }
 0x344   : > { %v2503_v31 = vadd.f32 %v5054_v42, %v2464_v6  ;;  %v2534_v40 = vmax.f32 %v2500_v60, 0.0  ;;  %v2535_v57 = vmax.f32 %v2501_v43, 0.0  ;;  %v2506_v33 = vadd.f32 %v5054_v42, %v2467_v23 }
 0x345   : > { %v2507_v15 = vadd.f32 %v5054_v42, %v2468_v55  ;;  %v2538_v49 = vmax.f32 %v2504_v59, 0.0  ;;  %3892 = vrot.lane.b32.xlu0 %v3891_v51, %s4151_s26  ;;  %v2536_v63 = vmax.f32 %v2502_v34, 0.0  ;;  %v2539_v18 = vmax.f32 %v2505_v30, 0.0 }
 0x346   : > { %v2537_v10 = vmax.f32 %v2503_v31, 0.0  ;;  %v2572_v56 = vsel %vm5007_vm2, %v2534_v40, %v2500_v60  ;;  %3897 = vrot.lane.b32.xlu1 %v3896_v3, %s4151_s26  ;;  %v2573_v4 = vsel %vm5007_vm2, %v2535_v57, %v2501_v43  ;;  %v2540_v42 = vmax.f32 %v2506_v33, 0.0 }
 0x347   : > { %2604 = vst [vmem:[%s5076_s15 + $0xc0] sm:$0xff] %v2572_v56  ;;  %v2541_v14 = vmax.f32 %v2507_v15, 0.0  ;;  %v2576_v5 = vsel %vm5007_vm2, %v2538_v49, %v2504_v59  ;;  %v2574_v47 = vsel %vm5007_vm2, %v2536_v63, %v2502_v34  ;;  %2605 = vst [vmem:[%s5076_s15 + $0xc8] sm:$0xff] %v2573_v4  ;;  %v3901_v53 = vpack.i.bf16 %v2573_v4, %v2572_v56 }
 0x348   : > { %v2575_v1 = vsel %vm5007_vm2, %v2537_v10, %v2503_v31  ;;  %v2577_v22 = vsel %vm5007_vm2, %v2539_v18, %v2505_v30  ;;  %2608 = vst [vmem:[%s5076_s15 + $0xe0] sm:$0xff] %v2576_v5  ;;  %2606 = vst [vmem:[%s5076_s15 + $0xd0] sm:$0xff] %v2574_v47  ;;  %v2578_v54 = vsel %vm5007_vm2, %v2540_v42, %v2506_v33 }
 0x349   : > { %2607 = vst [vmem:[%s5076_s15 + $0xd8] sm:$0xff] %v2575_v1  ;;  %v3906_v41 = vpack.i.bf16 %v2575_v1, %v2574_v47  ;;  %v2579_v35 = vsel %vm5007_vm2, %v2541_v14, %v2507_v15  ;;  %2609 = vst [vmem:[%s5076_s15 + $0xe8] sm:$0xff] %v2577_v22  ;;  %v3911_v26 = vpack.i.bf16 %v2577_v22, %v2576_v5  ;;  %3902 = vrot.lane.b32.xlu0 %v3901_v53, %s4151_s26 }
 0x34a   : > { %2611 = vst [vmem:[%s5076_s15 + $0xf8] sm:$0xff] %v2579_v35  ;;  %v3916_v36 = vpack.i.bf16 %v2579_v35, %v2578_v54  ;;  %2610 = vst [vmem:[%s5076_s15 + $0xf0] sm:$0xff] %v2578_v54 }
 0x34b   : > { %3907 = vrot.lane.b32.xlu1 %v3906_v41, %s4151_s26 }
 0x34d   : > { %3912 = vrot.lane.b32.xlu0 %v3911_v26, %s4151_s26 }
 0x34f   : > { %3917 = vrot.lane.b32.xlu1 %v3916_v36, %s4151_s26 }
 0x3a1   : > { %v3853_v48 = vpop.permute.xlu1 %3852  ;;  %v3843_v29 = vpop.permute.xlu0 %3842 }
 0x3a2   : > { %v3855_v46 = vunpack.i.h.bf16 %v3853_v48  ;;  %v3854_v27 = vunpack.i.l.bf16 %v3853_v48  ;;  %v3845_v13 = vunpack.i.h.bf16 %v3843_v29  ;;  %v3844_v39 = vunpack.i.l.bf16 %v3843_v29 }
 0x3a4   : > { %v3185_v2 = vpack.c.bf16 %v3855_v46, %v3854_v27  ;;  %v3175_v37 = vpack.c.bf16 %v3845_v13, %v3844_v39 }
 0x3a5   : > { %v3858_v12 = vpop.permute.xlu1 %3857  ;;  %v3848_v52 = vpop.permute.xlu0 %3847 }
 0x3a6   : > { %3253 = vst [vmem:[%s5254_s19 + $0x10] sm:$0xff] %v3185_v2   ;;  %3176 = vst [vmem:[%s5254_s19] sm:$0xff] %v3175_v37   ;;  %v3860_v62 = vunpack.i.h.bf16 %v3858_v12  ;;  %v3859_v58 = vunpack.i.l.bf16 %v3858_v12  ;;  %v3850_v17 = vunpack.i.h.bf16 %v3848_v52  ;;  %v3849_v25 = vunpack.i.l.bf16 %v3848_v52 }
 0x3a8   : > { %v3190_v32 = vpack.c.bf16 %v3860_v62, %v3859_v58  ;;  %v3180_v9 = vpack.c.bf16 %v3850_v17, %v3849_v25 }
 0x3aa   : > { %v3863_v11 = vpop.permute.xlu0 %3862  ;;  %3254 = vst [vmem:[%s5254_s19 + $0x18] sm:$0xff] %v3190_v32   ;;  %3252 = vst [vmem:[%s5254_s19 + $0x8] sm:$0xff] %v3180_v9  }
 0x3ab   : > { %v3868_v61 = vpop.permute.xlu1 %3867  ;;  %v3865_v7 = vunpack.i.h.bf16 %v3863_v11  ;;  %v3864_v50 = vunpack.i.l.bf16 %v3863_v11 }
 0x3ac   : > { %v3870_v45 = vunpack.i.h.bf16 %v3868_v61  ;;  %v3869_v20 = vunpack.i.l.bf16 %v3868_v61 }
 0x3ad   : > { %v3195_v28 = vpack.c.bf16 %v3865_v7, %v3864_v50 }
 0x3ae   : > { %v3200_v8 = vpack.c.bf16 %v3870_v45, %v3869_v20  ;;  %v3873_v24 = vpop.permute.xlu0 %3872 }
 0x3af   : > { %3255 = vst [vmem:[%s5254_s19 + $0x20] sm:$0xff] %v3195_v28   ;;  %v3878_v19 = vpop.permute.xlu1 %3877  ;;  %v3875_v0 = vunpack.i.h.bf16 %v3873_v24  ;;  %v3874_v44 = vunpack.i.l.bf16 %v3873_v24 }
 0x3b0   : > { %3256 = vst [vmem:[%s5254_s19 + $0x28] sm:$0xff] %v3200_v8   ;;  %v3880_v21 = vunpack.i.h.bf16 %v3878_v19  ;;  %v3879_v38 = vunpack.i.l.bf16 %v3878_v19 }
 0x3b1   : > { %v3205_v51 = vpack.c.bf16 %v3875_v0, %v3874_v44 }
 0x3b2   : > { %v3210_v3 = vpack.c.bf16 %v3880_v21, %v3879_v38 }
 0x3b3   : > { %v3883_v16 = vpop.permute.xlu0 %3882  ;;  %3257 = vst [vmem:[%s5254_s19 + $0x30] sm:$0xff] %v3205_v51  }
 0x3b4   : > { %v3888_v6 = vpop.permute.xlu1 %3887  ;;  %v3885_v60 = vunpack.i.h.bf16 %v3883_v16  ;;  %v3884_v43 = vunpack.i.l.bf16 %v3883_v16  ;;  %3258 = vst [vmem:[%s5254_s19 + $0x38] sm:$0xff] %v3210_v3  }
 0x3b5   : > { %v3890_v23 = vunpack.i.h.bf16 %v3888_v6  ;;  %v3889_v55 = vunpack.i.l.bf16 %v3888_v6 }
 0x3b6   : > { %v3215_v59 = vpack.c.bf16 %v3885_v60, %v3884_v43 }
 0x3b7   : > { %v3220_v34 = vpack.c.bf16 %v3890_v23, %v3889_v55  ;;  %v3893_v31 = vpop.permute.xlu0 %3892 }
 0x3b8   : > { %3259 = vst [vmem:[%s5254_s19 + $0x40] sm:$0xff] %v3215_v59   ;;  %v3898_v40 = vpop.permute.xlu1 %3897  ;;  %v3895_v30 = vunpack.i.h.bf16 %v3893_v31  ;;  %v3894_v57 = vunpack.i.l.bf16 %v3893_v31 }
 0x3b9   : > { %3260 = vst [vmem:[%s5254_s19 + $0x48] sm:$0xff] %v3220_v34   ;;  %v3900_v33 = vunpack.i.h.bf16 %v3898_v40  ;;  %v3899_v15 = vunpack.i.l.bf16 %v3898_v40 }
 0x3ba   : > { %v3225_v49 = vpack.c.bf16 %v3895_v30, %v3894_v57 }
 0x3bb   : > { %v3230_v63 = vpack.c.bf16 %v3900_v33, %v3899_v15  ;;  %v3903_v10 = vpop.permute.xlu0 %3902 }
 0x3bc   : > { %3261 = vst [vmem:[%s5254_s19 + $0x50] sm:$0xff] %v3225_v49   ;;  %v3905_v18 = vunpack.i.h.bf16 %v3903_v10  ;;  %v3904_v4 = vunpack.i.l.bf16 %v3903_v10 }
 0x3bd   : > { %v3908_v56 = vpop.permute.xlu1 %3907  ;;  %3262 = vst [vmem:[%s5254_s19 + $0x58] sm:$0xff] %v3230_v63  }
 0x3be   : > { %v3910_v42 = vunpack.i.h.bf16 %v3908_v56  ;;  %v3909_v14 = vunpack.i.l.bf16 %v3908_v56  ;;  %v3235_v5 = vpack.c.bf16 %v3905_v18, %v3904_v4 }
 0x3bf   : > { %v3913_v1 = vpop.permute.xlu0 %3912 }
 0x3c0   : > { %v3240_v47 = vpack.c.bf16 %v3910_v42, %v3909_v14  ;;  %3263 = vst [vmem:[%s5254_s19 + $0x60] sm:$0xff] %v3235_v5   ;;  %v3915_v22 = vunpack.i.h.bf16 %v3913_v1  ;;  %v3914_v41 = vunpack.i.l.bf16 %v3913_v1 }
 0x3c1   : > { %v3918_v53 = vpop.permute.xlu1 %3917 }
 0x3c2   : > { %3264 = vst [vmem:[%s5254_s19 + $0x68] sm:$0xff] %v3240_v47   ;;  %v3920_v54 = vunpack.i.h.bf16 %v3918_v53  ;;  %v3919_v35 = vunpack.i.l.bf16 %v3918_v53  ;;  %v3245_v26 = vpack.c.bf16 %v3915_v22, %v3914_v41 }
 0x3c4   : > { %v3250_v36 = vpack.c.bf16 %v3920_v54, %v3919_v35  ;;  %3265 = vst [vmem:[%s5254_s19 + $0x70] sm:$0xff] %v3245_v26  }
 0x3c6   : > { %3266 = vst [vmem:[%s5254_s19 + $0x78] sm:$0xff] %v3250_v36  }
 0x3c7 PF: > { %s18_s24 = sadd.s32 1, %s4145_s24  }
 0x3c8   : > { %p15_p4 = scmp.ge.s32.totalorder %s18_s24, 4  }
 0x3ca   :  { %17 = sbr.rel (!%p15_p4) target bundleno = 1 (0x1), region = 86 }

// kernel: upsampling_forward.3
= control target key start
LH: loop header
LB: loop body
LE: loop exit
PB: predicated region body
PF: predicated region fallthrough
CT: control target
= control target key end

     0   :  { %11 = vsyncpa [#allocation3], 0  ;;  %s3159_s0 = inlined_call_operand.vmem [shape: bf16[2,256,384], index: 0, kind: input, shape index: {}]   ;;  %s3160_s1 = inlined_call_operand.vmem [shape: bf16[384,128], index: 1, kind: input, shape index: {}]   ;;  %s3161_s2 = inlined_call_operand.vmem [shape: f32[128,128], index: 2, kind: input, shape index: {}]   ;;  %s3162_s3 = inlined_call_operand.vmem [shape: f32[1,128], index: 3, kind: input, shape index: {}]   ;;  %s3163_s4 = inlined_call_operand.vmem [shape: f32[1,128], index: 4, kind: input, shape index: {}]   ;;  %s3164_s5 = inlined_call_operand.vmem [shape: f32[2,256,128], index: 5, kind: input, shape index: {}]   ;;  %s3165_s6 = inlined_call_operand.hbm [shape: f32[2,256,128], index: 6, kind: output, shape index: {}]  }
   0x1   :  { %13 = vsyncpa [#allocation3 + $0x1], 0  ;;  %s2405_s21 = smov 0   ;;  %s2407_s22 = smov 0  }
   0x2   :  { %s2409_s23 = smov 0   ;;  %s2411_s24 = smov 0  }
   0x3 LB: > { %s2426_s25 = sadd.s32 4294967295, %s2362_s24   ;;  %s1740_s26 = sadd.s32 4294967294, %s2362_s24   ;;  %s2362_s24 = sphi %s2411_s24, %s3171_s24   ;;  %s2358_s23 = sphi %s2409_s23, %s3170_s23   ;;  %s2354_s22 = sphi %s2407_s22, %s3169_s22   ;;  %s2350_s21 = sphi %s2405_s21, %s3168_s21  }
   0x4   : > { %s2430_s27 = sadd.s32 1, %s2362_s24   ;;  %s162_s28 = sadd.s32 1, %s2358_s23 }
   0x5   : > { %s159_s29 = ssub.s32 %s2362_s24, %s2430_s27  ;;  %p172_p0 = scmp.ne.s32.totalorder %s2358_s23, %s2354_s22 }
   0x6   : > { %p160_p1 = scmp.eq.s32.totalorder %s159_s29, 0  ;;  %p173_p2 = scmp.eq.s32.totalorder %s2426_s25, 1 }
   0x7   : > { %p178_p3 = scmp.ne.s32.totalorder %s2354_s22, %s2350_s21  ;;  %p179_p4 = scmp.eq.s32.totalorder %s1740_s26, 1 }
   0x8   : > { %s2441_s30 = scalar_select %p160_p1, %s2358_s23, %s162_s28  }
   0x9   : > { %p2443_p5 = por %p173_p2, %p172_p0  ;;  %p2447_p6 = por %p179_p4, %p178_p3 }
   0xa   : > { %p1743_p7 = scmp.ge.s32.totalorder %s2362_s24, 1  ;;  %p225_p8 = scmp.lt.s32.totalorder %s2362_s24, 3 }
   0xc   : > { %p226_p9 = pnand %p1743_p7, %p225_p8 }
   0xd   : > { %v2210_v0 = vld [vmem:[%s3160_s1 + $0x40] sm:$0xff] (!%p226_p9)   ;;  %v2213_v3 = vld [vmem:[%s3160_s1 + $0x48] sm:$0xff] (!%p226_p9)   ;;  %v2216_v6 = vld [vmem:[%s3160_s1 + $0x50] sm:$0xff] (!%p226_p9)   ;;  %p260_p10 = scmp.lt.s32.totalorder (!%p226_p9), %s2426_s25, 1  ;;  %vm2365_vm0 = vmmov (!%p226_p9), 0   ;;  %s257_s16 = sand.u32 (!%p226_p9), 1, %s2354_s22  }
   0xe   : > { %229 = sbr.rel (%p226_p9) target bundleno = 728 (0x2d8), region = 44  ;;  %v2211_v1 = vld [vmem:[%s3160_s1] sm:$0xff] (!%p226_p9)   ;;  %1829 = vmatprep.subr.bf16.mxu0 (!%p226_p9), %v2210_v0  ;;  %v2214_v4 = vld [vmem:[%s3160_s1 + $0x8] sm:$0xff] (!%p226_p9)   ;;  %v2217_v7 = vld [vmem:[%s3160_s1 + $0x10] sm:$0xff] (!%p226_p9)   ;;  %s1828_s18 = sshll.u32 (!%p226_p9), %s2426_s25, 12 }
   0xf   : > { %v2212_v2 = vld [vmem:[%s3160_s1 + $0x80] sm:$0xff] (!%p226_p9)   ;;  %1830 = vmatpush3.bf16.msra.mxu0 (!%p226_p9), %v2211_v1  ;;  %v2215_v5 = vld [vmem:[%s3160_s1 + $0x88] sm:$0xff] (!%p226_p9)   ;;  %v2218_v8 = vld [vmem:[%s3160_s1 + $0x90] sm:$0xff] (!%p226_p9)   ;;  %s3096_s26 = scalar_lea.hbm (!%p226_p9), %s3165_s6, %s1828_s18  ;;  %s3118_s29 = scalar_lea.sflag (!%p226_p9), [#allocation3], %s257_s16 }
  0x10   : > { %1999 = vmatprep.subr.bf16.mxu1 (!%p226_p9), %v2212_v2  ;;  %1831 = vmatprep.subr.bf16.mxu0 (!%p226_p9), %v2213_v3  ;;  %v2219_v9 = vld [vmem:[%s3160_s1 + $0x58] sm:$0xff] (!%p226_p9)   ;;  %v2222_v12 = vld [vmem:[%s3160_s1 + $0x60] sm:$0xff] (!%p226_p9)   ;;  %v2225_v15 = vld [vmem:[%s3160_s1 + $0x68] sm:$0xff] (!%p226_p9)  }
  0x11   : > { %2000 = vmatpush3.bf16.msra.mxu1 (!%p226_p9), %v2212_v2  ;;  %v2220_v10 = vld [vmem:[%s3160_s1 + $0x18] sm:$0xff] (!%p226_p9)   ;;  %v2224_v13 = vld [vmem:[%s3160_s1 + $0xa0] sm:$0xff] (!%p226_p9)   ;;  %v2227_v16 = vld [vmem:[%s3160_s1 + $0xa8] sm:$0xff] (!%p226_p9)  }
  0x12   : > { %2001 = vmatprep.subr.bf16.mxu1 (!%p226_p9), %v2215_v5  ;;  %v2221_v11 = vld [vmem:[%s3160_s1 + $0x98] sm:$0xff] (!%p226_p9)   ;;  %v2223_v14 = vld [vmem:[%s3160_s1 + $0x20] sm:$0xff] (!%p226_p9)   ;;  %v2226_v17 = vld [vmem:[%s3160_s1 + $0x28] sm:$0xff] (!%p226_p9)  }
  0x13   : > { %1832 = vmatpush3.bf16.msra.mxu0 (!%p226_p9), %v2214_v4  ;;  %v2228_v18 = vld [vmem:[%s3160_s1 + $0x70] sm:$0xff] (!%p226_p9)   ;;  %v2231_v21 = vld [vmem:[%s3160_s1 + $0x78] sm:$0xff] (!%p226_p9)  }
  0x14   : > { %1833 = vmatprep.subr.bf16.mxu0 (!%p226_p9), %v2216_v6  ;;  %v2229_v19 = vld [vmem:[%s3160_s1 + $0x30] sm:$0xff] (!%p226_p9)   ;;  %v2233_v22 = vld [vmem:[%s3160_s1 + $0xb8] sm:$0xff] (!%p226_p9)  }
  0x15   : > { %2002 = vmatpush3.bf16.msra.mxu1 %v2215_v5  ;;  %s2497_s28 = scalar_select %p260_p10, %s2426_s25, 1  ;;  %v2230_v20 = vld [vmem:[%s3160_s1 + $0xb0] sm:$0xff]   ;;  %v2232_v25 = vld [vmem:[%s3160_s1 + $0x38] sm:$0xff]  }
  0x16   : > { %2003 = vmatprep.subr.bf16.mxu1 %v2218_v8 }
  0x17   : > { %1834 = vmatpush3.bf16.msra.mxu0 %v2217_v7  ;;  %s2165_s14 = smul.u32 384, %s2497_s28  ;;  %s1827_s10 = sshll.u32 %s2497_s28, 8 }
  0x18   : > { %1835 = vmatprep.subr.bf16.mxu0 %v2219_v9  ;;  %v2364_v9 = vmov 0.0|0.0   ;;  %s2973_s28 = scalar_lea.vmem %s3164_s5, %s1827_s10  ;;  %s2367_s10 = smov [#allocation2]  }
  0x19   : > { %2004 = vmatpush3.bf16.msra.mxu1 %v2218_v8  ;;  %s2524_s11 = scalar_lea.vmem %s3159_s0, %s2165_s14  ;;  %v1105_v8 = vld [vmem:[%s3161_s2] sm:$0xff]  ;;  %s3015_s14 = sshll.u32 %s257_s16, 8 }
  0x1a   : > { %2005 = vmatprep.subr.bf16.mxu1 %v2221_v11  ;;  %v2236_v23 = vld [vmem:[%s2524_s11 + $0x4] ss:$12 sps:$4 sm:$0xff]   ;;  %v2237_v24 = vld [vmem:[%s2524_s11 + $0x8] ss:$12 sps:$4 sm:$0xff]   ;;  %v2234_v26 = vld [vmem:[%s2524_s11] ss:$12 sps:$4 sm:$0xff]  }
  0x1b   : > { %1836 = vmatpush3.bf16.msra.mxu0 %v2220_v10  ;;  %815 = vmatprep.mubr.bf16.mxu0 %v2236_v23  ;;  %v2239_v27 = vld [vmem:[%s2524_s11 + $0x1c] ss:$12 sps:$4 sm:$0xff]   ;;  %v2238_v28 = vld [vmem:[%s2524_s11 + $0x20] ss:$12 sps:$4 sm:$0xff]   ;;  %v2245_v29 = vld [vmem:[%s2524_s11 + $0x38] ss:$12 sps:$4 sm:$0xff]  }
  0x1c   : > { %1837 = vmatprep.subr.bf16.mxu0 %v2222_v12  ;;  %2015 = vmatprep.mubr.bf16.mxu1 %v2237_v24  ;;  %v2241_v30 = vld [vmem:[%s2524_s11 + $0x18] ss:$12 sps:$4 sm:$0xff]   ;;  %v2242_v31 = vld [vmem:[%s2524_s11 + $0x34] ss:$12 sps:$4 sm:$0xff]   ;;  %v2246_v32 = vld [vmem:[%s2524_s11 + $0x50] ss:$12 sps:$4 sm:$0xff]  }
  0x1d   : > { %2006 = vmatpush3.bf16.msra.mxu1 %v2221_v11  ;;  %v2253_v33 = vld [vmem:[%s2524_s11 + $0x68] ss:$12 sps:$4 sm:$0xff]   ;;  %v2244_v34 = vld [vmem:[%s2524_s11 + $0x30] ss:$12 sps:$4 sm:$0xff]   ;;  %v2247_v35 = vld [vmem:[%s2524_s11 + $0x4c] ss:$12 sps:$4 sm:$0xff]  }
  0x1e   : > { %2007 = vmatprep.subr.bf16.mxu1 %v2224_v13  ;;  %v2254_v36 = vld [vmem:[%s2524_s11 + $0x80] ss:$12 sps:$4 sm:$0xff]   ;;  %v2261_v37 = vld [vmem:[%s2524_s11 + $0x98] ss:$12 sps:$4 sm:$0xff]   ;;  %v2249_v38 = vld [vmem:[%s2524_s11 + $0x48] ss:$12 sps:$4 sm:$0xff]  }
  0x1f   : > { %1838 = vmatpush3.bf16.msra.mxu0 %v2223_v14  ;;  %v2250_v39 = vld [vmem:[%s2524_s11 + $0x64] ss:$12 sps:$4 sm:$0xff]   ;;  %v2269_v41 = vld [vmem:[%s2524_s11 + $0xc8] ss:$12 sps:$4 sm:$0xff]   ;;  %v2252_v42 = vld [vmem:[%s2524_s11 + $0x60] ss:$12 sps:$4 sm:$0xff]  }
  0x20   : > { %1839 = vmatprep.subr.bf16.mxu0 %v2225_v15  ;;  %v2262_v40 = vld [vmem:[%s2524_s11 + $0xb0] ss:$12 sps:$4 sm:$0xff]   ;;  %v2270_v44 = vld [vmem:[%s2524_s11 + $0xe0] ss:$12 sps:$4 sm:$0xff]   ;;  %v2277_v45 = vld [vmem:[%s2524_s11 + $0xf8] ss:$12 sps:$4 sm:$0xff]  }
  0x21   : > { %2008 = vmatpush3.bf16.msra.mxu1 %v2224_v13  ;;  %v2255_v43 = vld [vmem:[%s2524_s11 + $0x7c] ss:$12 sps:$4 sm:$0xff]   ;;  %v2257_v46 = vld [vmem:[%s2524_s11 + $0x78] ss:$12 sps:$4 sm:$0xff]   ;;  %v2258_v47 = vld [vmem:[%s2524_s11 + $0x94] ss:$12 sps:$4 sm:$0xff]  }
  0x22   : > { %2009 = vmatprep.subr.bf16.mxu1 %v2227_v16  ;;  %v2278_v48 = vld [vmem:[%s2524_s11 + $0x110] ss:$12 sps:$4 sm:$0xff]   ;;  %v2285_v49 = vld [vmem:[%s2524_s11 + $0x128] ss:$12 sps:$4 sm:$0xff]   ;;  %v2263_v51 = vld [vmem:[%s2524_s11 + $0xac] ss:$12 sps:$4 sm:$0xff]  }
  0x23   : > { %1840 = vmatpush3.bf16.msra.mxu0 %v2226_v17  ;;  %v2260_v50 = vld [vmem:[%s2524_s11 + $0x90] ss:$12 sps:$4 sm:$0xff]   ;;  %v2286_v52 = vld [vmem:[%s2524_s11 + $0x140] ss:$12 sps:$4 sm:$0xff]   ;;  %v2293_v53 = vld [vmem:[%s2524_s11 + $0x158] ss:$12 sps:$4 sm:$0xff]  }
  0x24   : > { %1841 = vmatprep.subr.bf16.mxu0 %v2228_v18  ;;  %v2265_v54 = vld [vmem:[%s2524_s11 + $0xa8] ss:$12 sps:$4 sm:$0xff]   ;;  %v2266_v55 = vld [vmem:[%s2524_s11 + $0xc4] ss:$12 sps:$4 sm:$0xff]   ;;  %v2268_v57 = vld [vmem:[%s2524_s11 + $0xc0] ss:$12 sps:$4 sm:$0xff]  }
  0x25   : > { %2010 = vmatpush3.bf16.msra.mxu1 %v2227_v16  ;;  %v2294_v56 = vld [vmem:[%s2524_s11 + $0x170] ss:$12 sps:$4 sm:$0xff]   ;;  %v2273_v59 = vld [vmem:[%s2524_s11 + $0xd8] ss:$12 sps:$4 sm:$0xff]   ;;  %v2274_v60 = vld [vmem:[%s2524_s11 + $0xf4] ss:$12 sps:$4 sm:$0xff]  }
  0x26   : > { %2011 = vmatprep.subr.bf16.mxu1 %v2230_v20  ;;  %v2271_v58 = vld [vmem:[%s2524_s11 + $0xdc] ss:$12 sps:$4 sm:$0xff]   ;;  %v2279_v62 = vld [vmem:[%s2524_s11 + $0x10c] ss:$12 sps:$4 sm:$0xff]   ;;  %v2282_v0 = vld [vmem:[%s2524_s11 + $0x124] ss:$12 sps:$4 sm:$0xff]  }
  0x27   : > { %1842 = vmatpush3.bf16.msra.mxu0 %v2229_v19  ;;  %v2276_v61 = vld [vmem:[%s2524_s11 + $0xf0] ss:$12 sps:$4 sm:$0xff]   ;;  %v2281_v63 = vld [vmem:[%s2524_s11 + $0x108] ss:$12 sps:$4 sm:$0xff]   ;;  %v2284_v1 = vld [vmem:[%s2524_s11 + $0x120] ss:$12 sps:$4 sm:$0xff]  }
  0x28   : > { %1843 = vmatprep.subr.bf16.mxu0 %v2231_v21  ;;  %v2287_v2 = vld [vmem:[%s2524_s11 + $0x13c] ss:$12 sps:$4 sm:$0xff]   ;;  %v2289_v3 = vld [vmem:[%s2524_s11 + $0x138] ss:$12 sps:$4 sm:$0xff]   ;;  %v2290_v4 = vld [vmem:[%s2524_s11 + $0x154] ss:$12 sps:$4 sm:$0xff]  }
  0x29   : > { %2012 = vmatpush3.bf16.msra.mxu1 %v2230_v20  ;;  %v2292_v5 = vld [vmem:[%s2524_s11 + $0x150] ss:$12 sps:$4 sm:$0xff]   ;;  %v2295_v6 = vld [vmem:[%s2524_s11 + $0x16c] ss:$12 sps:$4 sm:$0xff]   ;;  %v2297_v7 = vld [vmem:[%s2524_s11 + $0x168] ss:$12 sps:$4 sm:$0xff]  }
  0x2a   : > { %2013 = vmatprep.subr.bf16.mxu1 %v2233_v22  ;;  %v1106_v10 = vld [vmem:[%s3161_s2 + $0x8] sm:$0xff]  ;;  %v1107_v12 = vld [vmem:[%s3161_s2 + $0x10] sm:$0xff]  ;;  %v1108_v13 = vld [vmem:[%s3161_s2 + $0x18] sm:$0xff]  ;;  %s3053_s17 = scalar_lea.vmem [#allocation2], %s3015_s14  ;;  %s2304_s11 = sshll.u32 %s2367_s10, 4  ;;  %s2305_s11 = int_to_ptr.vmem [resolvable:$false] %s2304_s11 }
  0x2b   : > { %1844 = vmatpush3.bf16.msra.mxu0 %v2232_v25  ;;  %v2590_v11 = vpack.c.bf16 %v1106_v10, %v1105_v8  ;;  %v2600_v14 = vpack.c.bf16 %v1108_v13, %v1107_v12  ;;  %v1109_v15 = vld [vmem:[%s3161_s2 + $0x20] sm:$0xff]  ;;  %v1110_v16 = vld [vmem:[%s3161_s2 + $0x28] sm:$0xff]  ;;  %v1111_v18 = vld [vmem:[%s3161_s2 + $0x30] sm:$0xff]  ;;  %s1666_s19 = sshll.u32 %s3053_s17, 4  ;;  %s2306_s12 = scalar_lea.vmem %s2305_s11, 8192  ;;  %s3098_s19 = int_to_ptr.vmem [resolvable:$true] %s1666_s19 }
  0x2c   : > { %v2610_v17 = vpack.c.bf16 %v1110_v16, %v1109_v15  ;;  %v1112_v19 = vld [vmem:[%s3161_s2 + $0x38] sm:$0xff]  ;;  %v1113_v21 = vld [vmem:[%s3161_s2 + $0x40] sm:$0xff]  ;;  %v1115_v24 = vld [vmem:[%s3161_s2 + $0x50] sm:$0xff]  ;;  %s2300_s9 = scalar_lea.vmem %s3098_s19, 4096  ;;  %p2307_p0 = scmp.lt.s32.totalorder %s3098_s19, %s2305_s11 }
  0x2d   : > { %2014 = vmatpush3.bf16.msra.mxu1 %v2233_v22  ;;  %v2620_v20 = vpack.c.bf16 %v1112_v19, %v1111_v18  ;;  %v1114_v22 = vld [vmem:[%s3161_s2 + $0x48] sm:$0xff]  ;;  %v1116_v25 = vld [vmem:[%s3161_s2 + $0x58] sm:$0xff]  ;;  %p2301_p11 = scmp.ne.s32.totalorder %s3098_s19, %s2300_s9  ;;  %p2308_p1 = scmp.lt.s32.totalorder %s2306_s12, %s2300_s9 }
  0x2e   : > { %816 = vmatmul.mubr.bf16.vlgmr.msra.gmra.mrb[0].mxu0 %v2234_v26  ;;  %2117 = vmatprep.subr.bf16.mxu1 %v2364_v9  ;;  %v2630_v23 = vpack.c.bf16 %v1114_v22, %v1113_v21  ;;  %v2640_v26 = vpack.c.bf16 %v1116_v25, %v1115_v24 }
  0x2f   : > { %823 = vmatprep.mubr.bf16.mxu0 %v2239_v27  ;;  %p2302_p12 = pnand %p2301_p11, %p2443_p5  ;;  %p2309_p2 = por %p2308_p1, %p2307_p0 }
  0x30   : > { %2016 = vmatmul.mubr.bf16.vlgmr.msra.gmra.mrb[0].mxu1 %v2238_v28 }
  0x31   : > { %2019 = vmatprep.mubr.bf16.mxu1 %v2245_v29  ;;  %2119 = vmatpush3.bf16.msra.mxu1 %v2590_v11  ;;  %p2303_p13 = pneg %p2302_p12 }
  0x32   : > { %2120 = vmatprep.subr.bf16.mxu1 %v2364_v9 }
  0x33   : > { %p2310_p3 = pnand %p2309_p2, %p2303_p13 }
  0x35   : > { %2122 = vmatpush3.bf16.msra.mxu1 %v2600_v14 }
  0x36   : > { %824 = vmatmul.mubr.bf16.gmra.mrb[4].mxu0 %v2241_v30  ;;  %2123 = vmatprep.subr.bf16.mxu1 %v2364_v9 }
  0x37   : > { %831 = vmatprep.mubr.bf16.mxu0 %v2242_v31 }
  0x38   : > { %2020 = vmatmul.mubr.bf16.gmra.mrb[4].mxu1 %v2246_v32 }
  0x39   : > { %2023 = vmatprep.mubr.bf16.mxu1 %v2253_v33  ;;  %2125 = vmatpush3.bf16.msra.mxu1 %v2610_v17 }
  0x3a   : > { %2126 = vmatprep.subr.bf16.mxu1 %v2364_v9 }
  0x3d   : > { %2128 = vmatpush3.bf16.msra.mxu1 %v2620_v20 }
  0x3e   : > { %832 = vmatmul.mubr.bf16.gmra.mrb[8].mxu0 %v2244_v34  ;;  %2129 = vmatprep.subr.bf16.mxu1 %v2364_v9  ;;  %v1117_v34 = vld [vmem:[%s3161_s2 + $0x60] sm:$0xff] }
  0x3f   : > { %839 = vmatprep.mubr.bf16.mxu0 %v2247_v35  ;;  %v1118_v35 = vld [vmem:[%s3161_s2 + $0x68] sm:$0xff] }
  0x40   : > { %2024 = vmatmul.mubr.bf16.gmra.mrb[8].mxu1 %v2254_v36 }
  0x41   : > { %2027 = vmatprep.mubr.bf16.mxu1 %v2261_v37  ;;  %2131 = vmatpush3.bf16.msra.mxu1 %v2630_v23 }
  0x42   : > { %2132 = vmatprep.subr.bf16.mxu1 %v2364_v9 }
  0x45   : > { %2134 = vmatpush3.bf16.msra.mxu1 %v2640_v26 }
  0x46   : > { %840 = vmatmul.mubr.bf16.gmra.mrb[12].mxu0 %v2249_v38  ;;  %2135 = vmatprep.subr.bf16.mxu1 %v2364_v9 }
  0x47   : > { %847 = vmatprep.mubr.bf16.mxu0 %v2250_v39  ;;  %v2652_v39 = vpack.c.bf16 %v1118_v35, %v1117_v34 }
  0x48   : > { %2028 = vmatmul.mubr.bf16.gmra.mrb[12].mxu1 %v2262_v40 }
  0x49   : > { %2031 = vmatprep.mubr.bf16.mxu1 %v2269_v41  ;;  %2137 = vmatpush3.bf16.msra.mxu1 %v2652_v39 }
  0x4a   : > { %2138 = vmatprep.subr.bf16.mxu1 %v2364_v9 }
  0x4e   : > { %848 = vmatmul.mubr.bf16.gmra.mrb[16].mxu0 %v2252_v42  ;;  %v1119_v42 = vld [vmem:[%s3161_s2 + $0x70] sm:$0xff] }
  0x4f   : > { %855 = vmatprep.mubr.bf16.mxu0 %v2255_v43  ;;  %v1120_v43 = vld [vmem:[%s3161_s2 + $0x78] sm:$0xff] }
  0x50   : > { %2032 = vmatmul.mubr.bf16.gmra.mrb[16].mxu1 %v2270_v44 }
  0x51   : > { %2035 = vmatprep.mubr.bf16.mxu1 %v2277_v45  ;;  %v2664_v45 = vpack.c.bf16 %v1120_v43, %v1119_v42 }
  0x53   : > { %2140 = vmatpush3.bf16.msra.mxu1 %v2664_v45 }
  0x54   : > { %2141 = vmatprep.subr.bf16.mxu1 %v2364_v9 }
  0x56   : > { %856 = vmatmul.mubr.bf16.gmra.mrb[20].mxu0 %v2257_v46 }
  0x57   : > { %863 = vmatprep.mubr.bf16.mxu0 %v2258_v47 }
  0x58   : > { %2036 = vmatmul.mubr.bf16.gmra.mrb[20].mxu1 %v2278_v48 }
  0x59   : > { %2039 = vmatprep.mubr.bf16.mxu1 %v2285_v49 }
  0x5e   : > { %864 = vmatmul.mubr.bf16.gmra.mrb[24].mxu0 %v2260_v50 }
  0x5f   : > { %871 = vmatprep.mubr.bf16.mxu0 %v2263_v51 }
  0x60   : > { %2040 = vmatmul.mubr.bf16.gmra.mrb[24].mxu1 %v2286_v52  ;;  %v2366_v52 = vmov 0.0  }
  0x61   : > { %2043 = vmatprep.mubr.bf16.mxu1 %v2293_v53 }
  0x66   : > { %872 = vmatmul.mubr.bf16.gmra.mrb[28].mxu0 %v2265_v54 }
  0x67   : > { %879 = vmatprep.mubr.bf16.mxu0 %v2266_v55 }
  0x68   : > { %2044 = vmatmul.mubr.bf16.gmra.mrb[28].mxu1 %v2294_v56 }
  0x69   : > { %2079 = vmatprep.mubr.msk.f32.mxu1 %vm2365_vm0, %v2366_v52 }
  0x6e   : > { %880 = vmatmul.mubr.bf16.gmra.mrb[32].mxu0 %v2268_v57 }
  0x6f   : > { %887 = vmatprep.mubr.bf16.mxu0 %v2271_v58 }
  0x76   : > { %888 = vmatmul.mubr.bf16.gmra.mrb[36].mxu0 %v2273_v59 }
  0x77   : > { %895 = vmatprep.mubr.bf16.mxu0 %v2274_v60 }
  0x7e   : > { %896 = vmatmul.mubr.bf16.gmra.mrb[40].mxu0 %v2276_v61 }
  0x7f   : > { %903 = vmatprep.mubr.bf16.mxu0 %v2279_v62 }
  0x86   : > { %904 = vmatmul.mubr.bf16.gmra.mrb[44].mxu0 %v2281_v63 }
  0x87   : > { %911 = vmatprep.mubr.bf16.mxu0 %v2282_v0 }
  0x8e   : > { %912 = vmatmul.mubr.bf16.gmra.mrb[48].mxu0 %v2284_v1 }
  0x8f   : > { %919 = vmatprep.mubr.bf16.mxu0 %v2287_v2 }
  0x96   : > { %920 = vmatmul.mubr.bf16.gmra.mrb[52].mxu0 %v2289_v3 }
  0x97   : > { %927 = vmatprep.mubr.bf16.mxu0 %v2290_v4 }
  0x9e   : > { %928 = vmatmul.mubr.bf16.gmra.mrb[56].mxu0 %v2292_v5 }
  0x9f   : > { %935 = vmatprep.mubr.bf16.mxu0 %v2295_v6 }
  0xa6   : > { %936 = vmatmul.mubr.bf16.gmra.mrb[60].mxu0 %v2297_v7 }
 0x101   : > { %v1845_v27 = vpop.f32.mrb[0].mxu0 }
 0x102   : > { %v1846_v28 = vpop.f32.mrb[1].mxu0 }
 0x103   : > { %v1847_v29 = vadd.f32 %v1846_v28, %v1845_v27  ;;  %v1848_v30 = vpop.f32.mrb[2].mxu0  ;;  %v2017_v31 = vpop.f32.mrb[0].mxu1 }
 0x104   : > { %v1849_v32 = vpop.f32.mrb[3].mxu0  ;;  %v978_v33 = vpop.f32.mrb[1].mxu1 }
 0x105   : > { %v1850_v36 = vadd.f32 %v1849_v32, %v1848_v30  ;;  %v2650_v37 = vadd.f32 %v1847_v29, %v978_v33  ;;  %v2018_v38 = vpop.f32.mrb[2].mxu1 }
 0x106   : > { %v981_v40 = vpop.f32.mrb[3].mxu1 }
 0x107   : > { %v2654_v41 = vadd.f32 %v1850_v36, %v981_v40 }
 0x109   : > { %v1851_v44 = vpop.f32.mrb[4].mxu0 }
 0x10a   : > { %v1852_v46 = vpop.f32.mrb[5].mxu0 }
 0x10b   : > { %v1853_v47 = vadd.f32 %v1852_v46, %v1851_v44  ;;  %v1854_v48 = vpop.f32.mrb[6].mxu0  ;;  %v2021_v49 = vpop.f32.mrb[4].mxu1 }
 0x10c   : > { %v1855_v50 = vpop.f32.mrb[7].mxu0  ;;  %v994_v51 = vpop.f32.mrb[5].mxu1 }
 0x10d   : > { %v2670_v53 = vadd.f32 %v2017_v31, %v1853_v47  ;;  %v1856_v54 = vadd.f32 %v1855_v50, %v1854_v48  ;;  %v2022_v55 = vpop.f32.mrb[6].mxu1 }
 0x10e   : > { %v997_v56 = vpop.f32.mrb[7].mxu1 }
 0x10f   : > { %v2672_v57 = vadd.f32 %v2018_v38, %v1856_v54  ;;  %v1121_v38 = vadd.f32 %v2654_v41, %v2650_v37 }
 0x111   : > { %v1857_v58 = vpop.f32.mrb[8].mxu0  ;;  %v1122_v43 = vadd.f32 %v1121_v38, %v2670_v53 }
 0x112   : > { %v1858_v59 = vpop.f32.mrb[9].mxu0 }
 0x113   : > { %v1859_v60 = vadd.f32 %v1858_v59, %v1857_v58  ;;  %v1860_v61 = vpop.f32.mrb[10].mxu0  ;;  %v2025_v62 = vpop.f32.mrb[8].mxu1 }
 0x114   : > { %v1861_v63 = vpop.f32.mrb[11].mxu0  ;;  %v1010_v0 = vpop.f32.mrb[9].mxu1 }
 0x115   : > { %v1862_v1 = vadd.f32 %v1861_v63, %v1860_v61  ;;  %v2674_v2 = vadd.f32 %v1859_v60, %v994_v51  ;;  %v2026_v3 = vpop.f32.mrb[10].mxu1 }
 0x116   : > { %v1013_v4 = vpop.f32.mrb[11].mxu1 }
 0x117   : > { %v2676_v5 = vadd.f32 %v1862_v1, %v997_v56  ;;  %v1123_v56 = vadd.f32 %v1122_v43, %v2672_v57 }
 0x119   : > { %v1863_v6 = vpop.f32.mrb[12].mxu0  ;;  %v1124_v59 = vadd.f32 %v1123_v56, %v2674_v2 }
 0x11a   : > { %v1864_v7 = vpop.f32.mrb[13].mxu0 }
 0x11b   : > { %v1865_v8 = vadd.f32 %v1864_v7, %v1863_v6  ;;  %v1866_v10 = vpop.f32.mrb[14].mxu0  ;;  %v2678_v12 = vpop.f32.mrb[12].mxu1  ;;  %v1125_v6 = vadd.f32 %v1124_v59, %v2676_v5 }
 0x11c   : > { %v1867_v13 = vpop.f32.mrb[15].mxu0  ;;  %v1026_v15 = vpop.f32.mrb[13].mxu1 }
 0x11d   : > { %v2680_v16 = vadd.f32 %v2021_v49, %v1865_v8  ;;  %v1868_v18 = vadd.f32 %v1867_v13, %v1866_v10  ;;  %v2682_v19 = vpop.f32.mrb[14].mxu1 }
 0x11e   : > { %v1029_v21 = vpop.f32.mrb[15].mxu1 }
 0x11f   : > { %v2684_v22 = vadd.f32 %v2022_v55, %v1868_v18  ;;  %v1126_v18 = vadd.f32 %v1125_v6, %v2680_v16 }
 0x121   : > { %v1869_v24 = vpop.f32.mrb[16].mxu0 }
 0x122   : > { %v1870_v25 = vpop.f32.mrb[17].mxu0 }
 0x123   : > { %v1871_v27 = vadd.f32 %v1870_v25, %v1869_v24  ;;  %v1872_v28 = vpop.f32.mrb[18].mxu0  ;;  %v2686_v29 = vpop.f32.mrb[16].mxu1  ;;  %v1158_v25 = vmul.f32 %v2650_v37, %v2650_v37 }
 0x124   : > { %v1873_v30 = vpop.f32.mrb[19].mxu0  ;;  %v2688_v31 = vpop.f32.mrb[17].mxu1 }
 0x125   : > { %v1874_v32 = vadd.f32 %v1873_v30, %v1872_v28  ;;  %v2690_v33 = vadd.f32 %v1871_v27, %v1010_v0  ;;  %v2692_v34 = vpop.f32.mrb[18].mxu1  ;;  %v1160_v27 = vmul.f32 %v2670_v53, %v2670_v53 }
 0x126   : > { %v2694_v35 = vpop.f32.mrb[19].mxu1 }
 0x127   : > { %v2696_v36 = vadd.f32 %v1874_v32, %v1013_v4  ;;  %v1127_v32 = vadd.f32 %v1126_v18, %v2684_v22 }
 0x129   : > { %v1875_v40 = vpop.f32.mrb[20].mxu0 }
 0x12a   : > { %v1876_v42 = vpop.f32.mrb[21].mxu0 }
 0x12b   : > { %v1877_v44 = vadd.f32 %v1876_v42, %v1875_v40  ;;  %v1878_v46 = vpop.f32.mrb[22].mxu0  ;;  %v2701_v47 = vpop.f32.mrb[20].mxu1 }
 0x12c   : > { %v1879_v48 = vpop.f32.mrb[23].mxu0  ;;  %v2703_v49 = vpop.f32.mrb[21].mxu1 }
 0x12d   : > { %v2705_v50 = vadd.f32 %v2025_v62, %v1877_v44  ;;  %v1880_v51 = vadd.f32 %v1879_v48, %v1878_v46  ;;  %v2707_v54 = vpop.f32.mrb[22].mxu1  ;;  %v1128_v48 = vadd.f32 %v1127_v32, %v2690_v33 }
 0x12e   : > { %v2709_v55 = vpop.f32.mrb[23].mxu1 }
 0x12f   : > { %v2712_v58 = vadd.f32 %v2026_v3, %v1880_v51  ;;  %v1159_v3 = vmul.f32 %v2654_v41, %v2654_v41 }
 0x131   : > { %v1881_v60 = vpop.f32.mrb[24].mxu0 }
 0x132   : > { %v1882_v61 = vpop.f32.mrb[25].mxu0 }
 0x133   : > { %v1883_v63 = vadd.f32 %v1882_v61, %v1881_v60  ;;  %v1884_v0 = vpop.f32.mrb[26].mxu0  ;;  %v2715_v1 = vpop.f32.mrb[24].mxu1  ;;  %v1162_v60 = vmul.f32 %v2674_v2, %v2674_v2 }
 0x134   : > { %v1885_v4 = vpop.f32.mrb[27].mxu0  ;;  %v2717_v62 = vpop.f32.mrb[25].mxu1 }
 0x135   : > { %v1886_v7 = vadd.f32 %v1885_v4, %v1884_v0  ;;  %v2720_v8 = vadd.f32 %v1883_v63, %v1026_v15  ;;  %v2722_v10 = vpop.f32.mrb[26].mxu1  ;;  %v1190_v15 = vadd.f32 %v1159_v3, %v1158_v25  ;;  %v1129_v4 = vadd.f32 %v1128_v48, %v2696_v36 }
 0x136   : > { %v2726_v13 = vpop.f32.mrb[27].mxu1 }
 0x137   : > { %v2729_v24 = vadd.f32 %v1886_v7, %v1029_v21  ;;  %v1191_v43 = vadd.f32 %v1190_v15, %v1160_v27  ;;  %v1161_v21 = vmul.f32 %v2672_v57, %v2672_v57  ;;  %v1130_v18 = vadd.f32 %v1129_v4, %v2705_v50 }
 0x139   : > { %v1887_v28 = vpop.f32.mrb[28].mxu0  ;;  %v1192_v0 = vadd.f32 %v1191_v43, %v1161_v21  ;;  %v1165_v21 = vmul.f32 %v2684_v22, %v2684_v22 }
 0x13a   : > { %v1888_v30 = vpop.f32.mrb[29].mxu0 }
 0x13b   : > { %v1889_v38 = vadd.f32 %v1888_v30, %v1887_v28  ;;  %v1890_v40 = vpop.f32.mrb[30].mxu0  ;;  %v2736_v42 = vpop.f32.mrb[28].mxu1  ;;  %v1193_v7 = vadd.f32 %v1192_v0, %v1162_v60  ;;  %v1164_v28 = vmul.f32 %v2680_v16, %v2680_v16 }
 0x13c   : > { %v1891_v44 = vpop.f32.mrb[31].mxu0  ;;  %v2740_v46 = vpop.f32.mrb[29].mxu1 }
 0x13d   : > { %v2744_v51 = vadd.f32 %v2678_v12, %v1889_v38  ;;  %v1892_v56 = vadd.f32 %v1891_v44, %v1890_v40  ;;  %v2746_v59 = vpop.f32.mrb[30].mxu1  ;;  %v1163_v12 = vmul.f32 %v2676_v5, %v2676_v5  ;;  %v1131_v38 = vadd.f32 %v1130_v18, %v2712_v58 }
 0x13e   : > { %v2750_v61 = vpop.f32.mrb[31].mxu1  ;;  %v1167_v18 = vmul.f32 %v2696_v36, %v2696_v36 }
 0x13f   : > { %v2753_v63 = vadd.f32 %v2682_v19, %v1892_v56  ;;  %v1194_v32 = vadd.f32 %v1193_v7, %v1163_v12  ;;  %v1132_v44 = vadd.f32 %v1131_v38, %v2720_v8  ;;  %v1166_v56 = vmul.f32 %v2690_v33, %v2690_v33 }
 0x141   : > { %v1893_v6 = vpop.f32.mrb[32].mxu0  ;;  %v1195_v43 = vadd.f32 %v1194_v32, %v1164_v28  ;;  %v1133_v7 = vadd.f32 %v1132_v44, %v2729_v24  ;;  %v1168_v28 = vmul.f32 %v2705_v50, %v2705_v50  ;;  %v1169_v44 = vmul.f32 %v2712_v58, %v2712_v58 }
 0x142   : > { %v1894_v3 = vpop.f32.mrb[33].mxu0 }
 0x143   : > { %v1895_v25 = vadd.f32 %v1894_v3, %v1893_v6  ;;  %v1896_v27 = vpop.f32.mrb[34].mxu0  ;;  %v1196_v4 = vadd.f32 %v1195_v43, %v1165_v21 }
 0x144   : > { %v1897_v15 = vpop.f32.mrb[35].mxu0 }
 0x145   : > { %v1898_v30 = vadd.f32 %v1897_v15, %v1896_v27  ;;  %v2762_v19 = vadd.f32 %v1895_v25, %v2688_v31  ;;  %v1197_v3 = vadd.f32 %v1196_v4, %v1166_v56  ;;  %v1134_v25 = vadd.f32 %v1133_v7, %v2744_v51 }
 0x147   : > { %v2766_v40 = vadd.f32 %v1898_v30, %v2694_v35  ;;  %v1198_v30 = vadd.f32 %v1197_v3, %v1167_v18  ;;  %v1135_v38 = vadd.f32 %v1134_v25, %v2753_v63  ;;  %v1171_v3 = vmul.f32 %v2729_v24, %v2729_v24 }
 0x149   : > { %v1899_v48 = vpop.f32.mrb[36].mxu0  ;;  %v1199_v21 = vadd.f32 %v1198_v30, %v1168_v28  ;;  %v1136_v56 = vadd.f32 %v1135_v38, %v2762_v19 }
 0x14a   : > { %v1900_v60 = vpop.f32.mrb[37].mxu0 }
 0x14b   : > { %v1901_v0 = vadd.f32 %v1900_v60, %v1899_v48  ;;  %v1902_v31 = vpop.f32.mrb[38].mxu0  ;;  %v1200_v4 = vadd.f32 %v1199_v21, %v1169_v44  ;;  %v1173_v44 = vmul.f32 %v2753_v63, %v2753_v63 }
 0x14c   : > { %v1903_v6 = vpop.f32.mrb[39].mxu0 }
 0x14d   : > { %v2775_v35 = vadd.f32 %v2686_v29, %v1901_v0  ;;  %v1904_v12 = vadd.f32 %v1903_v6, %v1902_v31  ;;  %v1170_v0 = vmul.f32 %v2720_v8, %v2720_v8  ;;  %v1137_v6 = vadd.f32 %v1136_v56, %v2766_v40 }
 0x14f   : > { %v2781_v27 = vadd.f32 %v2692_v34, %v1904_v12  ;;  %v1201_v12 = vadd.f32 %v1200_v4, %v1170_v0  ;;  %v1138_v25 = vadd.f32 %v1137_v6, %v2775_v35 }
 0x151   : > { %v1905_v15 = vpop.f32.mrb[40].mxu0  ;;  %v1202_v38 = vadd.f32 %v1201_v12, %v1171_v3 }
 0x152   : > { %v1906_v32 = vpop.f32.mrb[41].mxu0 }
 0x153   : > { %v1907_v29 = vadd.f32 %v1906_v32, %v1905_v15  ;;  %v1908_v43 = vpop.f32.mrb[42].mxu0  ;;  %v1172_v15 = vmul.f32 %v2744_v51, %v2744_v51 }
 0x154   : > { %v1909_v48 = vpop.f32.mrb[43].mxu0 }
 0x155   : > { %v1910_v60 = vadd.f32 %v1909_v48, %v1908_v43  ;;  %v2790_v34 = vadd.f32 %v1907_v29, %v2703_v49  ;;  %v1139_v29 = vadd.f32 %v1138_v25, %v2781_v27  ;;  %v1203_v21 = vadd.f32 %v1202_v38, %v1172_v15 }
 0x156   : > { %v1175_v25 = vmul.f32 %v2766_v40, %v2766_v40  ;;  %v1176_v15 = vmul.f32 %v2775_v35, %v2775_v35 }
 0x157   : > { %v2795_v31 = vadd.f32 %v1910_v60, %v2709_v55  ;;  %v1140_v48 = vadd.f32 %v1139_v29, %v2790_v34  ;;  %v1174_v60 = vmul.f32 %v2762_v19, %v2762_v19  ;;  %v1204_v6 = vadd.f32 %v1203_v21, %v1173_v44 }
 0x159   : > { %v1911_v7 = vpop.f32.mrb[44].mxu0  ;;  %v1141_v12 = vadd.f32 %v1140_v48, %v2795_v31 }
 0x15a   : > { %v1912_v18 = vpop.f32.mrb[45].mxu0 }
 0x15b   : > { %v1913_v28 = vadd.f32 %v1912_v18, %v1911_v7  ;;  %v1914_v49 = vpop.f32.mrb[46].mxu0  ;;  %v1205_v18 = vadd.f32 %v1204_v6, %v1174_v60 }
 0x15c   : > { %v1915_v30 = vpop.f32.mrb[47].mxu0 }
 0x15d   : > { %v2804_v55 = vadd.f32 %v2701_v47, %v1913_v28  ;;  %v1916_v32 = vadd.f32 %v1915_v30, %v1914_v49 }
 0x15f   : > { %v2808_v43 = vadd.f32 %v2707_v54, %v1916_v32  ;;  %v1142_v28 = vadd.f32 %v1141_v12, %v2804_v55  ;;  %v1206_v32 = vadd.f32 %v1205_v18, %v1175_v25  ;;  %v1179_v25 = vmul.f32 %v2795_v31, %v2795_v31 }
 0x161   : > { %v1917_v56 = vpop.f32.mrb[48].mxu0  ;;  %v1143_v29 = vadd.f32 %v1142_v28, %v2808_v43  ;;  %v1207_v44 = vadd.f32 %v1206_v32, %v1176_v15  ;;  %v1180_v32 = vmul.f32 %v2804_v55, %v2804_v55 }
 0x162   : > { %v1918_v0 = vpop.f32.mrb[49].mxu0 }
 0x163   : > { %v1919_v47 = vadd.f32 %v1918_v0, %v1917_v56  ;;  %v1920_v4 = vpop.f32.mrb[50].mxu0  ;;  %v1177_v56 = vmul.f32 %v2781_v27, %v2781_v27 }
 0x164   : > { %v1921_v7 = vpop.f32.mrb[51].mxu0 }
 0x165   : > { %v1922_v3 = vadd.f32 %v1921_v7, %v1920_v4  ;;  %v2817_v54 = vadd.f32 %v1919_v47, %v2717_v62  ;;  %v1178_v47 = vmul.f32 %v2790_v34, %v2790_v34  ;;  %v1208_v6 = vadd.f32 %v1207_v44, %v1177_v56 }
 0x167   : > { %v2823_v49 = vadd.f32 %v1922_v3, %v2726_v13  ;;  %v1144_v60 = vadd.f32 %v1143_v29, %v2817_v54  ;;  %v1209_v18 = vadd.f32 %v1208_v6, %v1178_v47  ;;  %v1182_v47 = vmul.f32 %v2817_v54, %v2817_v54 }
 0x169   : > { %v1923_v30 = vpop.f32.mrb[52].mxu0  ;;  %v1145_v7 = vadd.f32 %v1144_v60, %v2823_v49  ;;  %v1210_v29 = vadd.f32 %v1209_v18, %v1179_v25 }
 0x16a   : > { %v1924_v38 = vpop.f32.mrb[53].mxu0 }
 0x16b   : > { %v1925_v21 = vadd.f32 %v1924_v38, %v1923_v30  ;;  %v1926_v62 = vpop.f32.mrb[54].mxu0  ;;  %v1211_v44 = vadd.f32 %v1210_v29, %v1180_v32 }
 0x16c   : > { %v1927_v48 = vpop.f32.mrb[55].mxu0 }
 0x16d   : > { %v2832_v13 = vadd.f32 %v2715_v1, %v1925_v21  ;;  %v1928_v0 = vadd.f32 %v1927_v48, %v1926_v62  ;;  %v1181_v48 = vmul.f32 %v2808_v43, %v2808_v43 }
 0x16f   : > { %v2837_v4 = vadd.f32 %v2722_v10, %v1928_v0  ;;  %v1146_v28 = vadd.f32 %v1145_v7, %v2832_v13 }
 0x171   : > { %v1929_v12 = vpop.f32.mrb[56].mxu0  ;;  %v1147_v21 = vadd.f32 %v1146_v28, %v2837_v4  ;;  %v1183_v28 = vmul.f32 %v2823_v49, %v2823_v49 }
 0x172   : > { %v1930_v3 = vpop.f32.mrb[57].mxu0 }
 0x173   : > { %v1931_v1 = vadd.f32 %v1930_v3, %v1929_v12  ;;  %v1932_v15 = vpop.f32.mrb[58].mxu0  ;;  %v1212_v12 = vadd.f32 %v1211_v44, %v1181_v48 }
 0x174   : > { %v1933_v30 = vpop.f32.mrb[59].mxu0 }
 0x175   : > { %v1934_v38 = vadd.f32 %v1933_v30, %v1932_v15  ;;  %v2846_v10 = vadd.f32 %v1931_v1, %v2740_v46  ;;  %v1213_v25 = vadd.f32 %v1212_v12, %v1182_v47  ;;  %v1184_v30 = vmul.f32 %v2832_v13, %v2832_v13 }
 0x177   : > { %v2850_v62 = vadd.f32 %v1934_v38, %v2750_v61  ;;  %v1148_v56 = vadd.f32 %v1147_v21, %v2846_v10  ;;  %v1214_v38 = vadd.f32 %v1213_v25, %v1183_v28  ;;  %v1186_v48 = vmul.f32 %v2846_v10, %v2846_v10 }
 0x179   : > { %v1935_v60 = vpop.f32.mrb[60].mxu0  ;;  %v1149_v3 = vadd.f32 %v1148_v56, %v2850_v62  ;;  %v1215_v21 = vadd.f32 %v1214_v38, %v1184_v30  ;;  %v1187_v47 = vmul.f32 %v2850_v62, %v2850_v62 }
 0x17a   : > { %v1936_v0 = vpop.f32.mrb[61].mxu0 }
 0x17b   : > { %v1937_v6 = vadd.f32 %v1936_v0, %v1935_v60  ;;  %v1938_v46 = vpop.f32.mrb[62].mxu0 }
 0x17c   : > { %v1939_v7 = vpop.f32.mrb[63].mxu0 }
 0x17d   : > { %v2859_v61 = vadd.f32 %v2736_v42, %v1937_v6  ;;  %v1940_v18 = vadd.f32 %v1939_v7, %v1938_v46  ;;  %v1185_v42 = vmul.f32 %v2837_v4, %v2837_v4 }
 0x17f   : > { %v1150_v1 = vadd.f32 %v1149_v3, %v2859_v61  ;;  %v2865_v15 = vadd.f32 %v2746_v59, %v1940_v18  ;;  %v1216_v60 = vadd.f32 %v1215_v21, %v1185_v42  ;;  %v1188_v46 = vmul.f32 %v2859_v61, %v2859_v61 }
 0x181   : > { %v1151_v32 = vadd.f32 %v1150_v1, %v2865_v15  ;;  %v1217_v59 = vadd.f32 %v1216_v60, %v1186_v48  ;;  %v1189_v18 = vmul.f32 %v2865_v15, %v2865_v15 }
 0x183   : > { %v1152_v29 = vrot.slane %v1151_v32, 4  ;;  %v1218_v12 = vadd.f32 %v1217_v59, %v1187_v47 }
 0x185   : > { %v1153_v44 = vadd.f32 %v1152_v29, %v1151_v32  ;;  %v1219_v3 = vadd.f32 %v1218_v12, %v1188_v46  ;;  %v1374_v32 = vlaneseq }
 0x187   : > { %v1154_v56 = vrot.slane %v1153_v44, 2  ;;  %v1220_v25 = vadd.f32 %v1219_v3, %v1189_v18  ;;  %v1375_v21 = vshrl.u32 %v1374_v32, 7 }
 0x189   : > { %v1155_v0 = vadd.f32 %v1154_v56, %v1153_v44  ;;  %v1221_v28 = vrot.slane %v1220_v25, 4  ;;  %v1376_v48 = vsub.s32 0, %v1375_v21 }
 0x18b   : > { %v1156_v6 = vrot.slane %v1155_v0, 1 }
 0x18d   : > { %v1157_v7 = vadd.f32 %v1156_v6, %v1155_v0 }
 0x18f   : > { %2080 = vmatmul.mubr.f32.vlgmr.msra.gmra.mrb[32].mxu1 %v1157_v7 }
 0x190   : > { %2143 = vmatpush3.bf16.msra.mxu1 %v2590_v11  ;;  %2114 = vmatprep.mubr.msk.f32.mxu1 %vm2365_vm0, %v2366_v52  ;;  %v1222_v11 = vadd.f32 %v1221_v28, %v1220_v25 }
 0x191   : > { %2144 = vmatprep.subr.bf16.mxu1 %v2364_v9 }
 0x192   : > { %v1223_v52 = vrot.slane %v1222_v11, 2 }
 0x194   : > { %2146 = vmatpush3.bf16.msra.mxu1 %v2600_v14  ;;  %v1224_v14 = vadd.f32 %v1223_v52, %v1222_v11 }
 0x195   : > { %2147 = vmatprep.subr.bf16.mxu1 %v2364_v9 }
 0x198   : > { %2149 = vmatpush3.bf16.msra.mxu1 %v2610_v17  ;;  %v1225_v17 = vrot.slane %v1224_v14, 1 }
 0x199   : > { %2150 = vmatprep.subr.bf16.mxu1 %v2364_v9 }
 0x19c   : > { %2152 = vmatpush3.bf16.msra.mxu1 %v2620_v20  ;;  %v1226_v20 = vadd.f32 %v1225_v17, %v1224_v14 }
 0x19d   : > { %2153 = vmatprep.subr.bf16.mxu1 %v2364_v9 }
 0x1a0   : > { %2155 = vmatpush3.bf16.msra.mxu1 %v2630_v23 }
 0x1a1   : > { %2156 = vmatprep.subr.bf16.mxu1 %v2364_v9 }
 0x1a4   : > { %2158 = vmatpush3.bf16.msra.mxu1 %v2640_v26 }
 0x1a5   : > { %2159 = vmatprep.subr.bf16.mxu1 %v2364_v9 }
 0x1a8   : > { %2161 = vmatpush3.bf16.msra.mxu1 %v2652_v39 }
 0x1a9   : > { %2162 = vmatprep.subr.bf16.mxu1 %v2364_v9 }
 0x1ac   : > { %2164 = vmatpush3.bf16.msra.mxu1 %v2664_v45 }
 0x1af   : > { %2115 = vmatmul.mubr.f32.vlgmr.msra.gmra.mrb[34].mxu1 %v1226_v20 }
 0x262   : > { %v1293_v1 = vpop.f32.mrb[32].mxu1 }
 0x263   : > { %v2081_v30 = vpop.f32.mrb[33].mxu1  ;;  %v1367_v23 = vmul.f32 0.001953125, %v1293_v1 }
 0x265   : > { %v1369_v29 = vmul.f32 %v1367_v23, %v1367_v23  ;;  %v2897_v60 = vrot.slane %v1367_v23, %v1376_v48 }
 0x267   : > { %v1378_v9 = vsub.f32 %v2650_v37, %v2897_v60  ;;  %v1379_v45 = vsub.f32 %v2654_v41, %v2897_v60  ;;  %v1380_v0 = vsub.f32 %v2670_v53, %v2897_v60  ;;  %v1381_v59 = vsub.f32 %v2672_v57, %v2897_v60 }
 0x268   : > { %v1382_v47 = vsub.f32 %v2674_v2, %v2897_v60  ;;  %v1383_v6 = vsub.f32 %v2676_v5, %v2897_v60  ;;  %v1384_v46 = vsub.f32 %v2680_v16, %v2897_v60  ;;  %v1385_v37 = vsub.f32 %v2684_v22, %v2897_v60 }
 0x269   : > { %v1386_v41 = vsub.f32 %v2690_v33, %v2897_v60  ;;  %v1387_v53 = vsub.f32 %v2696_v36, %v2897_v60  ;;  %v1388_v57 = vsub.f32 %v2705_v50, %v2897_v60  ;;  %v1389_v2 = vsub.f32 %v2712_v58, %v2897_v60 }
 0x26a   : > { %v1390_v5 = vsub.f32 %v2720_v8, %v2897_v60  ;;  %v1391_v16 = vsub.f32 %v2729_v24, %v2897_v60  ;;  %v1392_v22 = vsub.f32 %v2744_v51, %v2897_v60  ;;  %v1393_v33 = vsub.f32 %v2753_v63, %v2897_v60 }
 0x26b   : > { %v1394_v36 = vsub.f32 %v2762_v19, %v2897_v60  ;;  %v1395_v50 = vsub.f32 %v2766_v40, %v2897_v60  ;;  %v1396_v58 = vsub.f32 %v2775_v35, %v2897_v60  ;;  %v1397_v8 = vsub.f32 %v2781_v27, %v2897_v60 }
 0x26c   : > { %v1398_v24 = vsub.f32 %v2790_v34, %v2897_v60  ;;  %v1399_v51 = vsub.f32 %v2795_v31, %v2897_v60  ;;  %v1400_v63 = vsub.f32 %v2804_v55, %v2897_v60  ;;  %v1401_v19 = vsub.f32 %v2808_v43, %v2897_v60 }
 0x26d   : > { %v1402_v40 = vsub.f32 %v2817_v54, %v2897_v60  ;;  %v1403_v35 = vsub.f32 %v2823_v49, %v2897_v60  ;;  %v1404_v27 = vsub.f32 %v2832_v13, %v2897_v60  ;;  %v1405_v34 = vsub.f32 %v2837_v4, %v2897_v60 }
 0x26e   : > { %v1406_v31 = vsub.f32 %v2846_v10, %v2897_v60  ;;  %v1407_v55 = vsub.f32 %v2850_v62, %v2897_v60  ;;  %v1408_v43 = vsub.f32 %v2859_v61, %v2897_v60  ;;  %v1409_v54 = vsub.f32 %v2865_v15, %v2897_v60 }
 0x282   : > { %v1363_v38 = vpop.f32.mrb[34].mxu1 }
 0x283   : > { %v1368_v26 = vmul.f32 0.001953125, %v1363_v38  ;;  %v2116_v42 = vpop.f32.mrb[35].mxu1  ;;  %v1820_v38 = vld [vmem:[%s3162_s3] ss:$0 sm:$0xff] }
 0x285   : > { %v1370_v44 = vsub.f32 %v1368_v26, %v1369_v29 }
 0x287   : > { %v1371_v56 = vmax.f32 %v1370_v44, 0.0 }
 0x289   : > { %v1372_v39 = vadd.f32 1e-05, %v1371_v56 }
 0x28b   : > { %2298 = vrsqrt.f32 %v1372_v39 }
 0x295   : > { %v2299_v7 = vpop.eup %2298 }
 0x296   : > { %v1413_v12 = vrot.slane %v2299_v7, %v1376_v48 }
 0x298   : > { %v1414_v49 = vmul.f32 %v1413_v12, %v1378_v9  ;;  %v1415_v3 = vmul.f32 %v1413_v12, %v1379_v45  ;;  %v1416_v18 = vmul.f32 %v1413_v12, %v1380_v0  ;;  %v1417_v13 = vmul.f32 %v1413_v12, %v1381_v59 }
 0x299   : > { %v1418_v25 = vmul.f32 %v1413_v12, %v1382_v47  ;;  %v1419_v28 = vmul.f32 %v1413_v12, %v1383_v6  ;;  %v1420_v4 = vmul.f32 %v1413_v12, %v1384_v46  ;;  %v1421_v11 = vmul.f32 %v1413_v12, %v1385_v37 }
 0x29a   : > { %v1422_v52 = vmul.f32 %v1413_v12, %v1386_v41  ;;  %v1423_v14 = vmul.f32 %v1413_v12, %v1387_v53  ;;  %v1424_v10 = vmul.f32 %v1413_v12, %v1388_v57  ;;  %v1425_v17 = vmul.f32 %v1413_v12, %v1389_v2 }
 0x29b   : > { %v1426_v20 = vmul.f32 %v1413_v12, %v1390_v5  ;;  %v1427_v62 = vmul.f32 %v1413_v12, %v1391_v16  ;;  %v1428_v1 = vmul.f32 %v1413_v12, %v1392_v22  ;;  %v1429_v30 = vmul.f32 %v1413_v12, %v1393_v33 }
 0x29c   : > { %v1430_v61 = vmul.f32 %v1413_v12, %v1394_v36  ;;  %v1431_v23 = vmul.f32 %v1413_v12, %v1395_v50  ;;  %v1432_v32 = vmul.f32 %v1413_v12, %v1396_v58  ;;  %v1433_v15 = vmul.f32 %v1413_v12, %v1397_v8 }
 0x29d   : > { %v1434_v29 = vmul.f32 %v1413_v12, %v1398_v24  ;;  %v1435_v21 = vmul.f32 %v1413_v12, %v1399_v51  ;;  %v1436_v26 = vmul.f32 %v1413_v12, %v1400_v63  ;;  %v1437_v42 = vmul.f32 %v1413_v12, %v1401_v19  ;;  %v1821_v63 = vld [vmem:[%s3163_s4] ss:$0 sm:$0xff] }
 0x29e   : > { %v1438_v44 = vmul.f32 %v1413_v12, %v1402_v40  ;;  %v1439_v48 = vmul.f32 %v1413_v12, %v1403_v35  ;;  %v1440_v56 = vmul.f32 %v1413_v12, %v1404_v27  ;;  %v1441_v39 = vmul.f32 %v1413_v12, %v1405_v34 }
 0x29f   : > { %v1442_v60 = vmul.f32 %v1413_v12, %v1406_v31  ;;  %v1443_v9 = vmul.f32 %v1413_v12, %v1407_v55  ;;  %v1444_v45 = vmul.f32 %v1413_v12, %v1408_v43  ;;  %v1445_v0 = vmul.f32 %v1413_v12, %v1409_v54 }
 0x2a0   : > { %v1453_v59 = vmul.f32 %v1820_v38, %v1414_v49  ;;  %v1454_v47 = vmul.f32 %v1820_v38, %v1415_v3  ;;  %v1455_v6 = vmul.f32 %v1820_v38, %v1416_v18  ;;  %v1456_v46 = vmul.f32 %v1820_v38, %v1417_v13 }
 0x2a1   : > { %v1457_v37 = vmul.f32 %v1820_v38, %v1418_v25  ;;  %v1458_v41 = vmul.f32 %v1820_v38, %v1419_v28  ;;  %v1459_v53 = vmul.f32 %v1820_v38, %v1420_v4  ;;  %v1460_v57 = vmul.f32 %v1820_v38, %v1421_v11 }
 0x2a2   : > { %v1461_v2 = vmul.f32 %v1820_v38, %v1422_v52  ;;  %v1462_v5 = vmul.f32 %v1820_v38, %v1423_v14  ;;  %v1463_v16 = vmul.f32 %v1820_v38, %v1424_v10  ;;  %v1464_v22 = vmul.f32 %v1820_v38, %v1425_v17 }
 0x2a3   : > { %v1465_v33 = vmul.f32 %v1820_v38, %v1426_v20  ;;  %v1466_v36 = vmul.f32 %v1820_v38, %v1427_v62  ;;  %v1467_v50 = vmul.f32 %v1820_v38, %v1428_v1  ;;  %v1468_v58 = vmul.f32 %v1820_v38, %v1429_v30  ;;  %v1524_v1 = vld [vmem:[%s2973_s28] sm:$0xff]  ;;  %v1525_v30 = vld [vmem:[%s2973_s28 + $0x8] sm:$0xff] }
 0x2a4   : > { %v1469_v8 = vmul.f32 %v1820_v38, %v1430_v61  ;;  %v1470_v24 = vmul.f32 %v1820_v38, %v1431_v23  ;;  %v1471_v7 = vmul.f32 %v1820_v38, %v1432_v32  ;;  %v1472_v51 = vmul.f32 %v1820_v38, %v1433_v15  ;;  %v1526_v61 = vld [vmem:[%s2973_s28 + $0x10] sm:$0xff]  ;;  %v1527_v23 = vld [vmem:[%s2973_s28 + $0x18] sm:$0xff] }
 0x2a5   : > { %v1473_v19 = vmul.f32 %v1820_v38, %v1434_v29  ;;  %v1474_v40 = vmul.f32 %v1820_v38, %v1435_v21  ;;  %v1475_v35 = vmul.f32 %v1820_v38, %v1436_v26  ;;  %v1476_v27 = vmul.f32 %v1820_v38, %v1437_v42  ;;  %v1528_v21 = vld [vmem:[%s2973_s28 + $0x20] sm:$0xff]  ;;  %v1529_v26 = vld [vmem:[%s2973_s28 + $0x28] sm:$0xff]  ;;  %v1530_v42 = vld [vmem:[%s2973_s28 + $0x30] sm:$0xff] }
 0x2a6   : > { %v1477_v34 = vmul.f32 %v1820_v38, %v1438_v44  ;;  %v1478_v12 = vmul.f32 %v1820_v38, %v1439_v48  ;;  %v1479_v31 = vmul.f32 %v1820_v38, %v1440_v56  ;;  %v1480_v55 = vmul.f32 %v1820_v38, %v1441_v39  ;;  %v1531_v44 = vld [vmem:[%s2973_s28 + $0x38] sm:$0xff] }
 0x2a7   : > { %v1481_v43 = vmul.f32 %v1820_v38, %v1442_v60  ;;  %v1482_v54 = vmul.f32 %v1820_v38, %v1443_v9  ;;  %v1483_v49 = vmul.f32 %v1820_v38, %v1444_v45  ;;  %v1484_v3 = vmul.f32 %v1820_v38, %v1445_v0  ;;  %v1532_v9 = vld [vmem:[%s2973_s28 + $0x40] sm:$0xff]  ;;  %v1533_v45 = vld [vmem:[%s2973_s28 + $0x48] sm:$0xff]  ;;  %v1534_v0 = vld [vmem:[%s2973_s28 + $0x50] sm:$0xff] }
 0x2a8   : > { %v1492_v18 = vadd.f32 %v1821_v63, %v1453_v59  ;;  %v1493_v13 = vadd.f32 %v1821_v63, %v1454_v47  ;;  %v1494_v25 = vadd.f32 %v1821_v63, %v1455_v6  ;;  %v1495_v28 = vadd.f32 %v1821_v63, %v1456_v46 }
 0x2a9   : > { %v1496_v4 = vadd.f32 %v1821_v63, %v1457_v37  ;;  %v1497_v11 = vadd.f32 %v1821_v63, %v1458_v41  ;;  %v1498_v52 = vadd.f32 %v1821_v63, %v1459_v53  ;;  %v1499_v14 = vadd.f32 %v1821_v63, %v1460_v57  ;;  %v1535_v37 = vld [vmem:[%s2973_s28 + $0x58] sm:$0xff]  ;;  %v1536_v41 = vld [vmem:[%s2973_s28 + $0x60] sm:$0xff]  ;;  %v1537_v53 = vld [vmem:[%s2973_s28 + $0x68] sm:$0xff] }
 0x2aa   : > { %v1500_v10 = vadd.f32 %v1821_v63, %v1461_v2  ;;  %v1501_v17 = vadd.f32 %v1821_v63, %v1462_v5  ;;  %v1502_v20 = vadd.f32 %v1821_v63, %v1463_v16  ;;  %v1503_v62 = vadd.f32 %v1821_v63, %v1464_v22  ;;  %v1538_v22 = vld [vmem:[%s2973_s28 + $0x70] sm:$0xff] }
 0x2ab   : > { %v1504_v32 = vadd.f32 %v1821_v63, %v1465_v33  ;;  %v1505_v15 = vadd.f32 %v1821_v63, %v1466_v36  ;;  %v1506_v38 = vadd.f32 %v1821_v63, %v1467_v50  ;;  %v1507_v29 = vadd.f32 %v1821_v63, %v1468_v58  ;;  %v1539_v33 = vld [vmem:[%s2973_s28 + $0x78] sm:$0xff]  ;;  %v1540_v36 = vld [vmem:[%s2973_s28 + $0x80] sm:$0xff] }
 0x2ac   : > { %v1508_v48 = vadd.f32 %v1821_v63, %v1469_v8  ;;  %v1509_v56 = vadd.f32 %v1821_v63, %v1470_v24  ;;  %v1510_v39 = vadd.f32 %v1821_v63, %v1471_v7  ;;  %v1511_v60 = vadd.f32 %v1821_v63, %v1472_v51  ;;  %v1541_v7 = vld [vmem:[%s2973_s28 + $0x88] sm:$0xff]  ;;  %v1542_v51 = vld [vmem:[%s2973_s28 + $0x90] sm:$0xff] }
 0x2ad   : > { %v1512_v59 = vadd.f32 %v1821_v63, %v1473_v19  ;;  %v1513_v47 = vadd.f32 %v1821_v63, %v1474_v40  ;;  %v1514_v6 = vadd.f32 %v1821_v63, %v1475_v35  ;;  %v1515_v46 = vadd.f32 %v1821_v63, %v1476_v27  ;;  %v1543_v19 = vld [vmem:[%s2973_s28 + $0x98] sm:$0xff] }
 0x2ae   : > { %v1516_v57 = vadd.f32 %v1821_v63, %v1477_v34  ;;  %v1517_v2 = vadd.f32 %v1821_v63, %v1478_v12  ;;  %v1518_v5 = vadd.f32 %v1821_v63, %v1479_v31  ;;  %v1519_v16 = vadd.f32 %v1821_v63, %v1480_v55  ;;  %v1544_v12 = vld [vmem:[%s2973_s28 + $0xa0] sm:$0xff]  ;;  %v1545_v31 = vld [vmem:[%s2973_s28 + $0xa8] sm:$0xff]  ;;  %v1546_v55 = vld [vmem:[%s2973_s28 + $0xb0] sm:$0xff] }
 0x2af   : > { %v1520_v50 = vadd.f32 %v1821_v63, %v1481_v43  ;;  %v1521_v58 = vadd.f32 %v1821_v63, %v1482_v54  ;;  %v1522_v8 = vadd.f32 %v1821_v63, %v1483_v49  ;;  %v1523_v24 = vadd.f32 %v1821_v63, %v1484_v3  ;;  %v1547_v3 = vld [vmem:[%s2973_s28 + $0xb8] sm:$0xff] }
 0x2b0   : > { %v1556_v40 = vadd.f32 %v1524_v1, %v1492_v18  ;;  %v1557_v35 = vadd.f32 %v1525_v30, %v1493_v13  ;;  %v1558_v27 = vadd.f32 %v1526_v61, %v1494_v25  ;;  %v1559_v34 = vadd.f32 %v1527_v23, %v1495_v28  ;;  %v1548_v1 = vld [vmem:[%s2973_s28 + $0xc0] sm:$0xff]  ;;  %v1549_v18 = vld [vmem:[%s2973_s28 + $0xc8] sm:$0xff]  ;;  %v1550_v61 = vld [vmem:[%s2973_s28 + $0xd0] sm:$0xff] }
 0x2b1   : > { %v1560_v43 = vadd.f32 %v1528_v21, %v1496_v4  ;;  %v1561_v54 = vadd.f32 %v1529_v26, %v1497_v11  ;;  %v1562_v63 = vadd.f32 %v1530_v42, %v1498_v52  ;;  %v1563_v49 = vadd.f32 %v1531_v44, %v1499_v14  ;;  %v1551_v23 = vld [vmem:[%s2973_s28 + $0xd8] sm:$0xff]  ;;  %v1552_v4 = vld [vmem:[%s2973_s28 + $0xe0] sm:$0xff]  ;;  %v1553_v26 = vld [vmem:[%s2973_s28 + $0xe8] sm:$0xff] }
 0x2b2   : > { %v1564_v13 = vadd.f32 %v1532_v9, %v1500_v10  ;;  %v1565_v25 = vadd.f32 %v1533_v45, %v1501_v17  ;;  %v1566_v28 = vadd.f32 %v1534_v0, %v1502_v20  ;;  %v1567_v30 = vadd.f32 %v1535_v37, %v1503_v62  ;;  %v1554_v42 = vld [vmem:[%s2973_s28 + $0xf0] sm:$0xff]  ;;  %v1555_v10 = vld [vmem:[%s2973_s28 + $0xf8] sm:$0xff] }
 0x2b3   : > { %v3005_v21 = vadd.f32 %v1536_v41, %v1504_v32  ;;  %v3007_v11 = vadd.f32 %v1537_v53, %v1505_v15  ;;  %v3009_v52 = vadd.f32 %v1538_v22, %v1506_v38  ;;  %v3011_v14 = vadd.f32 %v1539_v33, %v1507_v29 }
 0x2b4   : > { %v3020_v17 = vadd.f32 %v1540_v36, %v1508_v48  ;;  %v3022_v20 = vadd.f32 %v1541_v7, %v1509_v56  ;;  %v3024_v62 = vadd.f32 %v1542_v51, %v1510_v39  ;;  %v3026_v32 = vadd.f32 %v1543_v19, %v1511_v60 }
 0x2b5   : > { %v3028_v15 = vadd.f32 %v1544_v12, %v1512_v59  ;;  %v3030_v38 = vadd.f32 %v1545_v31, %v1513_v47  ;;  %v3032_v29 = vadd.f32 %v1546_v55, %v1514_v6  ;;  %v3034_v44 = vadd.f32 %v1547_v3, %v1515_v46 }
 0x2b6   : > { %v3036_v9 = vadd.f32 %v1548_v1, %v1516_v57  ;;  %v3038_v45 = vadd.f32 %v1549_v18, %v1517_v2  ;;  %v3040_v48 = vadd.f32 %v1550_v61, %v1518_v5  ;;  %v3042_v56 = vadd.f32 %v1551_v23, %v1519_v16 }
 0x2b7   : > { %v3044_v39 = vadd.f32 %v1552_v4, %v1520_v50  ;;  %v3046_v60 = vadd.f32 %v1553_v26, %v1521_v58  ;;  %v3048_v0 = vadd.f32 %v1554_v42, %v1522_v8  ;;  %v3050_v59 = vadd.f32 %v1555_v10, %v1523_v24 }
 0x2b8   : > { %v1588_v47 = vmax.f32 %v1556_v40, 0.0  ;;  %v1589_v6 = vmax.f32 %v1557_v35, 0.0  ;;  %v1590_v46 = vmax.f32 %v1558_v27, 0.0  ;;  %v1591_v37 = vmax.f32 %v1559_v34, 0.0 }
 0x2b9   : > { %v1592_v41 = vmax.f32 %v1560_v43, 0.0  ;;  %v1593_v53 = vmax.f32 %v1561_v54, 0.0  ;;  %v1594_v57 = vmax.f32 %v1562_v63, 0.0  ;;  %v1595_v2 = vmax.f32 %v1563_v49, 0.0 }
 0x2ba   : > { %v1596_v5 = vmax.f32 %v1564_v13, 0.0  ;;  %v1597_v16 = vmax.f32 %v1565_v25, 0.0  ;;  %v1598_v22 = vmax.f32 %v1566_v28, 0.0  ;;  %v1599_v33 = vmax.f32 %v1567_v30, 0.0  ;;  %1620 = vst [vmem:[%s3053_s17] sm:$0xff] %v1588_v47  ;;  %1621 = vst [vmem:[%s3053_s17 + $0x8] sm:$0xff] %v1589_v6 }
 0x2bb   : > { %1622 = vst [vmem:[%s3053_s17 + $0x10] sm:$0xff] %v1590_v46  ;;  %1623 = vst [vmem:[%s3053_s17 + $0x18] sm:$0xff] %v1591_v37  ;;  %v1600_v36 = vmax.f32 %v3005_v21, 0.0  ;;  %v1601_v50 = vmax.f32 %v3007_v11, 0.0  ;;  %v1602_v58 = vmax.f32 %v3009_v52, 0.0  ;;  %v1603_v8 = vmax.f32 %v3011_v14, 0.0 }
 0x2bc   : > { %1624 = vst [vmem:[%s3053_s17 + $0x20] sm:$0xff] %v1592_v41  ;;  %1625 = vst [vmem:[%s3053_s17 + $0x28] sm:$0xff] %v1593_v53  ;;  %v1604_v24 = vmax.f32 %v3020_v17, 0.0  ;;  %v1605_v7 = vmax.f32 %v3022_v20, 0.0  ;;  %v1606_v51 = vmax.f32 %v3024_v62, 0.0  ;;  %v1607_v19 = vmax.f32 %v3026_v32, 0.0 }
 0x2bd   : > { %1626 = vst [vmem:[%s3053_s17 + $0x30] sm:$0xff] %v1594_v57  ;;  %1627 = vst [vmem:[%s3053_s17 + $0x38] sm:$0xff] %v1595_v2  ;;  %v1608_v40 = vmax.f32 %v3028_v15, 0.0  ;;  %v1609_v35 = vmax.f32 %v3030_v38, 0.0  ;;  %v1610_v27 = vmax.f32 %v3032_v29, 0.0  ;;  %v1611_v34 = vmax.f32 %v3034_v44, 0.0 }
 0x2be   : > { %1628 = vst [vmem:[%s3053_s17 + $0x40] sm:$0xff] %v1596_v5  ;;  %1629 = vst [vmem:[%s3053_s17 + $0x48] sm:$0xff] %v1597_v16  ;;  %v1612_v12 = vmax.f32 %v3036_v9, 0.0  ;;  %v1613_v31 = vmax.f32 %v3038_v45, 0.0  ;;  %v1614_v55 = vmax.f32 %v3040_v48, 0.0  ;;  %v1615_v43 = vmax.f32 %v3042_v56, 0.0 }
 0x2bf   : > { %1630 = vst [vmem:[%s3053_s17 + $0x50] sm:$0xff] %v1598_v22  ;;  %1631 = vst [vmem:[%s3053_s17 + $0x58] sm:$0xff] %v1599_v33  ;;  %v1616_v54 = vmax.f32 %v3044_v39, 0.0  ;;  %v1617_v63 = vmax.f32 %v3046_v60, 0.0  ;;  %v1618_v49 = vmax.f32 %v3048_v0, 0.0  ;;  %v1619_v3 = vmax.f32 %v3050_v59, 0.0 }
 0x2c0   : > { %1632 = vst [vmem:[%s3053_s17 + $0x60] sm:$0xff] %v1600_v36  ;;  %1633 = vst [vmem:[%s3053_s17 + $0x68] sm:$0xff] %v1601_v50 }
 0x2c1   : > { %1634 = vst [vmem:[%s3053_s17 + $0x70] sm:$0xff] %v1602_v58  ;;  %1635 = vst [vmem:[%s3053_s17 + $0x78] sm:$0xff] %v1603_v8 }
 0x2c2   : > { %1636 = vst [vmem:[%s3053_s17 + $0x80] sm:$0xff] %v1604_v24  ;;  %1637 = vst [vmem:[%s3053_s17 + $0x88] sm:$0xff] %v1605_v7 }
 0x2c3   : > { %1638 = vst [vmem:[%s3053_s17 + $0x90] sm:$0xff] %v1606_v51  ;;  %1639 = vst [vmem:[%s3053_s17 + $0x98] sm:$0xff] %v1607_v19 }
 0x2c4   : > { %1640 = vst [vmem:[%s3053_s17 + $0xa0] sm:$0xff] %v1608_v40  ;;  %1641 = vst [vmem:[%s3053_s17 + $0xa8] sm:$0xff] %v1609_v35 }
 0x2c5   : > { %1642 = vst [vmem:[%s3053_s17 + $0xb0] sm:$0xff] %v1610_v27  ;;  %1643 = vst [vmem:[%s3053_s17 + $0xb8] sm:$0xff] %v1611_v34 }
 0x2c6   : > { %1644 = vst [vmem:[%s3053_s17 + $0xc0] sm:$0xff] %v1612_v12  ;;  %1645 = vst [vmem:[%s3053_s17 + $0xc8] sm:$0xff] %v1613_v31 }
 0x2c7   : > { %1646 = vst [vmem:[%s3053_s17 + $0xd0] sm:$0xff] %v1614_v55  ;;  %1647 = vst [vmem:[%s3053_s17 + $0xd8] sm:$0xff] %v1615_v43 }
 0x2c8   : > { %1648 = vst [vmem:[%s3053_s17 + $0xe0] sm:$0xff] %v1616_v54  ;;  %1649 = vst [vmem:[%s3053_s17 + $0xe8] sm:$0xff] %v1617_v63 }
 0x2c9   : > { %1650 = vst [vmem:[%s3053_s17 + $0xf0] sm:$0xff] %v1618_v49  ;;  %1651 = vst [vmem:[%s3053_s17 + $0xf8] sm:$0xff] %v1619_v3 }
 0x2ca   : > { %2313 = shalt.err (!%p2310_p3)
}
 0x2cb   : > { %s2314_s13 = scalar_lea.hbm %s3096_s26, 4096  ;;  %s2318_s16 = scalar_lea.hbm %s3165_s6, 8192 }
 0x2cc   : > { %p2315_p4 = scmp.ne.s32.totalorder %s3096_s26, %s2314_s13  ;;  %p2319_p9 = scmp.lt.u32.totalorder %s3096_s26, %s3165_s6 }
 0x2cd   : > { %p2320_p10 = scmp.lt.u32.totalorder %s2318_s16, %s2314_s13  ;;  %p2322_p12 = scmp.lt.u32.totalorder %s2314_s13, %s3096_s26 }
 0x2ce   : > { %p2316_p7 = pnand %p2315_p4, %p2443_p5 }
 0x2cf   : > { %p2321_p11 = por %p2320_p10, %p2319_p9 }
 0x2d0   : > { %p2317_p8 = pneg %p2316_p7 }
 0x2d1   : > { %p2323_p13 = por %p2322_p12, %p2321_p11 }
 0x2d3   : > { %p2324_p0 = pnand %p2323_p13, %p2317_p8 }
 0x2d5   : > { %2327 = shalt.err (!%p2324_p0)
}
 0x2d6   : > { %s2368_s18 = smov 128   ;;  %s2369_s25 = smov 8  }
 0x2d7   : > { %2166 = dma.vmem_to_hbm [thread:$0]  (%p2443_p5), %s3098_s19, 4096, %s3096_s26, %s3118_s29, %s2368_s18, %s2368_s18, %s2369_s25  }
 0x2d8 PF: > { %p2172_p1 = scmp.ge.s32.totalorder %s2362_s24, 2  ;;  %s1681_s20 = sand.u32 1, %s2350_s21  }
 0x2d9   : > { %s1682_s9 = scalar_lea.sflag [#allocation3], %s1681_s20 }
 0x2da   : > { %p2169_p2 = pnand %p2172_p1, %p2447_p6 }
 0x2dc   : > { %2345 = dma.done.wait (!%p2169_p2), %s1682_s9, 4096  }
 0x2dd   : > { %2347 = vsyncadd (!%p2169_p2), %s1682_s9, 4294963200  ;;  %p16_p3 = scmp.ge.s32.totalorder %s2430_s27, 4   ;;  %s3168_s21 = smov %s2354_s22 }
 0x2de   : > { %s3169_s22 = smov %s2358_s23  ;;  %s3170_s23 = smov %s2441_s30 }
 0x2df   : > { %s3171_s24 = smov %s2430_s27  ;;  %18 = sbr.rel (!%p16_p3) target bundleno = 3 (0x3), region = 82 }
 0x2e6   :  { %1687 = vsyncpa [#allocation3], 1 }
 0x2e7   :  { %1689 = vsyncpa [#allocation3 + $0x1], 1 }

</bundles_post_ra>
